<compile_context>
chip_gen: v7x
topology: tpu7x:2x2x1
jax: 0.10.0
libtpu: 0.0.40
codegen_flags: <defaults>
</compile_context>

<pallas_src>
import jax
import jax.numpy as jnp
import numpy as np
from jax import lax
from jax.experimental import pallas as pl
from jax.experimental.pallas import tpu as pltpu

EPS = 1e-5


def _conv3x3_im2col(patch_ref, inp, w):
    """3x3 'same' conv as a single im2col matmul. No bias (cancelled by IBN)."""
    N, Hp, Wp, C = inp.shape
    Cout = w.shape[-1]
    k = 0
    for dy in (-1, 0, 1):
        for dx in (-1, 0, 1):
            c0 = k * C
            # zero only the out-of-bounds halo rows/cols of this tap
            if dy == -1:
                patch_ref[:, 0:1, :, c0:c0 + C] = jnp.zeros((N, 1, Wp, C), jnp.float32)
            elif dy == 1:
                patch_ref[:, Hp - 1:Hp, :, c0:c0 + C] = jnp.zeros((N, 1, Wp, C), jnp.float32)
            if dx == -1:
                patch_ref[:, :, 0:1, c0:c0 + C] = jnp.zeros((N, Hp, 1, C), jnp.float32)
            elif dx == 1:
                patch_ref[:, :, Wp - 1:Wp, c0:c0 + C] = jnp.zeros((N, Hp, 1, C), jnp.float32)
            # valid (in-bounds) region of the shifted tap
            y0, y1 = max(0, -dy), Hp - max(0, dy)
            x0, x1 = max(0, -dx), Wp - max(0, dx)
            patch_ref[:, y0:y1, x0:x1, c0:c0 + C] = (
                inp[:, y0 + dy:y1 + dy, x0 + dx:x1 + dx, :])
            k += 1
    patches = patch_ref[:, :, :, :9 * C].reshape(N * Hp * Wp, 9 * C)
    out = jnp.dot(patches, w, preferred_element_type=jnp.float32)
    return out.reshape(N, Hp, Wp, Cout)


def _ibn_relu(y, gamma, beta, half):
    """IBN (IN on channels [:half], BN on the rest) + affine + ReLU.

    Single statistics pass (sum & sum-of-squares); IN/BN select done on the
    tiny per-channel stats; gamma/beta folded into one scale/shift pass.
    """
    N, Hp, Wp, C = y.shape
    hw = Hp * Wp
    s1 = jnp.sum(jnp.sum(y, axis=2, keepdims=True), axis=1, keepdims=True)      # (N,1,1,C)
    s2 = jnp.sum(jnp.sum(y * y, axis=2, keepdims=True), axis=1, keepdims=True)  # (N,1,1,C)
    inv_hw = 1.0 / hw
    mu_in = s1 * inv_hw
    var_in = s2 * inv_hw - mu_in * mu_in
    inv_nhw = 1.0 / (N * hw)
    mu_bn = jnp.sum(s1, axis=0, keepdims=True) * inv_nhw                        # (1,1,1,C)
    var_bn = jnp.sum(s2, axis=0, keepdims=True) * inv_nhw - mu_bn * mu_bn
    ch = lax.broadcasted_iota(jnp.int32, (1, 1, 1, C), 3)
    is_in = ch < half
    mu = jnp.where(is_in, mu_in, mu_bn)                                         # (N,1,1,C)
    rinv = jnp.where(is_in, lax.rsqrt(var_in + EPS), lax.rsqrt(var_bn + EPS))
    scale = gamma * rinv
    shift = beta - mu * scale
    return jnp.maximum(y * scale + shift, 0.0)


def downblock_kernel(x_ref, w1_ref, g1_ref, be1_ref, w2_ref, g2_ref, be2_ref,
                     o_ref, patch_ref):
    N, Hp, Wp, Cout = o_ref.shape
    Cin = x_ref.shape[-1] // 2
    half = Cout // 2

    # --- MaxPool2d(2), in-kernel -------------------------------------------
    # x_ref is (N*Hp, 2, Wp, 2*Cin): the 2x2 window is pre-paired by a FREE
    # reshape in the wrapper (no data movement).
    x = x_ref[...]
    r = jnp.maximum(x[:, 0], x[:, 1])                   # pool the H pair
    pooled = jnp.maximum(r[..., :Cin], r[..., Cin:])    # pool the W pair
    pooled = pooled.reshape(N, Hp, Wp, Cin)

    # --- Conv1 + IBN + ReLU --------------------------------------------------
    y = _conv3x3_im2col(patch_ref, pooled, w1_ref[...])
    y = _ibn_relu(y, g1_ref[...], be1_ref[...], half)

    # --- Conv2 + IBN + ReLU (same scratch, reused) ---------------------------
    y = _conv3x3_im2col(patch_ref, y, w2_ref[...])
    y = _ibn_relu(y, g2_ref[...], be2_ref[...], half)

    o_ref[...] = y.astype(o_ref.dtype)


def down_block(x_nchw, params):
    # b1 / b2 are intentionally NOT passed to the kernel: a per-channel conv
    # bias is exactly cancelled by the IN/BN mean subtraction that follows.
    w1, b1, g1, be1, w2, b2, g2, be2 = params
    del b1, b2
    N, Cin, H, W = x_nchw.shape
    Hp, Wp = H // 2, W // 2
    Cout = w1.shape[-1]
    Cmax = max(Cin, Cout)

    # NCHW -> NHWC (layout glue), then a free dim-split reshape pairing the
    # 2x2 pooling window: (N, H, W, C) -> (N*Hp, 2, Wp, 2*C).
    x = jnp.transpose(x_nchw, (0, 2, 3, 1)).reshape(N * Hp, 2, Wp, 2 * Cin)

    # HWIO conv weights flattened for the im2col matmul: (3,3,Ci,Co)->(9*Ci,Co)
    w1f = w1.reshape(9 * Cin, Cout)
    w2f = w2.reshape(9 * Cout, Cout)

    in_specs = [pl.BlockSpec(memory_space=pltpu.MemorySpace.VMEM)
                for _ in range(7)]
    y = pl.pallas_call(
        downblock_kernel,
        out_shape=jax.ShapeDtypeStruct((N, Hp, Wp, Cout), jnp.float32),
        in_specs=in_specs,
        out_specs=pl.BlockSpec(memory_space=pltpu.MemorySpace.VMEM),
        scratch_shapes=[
            # single im2col scratch, reused by both convs
            pltpu.VMEM((N, Hp, Wp, 9 * Cmax), jnp.float32),
        ],
        compiler_params=pltpu.CompilerParams(
            vmem_limit_bytes=32 * 1024 * 1024),
    )(x,
      w1f, g1.reshape(1, 1, 1, Cout), be1.reshape(1, 1, 1, Cout),
      w2f, g2.reshape(1, 1, 1, Cout), be2.reshape(1, 1, 1, Cout))

    return jnp.transpose(y, (0, 3, 1, 2))                  # back to NCHW


def reference(x_nchw, params):
    """Pure-JAX reference of the PyTorch forward (WITH conv bias)."""
    w1, b1, g1, be1, w2, b2, g2, be2 = params
    x = jnp.transpose(x_nchw, (0, 2, 3, 1))
    x = lax.reduce_window(x, -jnp.inf, lax.max, (1, 2, 2, 1), (1, 2, 2, 1),
                          'VALID')

    def block(x, w, b, g, be):
        y = lax.conv_general_dilated(x, w, (1, 1), 'SAME',
                                     dimension_numbers=('NHWC', 'HWIO', 'NHWC'))
        y = y + b.reshape(1, 1, 1, -1)
        half = y.shape[-1] // 2
        yin, ybn = y[..., :half], y[..., half:]
        mu = yin.mean(axis=(1, 2), keepdims=True)
        var = ((yin - mu) ** 2).mean(axis=(1, 2), keepdims=True)
        yin = (yin - mu) / jnp.sqrt(var + EPS)
        mu = ybn.mean(axis=(0, 1, 2), keepdims=True)
        var = ((ybn - mu) ** 2).mean(axis=(0, 1, 2), keepdims=True)
        ybn = (ybn - mu) / jnp.sqrt(var + EPS)
        y = jnp.concatenate([yin, ybn], axis=-1)
        y = y * g.reshape(1, 1, 1, -1) + be.reshape(1, 1, 1, -1)
        return jnp.maximum(y, 0.0)

    y = block(x, w1, b1, g1, be1)
    y = block(y, w2, b2, g2, be2)
    return jnp.transpose(y, (0, 3, 1, 2))


if __name__ == "__main__":
    key = jax.random.PRNGKey(0)
    N, Cin, H, W = 2, 4, 16, 16
    Cout = 8
    ks = jax.random.split(key, 9)

    x = jax.random.normal(ks[0], (N, Cin, H, W), jnp.float32)
    # Conv weights in HWIO layout (torch OIHW weight[o,i,ky,kx] == w[ky,kx,i,o]).
    w1 = 0.2 * jax.random.normal(ks[1], (3, 3, Cin, Cout), jnp.float32)
    b1 = 0.1 * jax.random.normal(ks[2], (Cout,), jnp.float32)
    g1 = 1.0 + 0.1 * jax.random.normal(ks[3], (Cout,), jnp.float32)
    be1 = 0.1 * jax.random.normal(ks[4], (Cout,), jnp.float32)
    w2 = 0.2 * jax.random.normal(ks[5], (3, 3, Cout, Cout), jnp.float32)
    b2 = 0.1 * jax.random.normal(ks[6], (Cout,), jnp.float32)
    g2 = 1.0 + 0.1 * jax.random.normal(ks[7], (Cout,), jnp.float32)
    be2 = 0.1 * jax.random.normal(ks[8], (Cout,), jnp.float32)
    params = (w1, b1, g1, be1, w2, b2, g2, be2)

    out = jax.block_until_ready(jax.jit(down_block)(x, params))
    assert out.shape == (N, Cout, H // 2, W // 2), out.shape

    ref = jax.block_until_ready(reference(x, params))
    np.testing.assert_allclose(np.asarray(out), np.asarray(ref),
                               rtol=1e-4, atol=1e-4)
    print("KERNEL_OK")
</pallas_src>

<mosaic_0001>
module attributes {stable_mosaic.version = 11 : i64} {
  func.func @downblock_kernel(%arg0: memref<16x2x8x8xf32, #tpu.memory_space<vmem>>, %arg1: memref<36x8xf32, #tpu.memory_space<vmem>>, %arg2: memref<1x1x1x8xf32, #tpu.memory_space<vmem>>, %arg3: memref<1x1x1x8xf32, #tpu.memory_space<vmem>>, %arg4: memref<72x8xf32, #tpu.memory_space<vmem>>, %arg5: memref<1x1x1x8xf32, #tpu.memory_space<vmem>>, %arg6: memref<1x1x1x8xf32, #tpu.memory_space<vmem>>, %arg7: memref<2x8x8x8xf32, #tpu.memory_space<vmem>>, %arg8: memref<2x8x8x72xf32, #tpu.memory_space<vmem>>) attributes {dimension_semantics = [], scalar_prefetch = 0 : i64, scratch_operands = 1 : i64, tpu.core_type = #tpu.core_type<tc>} {
    %c0 = arith.constant 0 : index
    %c0_0 = arith.constant 0 : index
    %c0_1 = arith.constant 0 : index
    %c0_2 = arith.constant 0 : index
    %0 = vector.load %arg0[%c0, %c0_0, %c0_1, %c0_2] : memref<16x2x8x8xf32, #tpu.memory_space<vmem>>, vector<16x2x8x8xf32>
    %1 = vector.extract_strided_slice %0 {offsets = [0, 0, 0, 0], sizes = [16, 1, 8, 8], strides = [1, 1, 1, 1]} : vector<16x2x8x8xf32> to vector<16x1x8x8xf32>
    %2 = vector.shape_cast %1 : vector<16x1x8x8xf32> to vector<16x8x8xf32>
    %3 = vector.extract_strided_slice %0 {offsets = [0, 1, 0, 0], sizes = [16, 1, 8, 8], strides = [1, 1, 1, 1]} : vector<16x2x8x8xf32> to vector<16x1x8x8xf32>
    %4 = vector.shape_cast %3 : vector<16x1x8x8xf32> to vector<16x8x8xf32>
    %5 = arith.maximumf %2, %4 : vector<16x8x8xf32>
    %6 = vector.extract_strided_slice %5 {offsets = [0, 0, 0], sizes = [16, 8, 4], strides = [1, 1, 1]} : vector<16x8x8xf32> to vector<16x8x4xf32>
    %7 = vector.extract_strided_slice %5 {offsets = [0, 0, 4], sizes = [16, 8, 4], strides = [1, 1, 1]} : vector<16x8x8xf32> to vector<16x8x4xf32>
    %8 = arith.maximumf %6, %7 : vector<16x8x4xf32>
    %9 = vector.shape_cast %8 : vector<16x8x4xf32> to vector<2x8x8x4xf32>
    %c0_3 = arith.constant 0 : index
    %c0_4 = arith.constant 0 : index
    %10 = vector.load %arg1[%c0_3, %c0_4] : memref<36x8xf32, #tpu.memory_space<vmem>>, vector<36x8xf32>
    %cst = arith.constant 0.000000e+00 : f32
    %11 = vector.broadcast %cst : f32 to vector<2x1x8x4xf32>
    %c0_5 = arith.constant 0 : index
    %c0_6 = arith.constant 0 : index
    %c0_7 = arith.constant 0 : index
    %c0_8 = arith.constant 0 : index
    %12 = vector.load %arg8[%c0_5, %c0_6, %c0_7, %c0_8] : memref<2x8x8x72xf32, #tpu.memory_space<vmem>>, vector<2x1x8x4xf32>
    tpu.vector_store %arg8[%c0_5, %c0_6, %c0_7, %c0_8], %11 {strides = array<i32>} : memref<2x8x8x72xf32, #tpu.memory_space<vmem>>, vector<2x1x8x4xf32>,
    %cst_9 = arith.constant 0.000000e+00 : f32
    %13 = vector.broadcast %cst_9 : f32 to vector<2x8x1x4xf32>
    %c0_10 = arith.constant 0 : index
    %c0_11 = arith.constant 0 : index
    %c0_12 = arith.constant 0 : index
    %c0_13 = arith.constant 0 : index
    %14 = vector.load %arg8[%c0_10, %c0_11, %c0_12, %c0_13] : memref<2x8x8x72xf32, #tpu.memory_space<vmem>>, vector<2x8x1x4xf32>
    tpu.vector_store %arg8[%c0_10, %c0_11, %c0_12, %c0_13], %13 {strides = array<i32>} : memref<2x8x8x72xf32, #tpu.memory_space<vmem>>, vector<2x8x1x4xf32>,
    %15 = vector.extract_strided_slice %9 {offsets = [0, 0, 0, 0], sizes = [2, 7, 7, 4], strides = [1, 1, 1, 1]} : vector<2x8x8x4xf32> to vector<2x7x7x4xf32>
    %c0_14 = arith.constant 0 : index
    %c1 = arith.constant 1 : index
    %c1_15 = arith.constant 1 : index
    %c0_16 = arith.constant 0 : index
    %16 = vector.load %arg8[%c0_14, %c1, %c1_15, %c0_16] : memref<2x8x8x72xf32, #tpu.memory_space<vmem>>, vector<2x7x7x4xf32>
    tpu.vector_store %arg8[%c0_14, %c1, %c1_15, %c0_16], %15 {strides = array<i32>} : memref<2x8x8x72xf32, #tpu.memory_space<vmem>>, vector<2x7x7x4xf32>,
    %cst_17 = arith.constant 0.000000e+00 : f32
    %17 = vector.broadcast %cst_17 : f32 to vector<2x1x8x4xf32>
    %c0_18 = arith.constant 0 : index
    %c0_19 = arith.constant 0 : index
    %c0_20 = arith.constant 0 : index
    %c4 = arith.constant 4 : index
    %18 = vector.load %arg8[%c0_18, %c0_19, %c0_20, %c4] : memref<2x8x8x72xf32, #tpu.memory_space<vmem>>, vector<2x1x8x4xf32>
    tpu.vector_store %arg8[%c0_18, %c0_19, %c0_20, %c4], %17 {strides = array<i32>} : memref<2x8x8x72xf32, #tpu.memory_space<vmem>>, vector<2x1x8x4xf32>,
    %19 = vector.extract_strided_slice %9 {offsets = [0, 0, 0, 0], sizes = [2, 7, 8, 4], strides = [1, 1, 1, 1]} : vector<2x8x8x4xf32> to vector<2x7x8x4xf32>
    %c0_21 = arith.constant 0 : index
    %c1_22 = arith.constant 1 : index
    %c0_23 = arith.constant 0 : index
    %c4_24 = arith.constant 4 : index
    %20 = vector.load %arg8[%c0_21, %c1_22, %c0_23, %c4_24] : memref<2x8x8x72xf32, #tpu.memory_space<vmem>>, vector<2x7x8x4xf32>
    tpu.vector_store %arg8[%c0_21, %c1_22, %c0_23, %c4_24], %19 {strides = array<i32>} : memref<2x8x8x72xf32, #tpu.memory_space<vmem>>, vector<2x7x8x4xf32>,
    %cst_25 = arith.constant 0.000000e+00 : f32
    %21 = vector.broadcast %cst_25 : f32 to vector<2x1x8x4xf32>
    %c0_26 = arith.constant 0 : index
    %c0_27 = arith.constant 0 : index
    %c0_28 = arith.constant 0 : index
    %c8 = arith.constant 8 : index
    %22 = vector.load %arg8[%c0_26, %c0_27, %c0_28, %c8] : memref<2x8x8x72xf32, #tpu.memory_space<vmem>>, vector<2x1x8x4xf32>
    tpu.vector_store %arg8[%c0_26, %c0_27, %c0_28, %c8], %21 {strides = array<i32>} : memref<2x8x8x72xf32, #tpu.memory_space<vmem>>, vector<2x1x8x4xf32>,
    %cst_29 = arith.constant 0.000000e+00 : f32
    %23 = vector.broadcast %cst_29 : f32 to vector<2x8x1x4xf32>
    %c0_30 = arith.constant 0 : index
    %c0_31 = arith.constant 0 : index
    %c7 = arith.constant 7 : index
    %c8_32 = arith.constant 8 : index
    %24 = vector.load %arg8[%c0_30, %c0_31, %c7, %c8_32] : memref<2x8x8x72xf32, #tpu.memory_space<vmem>>, vector<2x8x1x4xf32>
    tpu.vector_store %arg8[%c0_30, %c0_31, %c7, %c8_32], %23 {strides = array<i32>} : memref<2x8x8x72xf32, #tpu.memory_space<vmem>>, vector<2x8x1x4xf32>,
    %25 = vector.extract_strided_slice %9 {offsets = [0, 0, 1, 0], sizes = [2, 7, 7, 4], strides = [1, 1, 1, 1]} : vector<2x8x8x4xf32> to vector<2x7x7x4xf32>
    %c0_33 = arith.constant 0 : index
    %c1_34 = arith.constant 1 : index
    %c0_35 = arith.constant 0 : index
    %c8_36 = arith.constant 8 : index
    %26 = vector.load %arg8[%c0_33, %c1_34, %c0_35, %c8_36] : memref<2x8x8x72xf32, #tpu.memory_space<vmem>>, vector<2x7x7x4xf32>
    tpu.vector_store %arg8[%c0_33, %c1_34, %c0_35, %c8_36], %25 {strides = array<i32>} : memref<2x8x8x72xf32, #tpu.memory_space<vmem>>, vector<2x7x7x4xf32>,
    %cst_37 = arith.constant 0.000000e+00 : f32
    %27 = vector.broadcast %cst_37 : f32 to vector<2x8x1x4xf32>
    %c0_38 = arith.constant 0 : index
    %c0_39 = arith.constant 0 : index
    %c0_40 = arith.constant 0 : index
    %c12 = arith.constant 12 : index
    %28 = vector.load %arg8[%c0_38, %c0_39, %c0_40, %c12] : memref<2x8x8x72xf32, #tpu.memory_space<vmem>>, vector<2x8x1x4xf32>
    tpu.vector_store %arg8[%c0_38, %c0_39, %c0_40, %c12], %27 {strides = array<i32>} : memref<2x8x8x72xf32, #tpu.memory_space<vmem>>, vector<2x8x1x4xf32>,
    %29 = vector.extract_strided_slice %9 {offsets = [0, 0, 0, 0], sizes = [2, 8, 7, 4], strides = [1, 1, 1, 1]} : vector<2x8x8x4xf32> to vector<2x8x7x4xf32>
    %c0_41 = arith.constant 0 : index
    %c0_42 = arith.constant 0 : index
    %c1_43 = arith.constant 1 : index
    %c12_44 = arith.constant 12 : index
    %30 = vector.load %arg8[%c0_41, %c0_42, %c1_43, %c12_44] : memref<2x8x8x72xf32, #tpu.memory_space<vmem>>, vector<2x8x7x4xf32>
    tpu.vector_store %arg8[%c0_41, %c0_42, %c1_43, %c12_44], %29 {strides = array<i32>} : memref<2x8x8x72xf32, #tpu.memory_space<vmem>>, vector<2x8x7x4xf32>,
    %c0_45 = arith.constant 0 : index
    %c0_46 = arith.constant 0 : index
    %c0_47 = arith.constant 0 : index
    %c16 = arith.constant 16 : index
    %31 = vector.load %arg8[%c0_45, %c0_46, %c0_47, %c16] : memref<2x8x8x72xf32, #tpu.memory_space<vmem>>, vector<2x8x8x4xf32>
    tpu.vector_store %arg8[%c0_45, %c0_46, %c0_47, %c16], %9 {strides = array<i32>} : memref<2x8x8x72xf32, #tpu.memory_space<vmem>>, vector<2x8x8x4xf32>,
    %cst_48 = arith.constant 0.000000e+00 : f32
    %32 = vector.broadcast %cst_48 : f32 to vector<2x8x1x4xf32>
    %c0_49 = arith.constant 0 : index
    %c0_50 = arith.constant 0 : index
    %c7_51 = arith.constant 7 : index
    %c20 = arith.constant 20 : index
    %33 = vector.load %arg8[%c0_49, %c0_50, %c7_51, %c20] : memref<2x8x8x72xf32, #tpu.memory_space<vmem>>, vector<2x8x1x4xf32>
    tpu.vector_store %arg8[%c0_49, %c0_50, %c7_51, %c20], %32 {strides = array<i32>} : memref<2x8x8x72xf32, #tpu.memory_space<vmem>>, vector<2x8x1x4xf32>,
    %34 = vector.extract_strided_slice %9 {offsets = [0, 0, 1, 0], sizes = [2, 8, 7, 4], strides = [1, 1, 1, 1]} : vector<2x8x8x4xf32> to vector<2x8x7x4xf32>
    %c0_52 = arith.constant 0 : index
    %c0_53 = arith.constant 0 : index
    %c0_54 = arith.constant 0 : index
    %c20_55 = arith.constant 20 : index
    %35 = vector.load %arg8[%c0_52, %c0_53, %c0_54, %c20_55] : memref<2x8x8x72xf32, #tpu.memory_space<vmem>>, vector<2x8x7x4xf32>
    tpu.vector_store %arg8[%c0_52, %c0_53, %c0_54, %c20_55], %34 {strides = array<i32>} : memref<2x8x8x72xf32, #tpu.memory_space<vmem>>, vector<2x8x7x4xf32>,
    %cst_56 = arith.constant 0.000000e+00 : f32
    %36 = vector.broadcast %cst_56 : f32 to vector<2x1x8x4xf32>
    %c0_57 = arith.constant 0 : index
    %c7_58 = arith.constant 7 : index
    %c0_59 = arith.constant 0 : index
    %c24 = arith.constant 24 : index
    %37 = vector.load %arg8[%c0_57, %c7_58, %c0_59, %c24] : memref<2x8x8x72xf32, #tpu.memory_space<vmem>>, vector<2x1x8x4xf32>
    tpu.vector_store %arg8[%c0_57, %c7_58, %c0_59, %c24], %36 {strides = array<i32>} : memref<2x8x8x72xf32, #tpu.memory_space<vmem>>, vector<2x1x8x4xf32>,
    %cst_60 = arith.constant 0.000000e+00 : f32
    %38 = vector.broadcast %cst_60 : f32 to vector<2x8x1x4xf32>
    %c0_61 = arith.constant 0 : index
    %c0_62 = arith.constant 0 : index
    %c0_63 = arith.constant 0 : index
    %c24_64 = arith.constant 24 : index
    %39 = vector.load %arg8[%c0_61, %c0_62, %c0_63, %c24_64] : memref<2x8x8x72xf32, #tpu.memory_space<vmem>>, vector<2x8x1x4xf32>
    tpu.vector_store %arg8[%c0_61, %c0_62, %c0_63, %c24_64], %38 {strides = array<i32>} : memref<2x8x8x72xf32, #tpu.memory_space<vmem>>, vector<2x8x1x4xf32>,
    %40 = vector.extract_strided_slice %9 {offsets = [0, 1, 0, 0], sizes = [2, 7, 7, 4], strides = [1, 1, 1, 1]} : vector<2x8x8x4xf32> to vector<2x7x7x4xf32>
    %c0_65 = arith.constant 0 : index
    %c0_66 = arith.constant 0 : index
    %c1_67 = arith.constant 1 : index
    %c24_68 = arith.constant 24 : index
    %41 = vector.load %arg8[%c0_65, %c0_66, %c1_67, %c24_68] : memref<2x8x8x72xf32, #tpu.memory_space<vmem>>, vector<2x7x7x4xf32>
    tpu.vector_store %arg8[%c0_65, %c0_66, %c1_67, %c24_68], %40 {strides = array<i32>} : memref<2x8x8x72xf32, #tpu.memory_space<vmem>>, vector<2x7x7x4xf32>,
    %cst_69 = arith.constant 0.000000e+00 : f32
    %42 = vector.broadcast %cst_69 : f32 to vector<2x1x8x4xf32>
    %c0_70 = arith.constant 0 : index
    %c7_71 = arith.constant 7 : index
    %c0_72 = arith.constant 0 : index
    %c28 = arith.constant 28 : index
    %43 = vector.load %arg8[%c0_70, %c7_71, %c0_72, %c28] : memref<2x8x8x72xf32, #tpu.memory_space<vmem>>, vector<2x1x8x4xf32>
    tpu.vector_store %arg8[%c0_70, %c7_71, %c0_72, %c28], %42 {strides = array<i32>} : memref<2x8x8x72xf32, #tpu.memory_space<vmem>>, vector<2x1x8x4xf32>,
    %44 = vector.extract_strided_slice %9 {offsets = [0, 1, 0, 0], sizes = [2, 7, 8, 4], strides = [1, 1, 1, 1]} : vector<2x8x8x4xf32> to vector<2x7x8x4xf32>
    %c0_73 = arith.constant 0 : index
    %c0_74 = arith.constant 0 : index
    %c0_75 = arith.constant 0 : index
    %c28_76 = arith.constant 28 : index
    %45 = vector.load %arg8[%c0_73, %c0_74, %c0_75, %c28_76] : memref<2x8x8x72xf32, #tpu.memory_space<vmem>>, vector<2x7x8x4xf32>
    tpu.vector_store %arg8[%c0_73, %c0_74, %c0_75, %c28_76], %44 {strides = array<i32>} : memref<2x8x8x72xf32, #tpu.memory_space<vmem>>, vector<2x7x8x4xf32>,
    %cst_77 = arith.constant 0.000000e+00 : f32
    %46 = vector.broadcast %cst_77 : f32 to vector<2x1x8x4xf32>
    %c0_78 = arith.constant 0 : index
    %c7_79 = arith.constant 7 : index
    %c0_80 = arith.constant 0 : index
    %c32 = arith.constant 32 : index
    %47 = vector.load %arg8[%c0_78, %c7_79, %c0_80, %c32] : memref<2x8x8x72xf32, #tpu.memory_space<vmem>>, vector<2x1x8x4xf32>
    tpu.vector_store %arg8[%c0_78, %c7_79, %c0_80, %c32], %46 {strides = array<i32>} : memref<2x8x8x72xf32, #tpu.memory_space<vmem>>, vector<2x1x8x4xf32>,
    %cst_81 = arith.constant 0.000000e+00 : f32
    %48 = vector.broadcast %cst_81 : f32 to vector<2x8x1x4xf32>
    %c0_82 = arith.constant 0 : index
    %c0_83 = arith.constant 0 : index
    %c7_84 = arith.constant 7 : index
    %c32_85 = arith.constant 32 : index
    %49 = vector.load %arg8[%c0_82, %c0_83, %c7_84, %c32_85] : memref<2x8x8x72xf32, #tpu.memory_space<vmem>>, vector<2x8x1x4xf32>
    tpu.vector_store %arg8[%c0_82, %c0_83, %c7_84, %c32_85], %48 {strides = array<i32>} : memref<2x8x8x72xf32, #tpu.memory_space<vmem>>, vector<2x8x1x4xf32>,
    %50 = vector.extract_strided_slice %9 {offsets = [0, 1, 1, 0], sizes = [2, 7, 7, 4], strides = [1, 1, 1, 1]} : vector<2x8x8x4xf32> to vector<2x7x7x4xf32>
    %c0_86 = arith.constant 0 : index
    %c0_87 = arith.constant 0 : index
    %c0_88 = arith.constant 0 : index
    %c32_89 = arith.constant 32 : index
    %51 = vector.load %arg8[%c0_86, %c0_87, %c0_88, %c32_89] : memref<2x8x8x72xf32, #tpu.memory_space<vmem>>, vector<2x7x7x4xf32>
    tpu.vector_store %arg8[%c0_86, %c0_87, %c0_88, %c32_89], %50 {strides = array<i32>} : memref<2x8x8x72xf32, #tpu.memory_space<vmem>>, vector<2x7x7x4xf32>,
    %c0_90 = arith.constant 0 : index
    %c0_91 = arith.constant 0 : index
    %c0_92 = arith.constant 0 : index
    %c0_93 = arith.constant 0 : index
    %52 = vector.load %arg8[%c0_90, %c0_91, %c0_92, %c0_93] : memref<2x8x8x72xf32, #tpu.memory_space<vmem>>, vector<2x8x8x36xf32>
    %53 = vector.shape_cast %52 : vector<2x8x8x36xf32> to vector<128x36xf32>
    %cst_94 = arith.constant dense<0.000000e+00> : vector<128x8xf32>
    %54 = tpu.matmul %53, %10, %cst_94 {dimension_numbers = #tpu.dot_dimension_numbers<[1], [0], [0], [1], [0, 0, 1, 1], [], []>} : vector<128x36xf32>, vector<36x8xf32>, vector<128x8xf32> -> vector<128x8xf32>
    %55 = vector.shape_cast %54 : vector<128x8xf32> to vector<2x8x8x8xf32>
    %c0_95 = arith.constant 0 : index
    %c0_96 = arith.constant 0 : index
    %c0_97 = arith.constant 0 : index
    %c0_98 = arith.constant 0 : index
    %56 = vector.load %arg2[%c0_95, %c0_96, %c0_97, %c0_98] : memref<1x1x1x8xf32, #tpu.memory_space<vmem>>, vector<1x1x1x8xf32>
    %c0_99 = arith.constant 0 : index
    %c0_100 = arith.constant 0 : index
    %c0_101 = arith.constant 0 : index
    %c0_102 = arith.constant 0 : index
    %57 = vector.load %arg3[%c0_99, %c0_100, %c0_101, %c0_102] : memref<1x1x1x8xf32, #tpu.memory_space<vmem>>, vector<1x1x1x8xf32>
    %cst_103 = arith.constant dense<0.000000e+00> : vector<2x8x8xf32>
    %58 = vector.multi_reduction <add>, %55, %cst_103 [2] : vector<2x8x8x8xf32> to vector<2x8x8xf32>
    %59 = vector.shape_cast %58 : vector<2x8x8xf32> to vector<2x8x1x8xf32>
    %cst_104 = arith.constant dense<0.000000e+00> : vector<2x1x8xf32>
    %60 = vector.multi_reduction <add>, %59, %cst_104 [1] : vector<2x8x1x8xf32> to vector<2x1x8xf32>
    %61 = vector.shape_cast %60 : vector<2x1x8xf32> to vector<2x1x1x8xf32>
    %62 = arith.mulf %55, %55 : vector<2x8x8x8xf32>
    %cst_105 = arith.constant dense<0.000000e+00> : vector<2x8x8xf32>
    %63 = vector.multi_reduction <add>, %62, %cst_105 [2] : vector<2x8x8x8xf32> to vector<2x8x8xf32>
    %64 = vector.shape_cast %63 : vector<2x8x8xf32> to vector<2x8x1x8xf32>
    %cst_106 = arith.constant dense<0.000000e+00> : vector<2x1x8xf32>
    %65 = vector.multi_reduction <add>, %64, %cst_106 [1] : vector<2x8x1x8xf32> to vector<2x1x8xf32>
    %66 = vector.shape_cast %65 : vector<2x1x8xf32> to vector<2x1x1x8xf32>
    %cst_107 = arith.constant 1.562500e-02 : f32
    %67 = vector.broadcast %cst_107 : f32 to vector<2x1x1x8xf32>
    %68 = arith.mulf %61, %67 : vector<2x1x1x8xf32>
    %cst_108 = arith.constant 1.562500e-02 : f32
    %69 = vector.broadcast %cst_108 : f32 to vector<2x1x1x8xf32>
    %70 = arith.mulf %66, %69 : vector<2x1x1x8xf32>
    %71 = arith.mulf %68, %68 : vector<2x1x1x8xf32>
    %72 = arith.subf %70, %71 : vector<2x1x1x8xf32>
    %cst_109 = arith.constant dense<0.000000e+00> : vector<1x1x8xf32>
    %73 = vector.multi_reduction <add>, %61, %cst_109 [0] : vector<2x1x1x8xf32> to vector<1x1x8xf32>
    %74 = vector.shape_cast %73 : vector<1x1x8xf32> to vector<1x1x1x8xf32>
    %cst_110 = arith.constant 7.812500e-03 : f32
    %75 = vector.broadcast %cst_110 : f32 to vector<1x1x1x8xf32>
    %76 = arith.mulf %74, %75 : vector<1x1x1x8xf32>
    %cst_111 = arith.constant dense<0.000000e+00> : vector<1x1x8xf32>
    %77 = vector.multi_reduction <add>, %66, %cst_111 [0] : vector<2x1x1x8xf32> to vector<1x1x8xf32>
    %78 = vector.shape_cast %77 : vector<1x1x8xf32> to vector<1x1x1x8xf32>
    %cst_112 = arith.constant 7.812500e-03 : f32
    %79 = vector.broadcast %cst_112 : f32 to vector<1x1x1x8xf32>
    %80 = arith.mulf %78, %79 : vector<1x1x1x8xf32>
    %81 = arith.mulf %76, %76 : vector<1x1x1x8xf32>
    %82 = arith.subf %80, %81 : vector<1x1x1x8xf32>
    %83 = tpu.iota {dimensions = array<i32: 3>} : vector<1x1x1x8xi32>
    %c4_i32 = arith.constant 4 : i32
    %84 = vector.broadcast %c4_i32 : i32 to vector<1x1x1x8xi32>
    %85 = arith.cmpi slt, %83, %84 : vector<1x1x1x8xi32>
    %86 = vector.shape_cast %85 : vector<1x1x1x8xi1> to vector<1x1x1x8xi1>
    %87 = vector.broadcast %86 : vector<1x1x1x8xi1> to vector<2x1x1x8xi1>
    %88 = vector.shape_cast %76 : vector<1x1x1x8xf32> to vector<1x1x1x8xf32>
    %89 = vector.broadcast %88 : vector<1x1x1x8xf32> to vector<2x1x1x8xf32>
    %90 = arith.select %87, %68, %89 : vector<2x1x1x8xi1>, vector<2x1x1x8xf32>
    %cst_113 = arith.constant 9.99999974E-6 : f32
    %91 = vector.broadcast %cst_113 : f32 to vector<2x1x1x8xf32>
    %92 = arith.addf %72, %91 : vector<2x1x1x8xf32>
    %93 = math.rsqrt %92 : vector<2x1x1x8xf32>
    %cst_114 = arith.constant 9.99999974E-6 : f32
    %94 = vector.broadcast %cst_114 : f32 to vector<1x1x1x8xf32>
    %95 = arith.addf %82, %94 : vector<1x1x1x8xf32>
    %96 = math.rsqrt %95 : vector<1x1x1x8xf32>
    %97 = vector.shape_cast %85 : vector<1x1x1x8xi1> to vector<1x1x1x8xi1>
    %98 = vector.broadcast %97 : vector<1x1x1x8xi1> to vector<2x1x1x8xi1>
    %99 = vector.shape_cast %96 : vector<1x1x1x8xf32> to vector<1x1x1x8xf32>
    %100 = vector.broadcast %99 : vector<1x1x1x8xf32> to vector<2x1x1x8xf32>
    %101 = arith.select %98, %93, %100 : vector<2x1x1x8xi1>, vector<2x1x1x8xf32>
    %102 = vector.broadcast %56 : vector<1x1x1x8xf32> to vector<2x1x1x8xf32>
    %103 = arith.mulf %102, %101 : vector<2x1x1x8xf32>
    %104 = arith.mulf %90, %103 : vector<2x1x1x8xf32>
    %105 = vector.broadcast %57 : vector<1x1x1x8xf32> to vector<2x1x1x8xf32>
    %106 = arith.subf %105, %104 : vector<2x1x1x8xf32>
    %107 = vector.broadcast %103 : vector<2x1x1x8xf32> to vector<2x8x8x8xf32>
    %108 = arith.mulf %55, %107 : vector<2x8x8x8xf32>
    %109 = vector.broadcast %106 : vector<2x1x1x8xf32> to vector<2x8x8x8xf32>
    %110 = arith.addf %108, %109 : vector<2x8x8x8xf32>
    %cst_115 = arith.constant 0.000000e+00 : f32
    %111 = vector.broadcast %cst_115 : f32 to vector<2x8x8x8xf32>
    %112 = arith.maximumf %110, %111 : vector<2x8x8x8xf32>
    %c0_116 = arith.constant 0 : index
    %c0_117 = arith.constant 0 : index
    %113 = vector.load %arg4[%c0_116, %c0_117] : memref<72x8xf32, #tpu.memory_space<vmem>>, vector<72x8xf32>
    %cst_118 = arith.constant 0.000000e+00 : f32
    %114 = vector.broadcast %cst_118 : f32 to vector<2x1x8x8xf32>
    %c0_119 = arith.constant 0 : index
    %c0_120 = arith.constant 0 : index
    %c0_121 = arith.constant 0 : index
    %c0_122 = arith.constant 0 : index
    %115 = vector.load %arg8[%c0_119, %c0_120, %c0_121, %c0_122] : memref<2x8x8x72xf32, #tpu.memory_space<vmem>>, vector<2x1x8x8xf32>
    tpu.vector_store %arg8[%c0_119, %c0_120, %c0_121, %c0_122], %114 {strides = array<i32>} : memref<2x8x8x72xf32, #tpu.memory_space<vmem>>, vector<2x1x8x8xf32>,
    %cst_123 = arith.constant 0.000000e+00 : f32
    %116 = vector.broadcast %cst_123 : f32 to vector<2x8x1x8xf32>
    %c0_124 = arith.constant 0 : index
    %c0_125 = arith.constant 0 : index
    %c0_126 = arith.constant 0 : index
    %c0_127 = arith.constant 0 : index
    %117 = vector.load %arg8[%c0_124, %c0_125, %c0_126, %c0_127] : memref<2x8x8x72xf32, #tpu.memory_space<vmem>>, vector<2x8x1x8xf32>
    tpu.vector_store %arg8[%c0_124, %c0_125, %c0_126, %c0_127], %116 {strides = array<i32>} : memref<2x8x8x72xf32, #tpu.memory_space<vmem>>, vector<2x8x1x8xf32>,
    %118 = vector.extract_strided_slice %112 {offsets = [0, 0, 0, 0], sizes = [2, 7, 7, 8], strides = [1, 1, 1, 1]} : vector<2x8x8x8xf32> to vector<2x7x7x8xf32>
    %c0_128 = arith.constant 0 : index
    %c1_129 = arith.constant 1 : index
    %c1_130 = arith.constant 1 : index
    %c0_131 = arith.constant 0 : index
    %119 = vector.load %arg8[%c0_128, %c1_129, %c1_130, %c0_131] : memref<2x8x8x72xf32, #tpu.memory_space<vmem>>, vector<2x7x7x8xf32>
    tpu.vector_store %arg8[%c0_128, %c1_129, %c1_130, %c0_131], %118 {strides = array<i32>} : memref<2x8x8x72xf32, #tpu.memory_space<vmem>>, vector<2x7x7x8xf32>,
    %cst_132 = arith.constant 0.000000e+00 : f32
    %120 = vector.broadcast %cst_132 : f32 to vector<2x1x8x8xf32>
    %c0_133 = arith.constant 0 : index
    %c0_134 = arith.constant 0 : index
    %c0_135 = arith.constant 0 : index
    %c8_136 = arith.constant 8 : index
    %121 = vector.load %arg8[%c0_133, %c0_134, %c0_135, %c8_136] : memref<2x8x8x72xf32, #tpu.memory_space<vmem>>, vector<2x1x8x8xf32>
    tpu.vector_store %arg8[%c0_133, %c0_134, %c0_135, %c8_136], %120 {strides = array<i32>} : memref<2x8x8x72xf32, #tpu.memory_space<vmem>>, vector<2x1x8x8xf32>,
    %122 = vector.extract_strided_slice %112 {offsets = [0, 0, 0, 0], sizes = [2, 7, 8, 8], strides = [1, 1, 1, 1]} : vector<2x8x8x8xf32> to vector<2x7x8x8xf32>
    %c0_137 = arith.constant 0 : index
    %c1_138 = arith.constant 1 : index
    %c0_139 = arith.constant 0 : index
    %c8_140 = arith.constant 8 : index
    %123 = vector.load %arg8[%c0_137, %c1_138, %c0_139, %c8_140] : memref<2x8x8x72xf32, #tpu.memory_space<vmem>>, vector<2x7x8x8xf32>
    tpu.vector_store %arg8[%c0_137, %c1_138, %c0_139, %c8_140], %122 {strides = array<i32>} : memref<2x8x8x72xf32, #tpu.memory_space<vmem>>, vector<2x7x8x8xf32>,
    %cst_141 = arith.constant 0.000000e+00 : f32
    %124 = vector.broadcast %cst_141 : f32 to vector<2x1x8x8xf32>
    %c0_142 = arith.constant 0 : index
    %c0_143 = arith.constant 0 : index
    %c0_144 = arith.constant 0 : index
    %c16_145 = arith.constant 16 : index
    %125 = vector.load %arg8[%c0_142, %c0_143, %c0_144, %c16_145] : memref<2x8x8x72xf32, #tpu.memory_space<vmem>>, vector<2x1x8x8xf32>
    tpu.vector_store %arg8[%c0_142, %c0_143, %c0_144, %c16_145], %124 {strides = array<i32>} : memref<2x8x8x72xf32, #tpu.memory_space<vmem>>, vector<2x1x8x8xf32>,
    %cst_146 = arith.constant 0.000000e+00 : f32
    %126 = vector.broadcast %cst_146 : f32 to vector<2x8x1x8xf32>
    %c0_147 = arith.constant 0 : index
    %c0_148 = arith.constant 0 : index
    %c7_149 = arith.constant 7 : index
    %c16_150 = arith.constant 16 : index
    %127 = vector.load %arg8[%c0_147, %c0_148, %c7_149, %c16_150] : memref<2x8x8x72xf32, #tpu.memory_space<vmem>>, vector<2x8x1x8xf32>
    tpu.vector_store %arg8[%c0_147, %c0_148, %c7_149, %c16_150], %126 {strides = array<i32>} : memref<2x8x8x72xf32, #tpu.memory_space<vmem>>, vector<2x8x1x8xf32>,
    %128 = vector.extract_strided_slice %112 {offsets = [0, 0, 1, 0], sizes = [2, 7, 7, 8], strides = [1, 1, 1, 1]} : vector<2x8x8x8xf32> to vector<2x7x7x8xf32>
    %c0_151 = arith.constant 0 : index
    %c1_152 = arith.constant 1 : index
    %c0_153 = arith.constant 0 : index
    %c16_154 = arith.constant 16 : index
    %129 = vector.load %arg8[%c0_151, %c1_152, %c0_153, %c16_154] : memref<2x8x8x72xf32, #tpu.memory_space<vmem>>, vector<2x7x7x8xf32>
    tpu.vector_store %arg8[%c0_151, %c1_152, %c0_153, %c16_154], %128 {strides = array<i32>} : memref<2x8x8x72xf32, #tpu.memory_space<vmem>>, vector<2x7x7x8xf32>,
    %cst_155 = arith.constant 0.000000e+00 : f32
    %130 = vector.broadcast %cst_155 : f32 to vector<2x8x1x8xf32>
    %c0_156 = arith.constant 0 : index
    %c0_157 = arith.constant 0 : index
    %c0_158 = arith.constant 0 : index
    %c24_159 = arith.constant 24 : index
    %131 = vector.load %arg8[%c0_156, %c0_157, %c0_158, %c24_159] : memref<2x8x8x72xf32, #tpu.memory_space<vmem>>, vector<2x8x1x8xf32>
    tpu.vector_store %arg8[%c0_156, %c0_157, %c0_158, %c24_159], %130 {strides = array<i32>} : memref<2x8x8x72xf32, #tpu.memory_space<vmem>>, vector<2x8x1x8xf32>,
    %132 = vector.extract_strided_slice %112 {offsets = [0, 0, 0, 0], sizes = [2, 8, 7, 8], strides = [1, 1, 1, 1]} : vector<2x8x8x8xf32> to vector<2x8x7x8xf32>
    %c0_160 = arith.constant 0 : index
    %c0_161 = arith.constant 0 : index
    %c1_162 = arith.constant 1 : index
    %c24_163 = arith.constant 24 : index
    %133 = vector.load %arg8[%c0_160, %c0_161, %c1_162, %c24_163] : memref<2x8x8x72xf32, #tpu.memory_space<vmem>>, vector<2x8x7x8xf32>
    tpu.vector_store %arg8[%c0_160, %c0_161, %c1_162, %c24_163], %132 {strides = array<i32>} : memref<2x8x8x72xf32, #tpu.memory_space<vmem>>, vector<2x8x7x8xf32>,
    %c0_164 = arith.constant 0 : index
    %c0_165 = arith.constant 0 : index
    %c0_166 = arith.constant 0 : index
    %c32_167 = arith.constant 32 : index
    %134 = vector.load %arg8[%c0_164, %c0_165, %c0_166, %c32_167] : memref<2x8x8x72xf32, #tpu.memory_space<vmem>>, vector<2x8x8x8xf32>
    tpu.vector_store %arg8[%c0_164, %c0_165, %c0_166, %c32_167], %112 {strides = array<i32>} : memref<2x8x8x72xf32, #tpu.memory_space<vmem>>, vector<2x8x8x8xf32>,
    %cst_168 = arith.constant 0.000000e+00 : f32
    %135 = vector.broadcast %cst_168 : f32 to vector<2x8x1x8xf32>
    %c0_169 = arith.constant 0 : index
    %c0_170 = arith.constant 0 : index
    %c7_171 = arith.constant 7 : index
    %c40 = arith.constant 40 : index
    %136 = vector.load %arg8[%c0_169, %c0_170, %c7_171, %c40] : memref<2x8x8x72xf32, #tpu.memory_space<vmem>>, vector<2x8x1x8xf32>
    tpu.vector_store %arg8[%c0_169, %c0_170, %c7_171, %c40], %135 {strides = array<i32>} : memref<2x8x8x72xf32, #tpu.memory_space<vmem>>, vector<2x8x1x8xf32>,
    %137 = vector.extract_strided_slice %112 {offsets = [0, 0, 1, 0], sizes = [2, 8, 7, 8], strides = [1, 1, 1, 1]} : vector<2x8x8x8xf32> to vector<2x8x7x8xf32>
    %c0_172 = arith.constant 0 : index
    %c0_173 = arith.constant 0 : index
    %c0_174 = arith.constant 0 : index
    %c40_175 = arith.constant 40 : index
    %138 = vector.load %arg8[%c0_172, %c0_173, %c0_174, %c40_175] : memref<2x8x8x72xf32, #tpu.memory_space<vmem>>, vector<2x8x7x8xf32>
    tpu.vector_store %arg8[%c0_172, %c0_173, %c0_174, %c40_175], %137 {strides = array<i32>} : memref<2x8x8x72xf32, #tpu.memory_space<vmem>>, vector<2x8x7x8xf32>,
    %cst_176 = arith.constant 0.000000e+00 : f32
    %139 = vector.broadcast %cst_176 : f32 to vector<2x1x8x8xf32>
    %c0_177 = arith.constant 0 : index
    %c7_178 = arith.constant 7 : index
    %c0_179 = arith.constant 0 : index
    %c48 = arith.constant 48 : index
    %140 = vector.load %arg8[%c0_177, %c7_178, %c0_179, %c48] : memref<2x8x8x72xf32, #tpu.memory_space<vmem>>, vector<2x1x8x8xf32>
    tpu.vector_store %arg8[%c0_177, %c7_178, %c0_179, %c48], %139 {strides = array<i32>} : memref<2x8x8x72xf32, #tpu.memory_space<vmem>>, vector<2x1x8x8xf32>,
    %cst_180 = arith.constant 0.000000e+00 : f32
    %141 = vector.broadcast %cst_180 : f32 to vector<2x8x1x8xf32>
    %c0_181 = arith.constant 0 : index
    %c0_182 = arith.constant 0 : index
    %c0_183 = arith.constant 0 : index
    %c48_184 = arith.constant 48 : index
    %142 = vector.load %arg8[%c0_181, %c0_182, %c0_183, %c48_184] : memref<2x8x8x72xf32, #tpu.memory_space<vmem>>, vector<2x8x1x8xf32>
    tpu.vector_store %arg8[%c0_181, %c0_182, %c0_183, %c48_184], %141 {strides = array<i32>} : memref<2x8x8x72xf32, #tpu.memory_space<vmem>>, vector<2x8x1x8xf32>,
    %143 = vector.extract_strided_slice %112 {offsets = [0, 1, 0, 0], sizes = [2, 7, 7, 8], strides = [1, 1, 1, 1]} : vector<2x8x8x8xf32> to vector<2x7x7x8xf32>
    %c0_185 = arith.constant 0 : index
    %c0_186 = arith.constant 0 : index
    %c1_187 = arith.constant 1 : index
    %c48_188 = arith.constant 48 : index
    %144 = vector.load %arg8[%c0_185, %c0_186, %c1_187, %c48_188] : memref<2x8x8x72xf32, #tpu.memory_space<vmem>>, vector<2x7x7x8xf32>
    tpu.vector_store %arg8[%c0_185, %c0_186, %c1_187, %c48_188], %143 {strides = array<i32>} : memref<2x8x8x72xf32, #tpu.memory_space<vmem>>, vector<2x7x7x8xf32>,
    %cst_189 = arith.constant 0.000000e+00 : f32
    %145 = vector.broadcast %cst_189 : f32 to vector<2x1x8x8xf32>
    %c0_190 = arith.constant 0 : index
    %c7_191 = arith.constant 7 : index
    %c0_192 = arith.constant 0 : index
    %c56 = arith.constant 56 : index
    %146 = vector.load %arg8[%c0_190, %c7_191, %c0_192, %c56] : memref<2x8x8x72xf32, #tpu.memory_space<vmem>>, vector<2x1x8x8xf32>
    tpu.vector_store %arg8[%c0_190, %c7_191, %c0_192, %c56], %145 {strides = array<i32>} : memref<2x8x8x72xf32, #tpu.memory_space<vmem>>, vector<2x1x8x8xf32>,
    %147 = vector.extract_strided_slice %112 {offsets = [0, 1, 0, 0], sizes = [2, 7, 8, 8], strides = [1, 1, 1, 1]} : vector<2x8x8x8xf32> to vector<2x7x8x8xf32>
    %c0_193 = arith.constant 0 : index
    %c0_194 = arith.constant 0 : index
    %c0_195 = arith.constant 0 : index
    %c56_196 = arith.constant 56 : index
    %148 = vector.load %arg8[%c0_193, %c0_194, %c0_195, %c56_196] : memref<2x8x8x72xf32, #tpu.memory_space<vmem>>, vector<2x7x8x8xf32>
    tpu.vector_store %arg8[%c0_193, %c0_194, %c0_195, %c56_196], %147 {strides = array<i32>} : memref<2x8x8x72xf32, #tpu.memory_space<vmem>>, vector<2x7x8x8xf32>,
    %cst_197 = arith.constant 0.000000e+00 : f32
    %149 = vector.broadcast %cst_197 : f32 to vector<2x1x8x8xf32>
    %c0_198 = arith.constant 0 : index
    %c7_199 = arith.constant 7 : index
    %c0_200 = arith.constant 0 : index
    %c64 = arith.constant 64 : index
    %150 = vector.load %arg8[%c0_198, %c7_199, %c0_200, %c64] : memref<2x8x8x72xf32, #tpu.memory_space<vmem>>, vector<2x1x8x8xf32>
    tpu.vector_store %arg8[%c0_198, %c7_199, %c0_200, %c64], %149 {strides = array<i32>} : memref<2x8x8x72xf32, #tpu.memory_space<vmem>>, vector<2x1x8x8xf32>,
    %cst_201 = arith.constant 0.000000e+00 : f32
    %151 = vector.broadcast %cst_201 : f32 to vector<2x8x1x8xf32>
    %c0_202 = arith.constant 0 : index
    %c0_203 = arith.constant 0 : index
    %c7_204 = arith.constant 7 : index
    %c64_205 = arith.constant 64 : index
    %152 = vector.load %arg8[%c0_202, %c0_203, %c7_204, %c64_205] : memref<2x8x8x72xf32, #tpu.memory_space<vmem>>, vector<2x8x1x8xf32>
    tpu.vector_store %arg8[%c0_202, %c0_203, %c7_204, %c64_205], %151 {strides = array<i32>} : memref<2x8x8x72xf32, #tpu.memory_space<vmem>>, vector<2x8x1x8xf32>,
    %153 = vector.extract_strided_slice %112 {offsets = [0, 1, 1, 0], sizes = [2, 7, 7, 8], strides = [1, 1, 1, 1]} : vector<2x8x8x8xf32> to vector<2x7x7x8xf32>
    %c0_206 = arith.constant 0 : index
    %c0_207 = arith.constant 0 : index
    %c0_208 = arith.constant 0 : index
    %c64_209 = arith.constant 64 : index
    %154 = vector.load %arg8[%c0_206, %c0_207, %c0_208, %c64_209] : memref<2x8x8x72xf32, #tpu.memory_space<vmem>>, vector<2x7x7x8xf32>
    tpu.vector_store %arg8[%c0_206, %c0_207, %c0_208, %c64_209], %153 {strides = array<i32>} : memref<2x8x8x72xf32, #tpu.memory_space<vmem>>, vector<2x7x7x8xf32>,
    %c0_210 = arith.constant 0 : index
    %c0_211 = arith.constant 0 : index
    %c0_212 = arith.constant 0 : index
    %c0_213 = arith.constant 0 : index
    %155 = vector.load %arg8[%c0_210, %c0_211, %c0_212, %c0_213] : memref<2x8x8x72xf32, #tpu.memory_space<vmem>>, vector<2x8x8x72xf32>
    %156 = vector.shape_cast %155 : vector<2x8x8x72xf32> to vector<128x72xf32>
    %cst_214 = arith.constant dense<0.000000e+00> : vector<128x8xf32>
    %157 = tpu.matmul %156, %113, %cst_214 {dimension_numbers = #tpu.dot_dimension_numbers<[1], [0], [0], [1], [0, 0, 1, 1], [], []>} : vector<128x72xf32>, vector<72x8xf32>, vector<128x8xf32> -> vector<128x8xf32>
    %158 = vector.shape_cast %157 : vector<128x8xf32> to vector<2x8x8x8xf32>
    %c0_215 = arith.constant 0 : index
    %c0_216 = arith.constant 0 : index
    %c0_217 = arith.constant 0 : index
    %c0_218 = arith.constant 0 : index
    %159 = vector.load %arg5[%c0_215, %c0_216, %c0_217, %c0_218] : memref<1x1x1x8xf32, #tpu.memory_space<vmem>>, vector<1x1x1x8xf32>
    %c0_219 = arith.constant 0 : index
    %c0_220 = arith.constant 0 : index
    %c0_221 = arith.constant 0 : index
    %c0_222 = arith.constant 0 : index
    %160 = vector.load %arg6[%c0_219, %c0_220, %c0_221, %c0_222] : memref<1x1x1x8xf32, #tpu.memory_space<vmem>>, vector<1x1x1x8xf32>
    %cst_223 = arith.constant dense<0.000000e+00> : vector<2x8x8xf32>
    %161 = vector.multi_reduction <add>, %158, %cst_223 [2] : vector<2x8x8x8xf32> to vector<2x8x8xf32>
    %162 = vector.shape_cast %161 : vector<2x8x8xf32> to vector<2x8x1x8xf32>
    %cst_224 = arith.constant dense<0.000000e+00> : vector<2x1x8xf32>
    %163 = vector.multi_reduction <add>, %162, %cst_224 [1] : vector<2x8x1x8xf32> to vector<2x1x8xf32>
    %164 = vector.shape_cast %163 : vector<2x1x8xf32> to vector<2x1x1x8xf32>
    %165 = arith.mulf %158, %158 : vector<2x8x8x8xf32>
    %cst_225 = arith.constant dense<0.000000e+00> : vector<2x8x8xf32>
    %166 = vector.multi_reduction <add>, %165, %cst_225 [2] : vector<2x8x8x8xf32> to vector<2x8x8xf32>
    %167 = vector.shape_cast %166 : vector<2x8x8xf32> to vector<2x8x1x8xf32>
    %cst_226 = arith.constant dense<0.000000e+00> : vector<2x1x8xf32>
    %168 = vector.multi_reduction <add>, %167, %cst_226 [1] : vector<2x8x1x8xf32> to vector<2x1x8xf32>
    %169 = vector.shape_cast %168 : vector<2x1x8xf32> to vector<2x1x1x8xf32>
    %cst_227 = arith.constant 1.562500e-02 : f32
    %170 = vector.broadcast %cst_227 : f32 to vector<2x1x1x8xf32>
    %171 = arith.mulf %164, %170 : vector<2x1x1x8xf32>
    %cst_228 = arith.constant 1.562500e-02 : f32
    %172 = vector.broadcast %cst_228 : f32 to vector<2x1x1x8xf32>
    %173 = arith.mulf %169, %172 : vector<2x1x1x8xf32>
    %174 = arith.mulf %171, %171 : vector<2x1x1x8xf32>
    %175 = arith.subf %173, %174 : vector<2x1x1x8xf32>
    %cst_229 = arith.constant dense<0.000000e+00> : vector<1x1x8xf32>
    %176 = vector.multi_reduction <add>, %164, %cst_229 [0] : vector<2x1x1x8xf32> to vector<1x1x8xf32>
    %177 = vector.shape_cast %176 : vector<1x1x8xf32> to vector<1x1x1x8xf32>
    %cst_230 = arith.constant 7.812500e-03 : f32
    %178 = vector.broadcast %cst_230 : f32 to vector<1x1x1x8xf32>
    %179 = arith.mulf %177, %178 : vector<1x1x1x8xf32>
    %cst_231 = arith.constant dense<0.000000e+00> : vector<1x1x8xf32>
    %180 = vector.multi_reduction <add>, %169, %cst_231 [0] : vector<2x1x1x8xf32> to vector<1x1x8xf32>
    %181 = vector.shape_cast %180 : vector<1x1x8xf32> to vector<1x1x1x8xf32>
    %cst_232 = arith.constant 7.812500e-03 : f32
    %182 = vector.broadcast %cst_232 : f32 to vector<1x1x1x8xf32>
    %183 = arith.mulf %181, %182 : vector<1x1x1x8xf32>
    %184 = arith.mulf %179, %179 : vector<1x1x1x8xf32>
    %185 = arith.subf %183, %184 : vector<1x1x1x8xf32>
    %186 = tpu.iota {dimensions = array<i32: 3>} : vector<1x1x1x8xi32>
    %c4_i32_233 = arith.constant 4 : i32
    %187 = vector.broadcast %c4_i32_233 : i32 to vector<1x1x1x8xi32>
    %188 = arith.cmpi slt, %186, %187 : vector<1x1x1x8xi32>
    %189 = vector.shape_cast %188 : vector<1x1x1x8xi1> to vector<1x1x1x8xi1>
    %190 = vector.broadcast %189 : vector<1x1x1x8xi1> to vector<2x1x1x8xi1>
    %191 = vector.shape_cast %179 : vector<1x1x1x8xf32> to vector<1x1x1x8xf32>
    %192 = vector.broadcast %191 : vector<1x1x1x8xf32> to vector<2x1x1x8xf32>
    %193 = arith.select %190, %171, %192 : vector<2x1x1x8xi1>, vector<2x1x1x8xf32>
    %cst_234 = arith.constant 9.99999974E-6 : f32
    %194 = vector.broadcast %cst_234 : f32 to vector<2x1x1x8xf32>
    %195 = arith.addf %175, %194 : vector<2x1x1x8xf32>
    %196 = math.rsqrt %195 : vector<2x1x1x8xf32>
    %cst_235 = arith.constant 9.99999974E-6 : f32
    %197 = vector.broadcast %cst_235 : f32 to vector<1x1x1x8xf32>
    %198 = arith.addf %185, %197 : vector<1x1x1x8xf32>
    %199 = math.rsqrt %198 : vector<1x1x1x8xf32>
    %200 = vector.shape_cast %188 : vector<1x1x1x8xi1> to vector<1x1x1x8xi1>
    %201 = vector.broadcast %200 : vector<1x1x1x8xi1> to vector<2x1x1x8xi1>
    %202 = vector.shape_cast %199 : vector<1x1x1x8xf32> to vector<1x1x1x8xf32>
    %203 = vector.broadcast %202 : vector<1x1x1x8xf32> to vector<2x1x1x8xf32>
    %204 = arith.select %201, %196, %203 : vector<2x1x1x8xi1>, vector<2x1x1x8xf32>
    %205 = vector.broadcast %159 : vector<1x1x1x8xf32> to vector<2x1x1x8xf32>
    %206 = arith.mulf %205, %204 : vector<2x1x1x8xf32>
    %207 = arith.mulf %193, %206 : vector<2x1x1x8xf32>
    %208 = vector.broadcast %160 : vector<1x1x1x8xf32> to vector<2x1x1x8xf32>
    %209 = arith.subf %208, %207 : vector<2x1x1x8xf32>
    %210 = vector.broadcast %206 : vector<2x1x1x8xf32> to vector<2x8x8x8xf32>
    %211 = arith.mulf %158, %210 : vector<2x8x8x8xf32>
    %212 = vector.broadcast %209 : vector<2x1x1x8xf32> to vector<2x8x8x8xf32>
    %213 = arith.addf %211, %212 : vector<2x8x8x8xf32>
    %cst_236 = arith.constant 0.000000e+00 : f32
    %214 = vector.broadcast %cst_236 : f32 to vector<2x8x8x8xf32>
    %215 = arith.maximumf %213, %214 : vector<2x8x8x8xf32>
    %c0_237 = arith.constant 0 : index
    %c0_238 = arith.constant 0 : index
    %c0_239 = arith.constant 0 : index
    %c0_240 = arith.constant 0 : index
    %216 = vector.load %arg7[%c0_237, %c0_238, %c0_239, %c0_240] : memref<2x8x8x8xf32, #tpu.memory_space<vmem>>, vector<2x8x8x8xf32>
    tpu.vector_store %arg7[%c0_237, %c0_238, %c0_239, %c0_240], %215 {strides = array<i32>} : memref<2x8x8x8xf32, #tpu.memory_space<vmem>>, vector<2x8x8x8xf32>,
    return
  }
}

</mosaic_0001>

<bundles_post_ra>
// kernel: down_block.1
= control target key start
LH: loop header
LB: loop body
LE: loop exit
PB: predicated region body
PF: predicated region fallthrough
CT: control target
= control target key end

     0   :  { %s2908_s17 = smov 124   ;;  %vm162_vm0 = vcmask 24576   ;;  %vm159_vm1 = vcmask 31744   ;;  %v2909_v48 = vmov 0.0   ;;  %vm195_vm2 = vcmask 64544   ;;  %s2912_s22 = smov 12   ;;  %s4943_s0 = inlined_call_operand.vmem [shape: f32[16,2,8,8], index: 0, kind: input, shape index: {}]   ;;  %s4944_s1 = inlined_call_operand.vmem [shape: f32[36,8], index: 1, kind: input, shape index: {}]   ;;  %s4945_s2 = inlined_call_operand.vmem [shape: f32[1,1,1,8], index: 2, kind: input, shape index: {}]   ;;  %s4946_s3 = inlined_call_operand.vmem [shape: f32[1,1,1,8], index: 3, kind: input, shape index: {}]   ;;  %s4947_s4 = inlined_call_operand.vmem [shape: f32[72,8], index: 4, kind: input, shape index: {}]   ;;  %s4948_s5 = inlined_call_operand.vmem [shape: f32[1,1,1,8], index: 5, kind: input, shape index: {}]   ;;  %s4949_s6 = inlined_call_operand.vmem [shape: f32[1,1,1,8], index: 6, kind: input, shape index: {}]   ;;  %s4950_s7 = inlined_call_operand.vmem [shape: f32[2,8,8,8], index: 7, kind: output, shape index: {}]  }
   0x1   :  { %v26_v0 = vld [vmem:[%s4943_s0] sm:$0xff]  ;;  %v27_v1 = vld [vmem:[%s4943_s0 + $0x8] sm:$0xff]  ;;  %v28_v2 = vld [vmem:[%s4943_s0 + $0x10] sm:$0xff]  ;;  %164 = vst.msk [vmem:[#allocation2 + $0x8] sm:$0x1] %vm162_vm0, %v2909_v48  ;;  %vm271_vm3 = vcmask 90176  }
   0x2   :  { %v2971_v3 = vmax.f32 %v26_v0, %v27_v1  ;;  %v29_v4 = vld [vmem:[%s4943_s0 + $0x18] sm:$0xff]  ;;  %v30_v5 = vld [vmem:[%s4943_s0 + $0x20] sm:$0xff]  ;;  %v31_v6 = vld [vmem:[%s4943_s0 + $0x28] sm:$0xff]  ;;  %165 = vst.msk [vmem:[#allocation2 + $0x10] sm:$0x1] %vm162_vm0, %v2909_v48  ;;  %vm268_vm4 = vcmask 97344  }
   0x3   :  { %v2982_v7 = vmax.f32 %v30_v5, %v31_v6  ;;  %v32_v8 = vld [vmem:[%s4943_s0 + $0x30] sm:$0xff]  ;;  %v33_v9 = vld [vmem:[%s4943_s0 + $0x38] sm:$0xff]  ;;  %v2992_v10 = vmax.f32 %v28_v2, %v29_v4  ;;  %v34_v12 = vld [vmem:[%s4943_s0 + $0x40] sm:$0xff]  ;;  %166 = vst.msk [vmem:[#allocation2 + $0x18] sm:$0x1] %vm162_vm0, %v2909_v48  ;;  %vm4952_vm5 = vcmask 122976  }
   0x4   :  { %90 = vrot.lane.b32.xlu0 %v2971_v3, %s2908_s17  ;;  %v2996_v11 = vmax.f32 %v32_v8, %v33_v9  ;;  %v35_v13 = vld [vmem:[%s4943_s0 + $0x48] sm:$0xff]  ;;  %v36_v14 = vld [vmem:[%s4943_s0 + $0x50] sm:$0xff]  ;;  %v37_v15 = vld [vmem:[%s4943_s0 + $0x58] sm:$0xff]  ;;  %167 = vst.msk [vmem:[#allocation2 + $0x20] sm:$0x1] %vm162_vm0, %v2909_v48  ;;  %vm180_vm6 = vcmask 30720  }
   0x5   :  { %94 = vrot.lane.b32.xlu1 %v2982_v7, %s2908_s17  ;;  %v3012_v16 = vmax.f32 %v34_v12, %v35_v13  ;;  %v3016_v17 = vmax.f32 %v36_v14, %v37_v15  ;;  %v38_v18 = vld [vmem:[%s4943_s0 + $0x60] sm:$0xff]  ;;  %v39_v19 = vld [vmem:[%s4943_s0 + $0x68] sm:$0xff]  ;;  %v40_v20 = vld [vmem:[%s4943_s0 + $0x70] sm:$0xff]  ;;  %168 = vst.msk [vmem:[#allocation2 + $0x28] sm:$0x1] %vm162_vm0, %v2909_v48  ;;  %s2913_s23 = smov 16  }
   0x6   :  { %v41_v21 = vld [vmem:[%s4943_s0 + $0x78] sm:$0xff]  ;;  %v3032_v22 = vmax.f32 %v38_v18, %v39_v19  ;;  %v42_v24 = vld [vmem:[%s4943_s0 + $0x80] sm:$0xff]  ;;  %v43_v25 = vld [vmem:[%s4943_s0 + $0x88] sm:$0xff]  ;;  %169 = vst.msk [vmem:[#allocation2 + $0x30] sm:$0x1] %vm162_vm0, %v2909_v48  ;;  %s2914_s24 = smov 20  }
   0x7   :  { %v3036_v23 = vmax.f32 %v40_v20, %v41_v21  ;;  %v44_v26 = vld [vmem:[%s4943_s0 + $0x90] sm:$0xff]  ;;  %v45_v27 = vld [vmem:[%s4943_s0 + $0x98] sm:$0xff]  ;;  %v3052_v28 = vmax.f32 %v42_v24, %v43_v25  ;;  %v46_v30 = vld [vmem:[%s4943_s0 + $0xa0] sm:$0xff]  ;;  %170 = vst.msk [vmem:[#allocation2 + $0x38] sm:$0x1] %vm162_vm0, %v2909_v48  ;;  %s2915_s25 = smov 24  }
   0x8   :  { %92 = vrot.lane.b32.xlu0 %v2992_v10, %s2908_s17  ;;  %v3056_v29 = vmax.f32 %v44_v26, %v45_v27  ;;  %v47_v31 = vld [vmem:[%s4943_s0 + $0xa8] sm:$0xff]  ;;  %v48_v32 = vld [vmem:[%s4943_s0 + $0xb0] sm:$0xff]  ;;  %v49_v33 = vld [vmem:[%s4943_s0 + $0xb8] sm:$0xff]  ;;  %172 = vst.msk [vmem:[#allocation2 + $0x48] sm:$0x1] %vm162_vm0, %v2909_v48  ;;  %s2916_s30 = smov 28  }
   0x9   :  { %96 = vrot.lane.b32.xlu1 %v2996_v11, %s2908_s17  ;;  %v3072_v34 = vmax.f32 %v46_v30, %v47_v31  ;;  %v3076_v35 = vmax.f32 %v48_v32, %v49_v33  ;;  %v50_v36 = vld [vmem:[%s4943_s0 + $0xc0] sm:$0xff]  ;;  %v51_v37 = vld [vmem:[%s4943_s0 + $0xc8] sm:$0xff]  ;;  %v52_v38 = vld [vmem:[%s4943_s0 + $0xd0] sm:$0xff]  ;;  %173 = vst.msk [vmem:[#allocation2 + $0x50] sm:$0x1] %vm162_vm0, %v2909_v48  ;;  %s2917_s12 = smov 32  }
   0xa   :  { %v53_v39 = vld [vmem:[%s4943_s0 + $0xd8] sm:$0xff]  ;;  %v3092_v40 = vmax.f32 %v50_v36, %v51_v37  ;;  %v54_v42 = vld [vmem:[%s4943_s0 + $0xe0] sm:$0xff]  ;;  %v55_v43 = vld [vmem:[%s4943_s0 + $0xe8] sm:$0xff]  ;;  %174 = vst.msk [vmem:[#allocation2 + $0x58] sm:$0x1] %vm162_vm0, %v2909_v48  ;;  %vm855_vm7 = vcmask 1043456  }
   0xb   :  { %v3096_v41 = vmax.f32 %v52_v38, %v53_v39  ;;  %v56_v44 = vld [vmem:[%s4943_s0 + $0xf0] sm:$0xff]  ;;  %v57_v45 = vld [vmem:[%s4943_s0 + $0xf8] sm:$0xff]  ;;  %v3112_v46 = vmax.f32 %v54_v42, %v55_v43  ;;  %175 = vst.msk [vmem:[#allocation2 + $0x60] sm:$0x1] %vm162_vm0, %v2909_v48  ;;  %176 = vst.msk [vmem:[#allocation2 + $0x68] sm:$0x1] %vm162_vm0, %v2909_v48 }
   0xc   :  { %98 = vrot.lane.b32.xlu0 %v3012_v16, %s2908_s17  ;;  %v3116_v47 = vmax.f32 %v56_v44, %v57_v45  ;;  %177 = vst.msk [vmem:[#allocation2 + $0x70] sm:$0x1] %vm162_vm0, %v2909_v48  ;;  %178 = vst.msk [vmem:[#allocation2 + $0x78] sm:$0x1] %vm162_vm0, %v2909_v48  ;;  %s2910_s0 = smov 8   ;;  %v154_v14 = vld [vmem:[%s4944_s1] sm:$0xff] }
   0xd   :  { %100 = vrot.lane.b32.xlu1 %v3016_v17, %s2908_s17  ;;  %160 = vst.msk [vmem:[#allocation2] sm:$0xff] %vm159_vm1, %v2909_v48  ;;  %161 = vst.msk [vmem:[#allocation2 + $0x40] sm:$0xff] %vm159_vm1, %v2909_v48  ;;  %v155_v15 = vld [vmem:[%s4944_s1 + $0x8] sm:$0xff]  ;;  %v157_v18 = vld [vmem:[%s4944_s1 + $0x18] sm:$0xff]  ;;  %vm330_vm8 = vcmask 97345   ;;  %vm412_vm9 = vcmask 129120  }
   0xe   :  { %163 = vst.msk [vmem:[#allocation2] sm:$0x1] %vm162_vm0, %v2909_v48  ;;  %171 = vst.msk [vmem:[#allocation2 + $0x40] sm:$0x1] %vm162_vm0, %v2909_v48  ;;  %v158_v20 = vld [vmem:[%s4944_s1 + $0x20] sm:$0xf] }
   0xf   :  { %196 = vst.msk [vmem:[#allocation2] sm:$0xff] %vm195_vm2, %v2909_v48  ;;  %197 = vst.msk [vmem:[#allocation2 + $0x40] sm:$0xff] %vm195_vm2, %v2909_v48  ;;  %vm477_vm10 = vcmask 162944   ;;  %vm494_vm11 = vcmask 188576   ;;  %vm559_vm12 = vcmask 195745   ;;  %vm580_vm13 = vcmask 221376  }
  0x10   :  { %102 = vrot.lane.b32.xlu0 %v3032_v22, %s2908_s17  ;;  %269 = vst.msk [vmem:[#allocation2] sm:$0xff] %vm268_vm4, %v2909_v48  ;;  %270 = vst.msk [vmem:[#allocation2 + $0x40] sm:$0xff] %vm268_vm4, %v2909_v48  ;;  %vm639_vm14 = vcmask 227520   ;;  %vm654_vm15 = vcmask 261344   ;;  %vm716_vm0 = vcmask 286976   ;;  %vm775_vm1 = vcmask 294145  }
  0x11   :  { %104 = vrot.lane.b32.xlu1 %v3036_v23, %s2908_s17  ;;  %272 = vst.msk [vmem:[#allocation2 + $0x7] sm:$0x1] %vm271_vm3, %v2909_v48  ;;  %280 = vst.msk [vmem:[#allocation2 + $0x47] sm:$0x1] %vm271_vm3, %v2909_v48  ;;  %vm806_vm4 = vcmask 293888  }
  0x12   :  { %346 = vst.msk [vmem:[#allocation2] sm:$0x1] %vm4952_vm5, %v2909_v48  ;;  %354 = vst.msk [vmem:[#allocation2 + $0x40] sm:$0x1] %vm4952_vm5, %v2909_v48 }
  0x14   :  { %106 = vrot.lane.b32.xlu0 %v3052_v28, %s2908_s17 }
  0x15   :  { %108 = vrot.lane.b32.xlu1 %v3056_v29, %s2908_s17 }
  0x18   :  { %110 = vrot.lane.b32.xlu0 %v3072_v34, %s2908_s17 }
  0x19   :  { %112 = vrot.lane.b32.xlu1 %v3076_v35, %s2908_s17 }
  0x1c   :  { %114 = vrot.lane.b32.xlu0 %v3092_v40, %s2908_s17 }
  0x1d   :  { %116 = vrot.lane.b32.xlu1 %v3096_v41, %s2908_s17 }
  0x20   :  { %118 = vrot.lane.b32.xlu0 %v3112_v46, %s2908_s17 }
  0x21   :  { %120 = vrot.lane.b32.xlu1 %v3116_v47, %s2908_s17  ;;  %s2911_s17 = smov 4  }
  0x76   :  { %v91_v49 = vpop.permute.xlu0 %90 }
  0x77   :  { %v138_v50 = vmax.f32 %v2971_v3, %v91_v49  ;;  %v95_v51 = vpop.permute.xlu1 %94 }
  0x78   :  { %v3174_v52 = vmax.f32 %v2982_v7, %v95_v51 }
  0x79   :  { %288 = vrot.lane.b32.xlu1 %v138_v50, %s2910_s0  ;;  %212 = vrot.lane.b32.xlu0 %v138_v50, %s2911_s17  ;;  %181 = vst.msk [vmem:[#allocation2 + $0x9] sm:$0x7f] %vm180_vm6, %v138_v50 }
  0x7a   :  { %v93_v53 = vpop.permute.xlu0 %92  ;;  %183 = vst.msk [vmem:[#allocation2 + $0x19] sm:$0x7f] %vm180_vm6, %v3174_v52 }
  0x7b   :  { %v3182_v54 = vmax.f32 %v2992_v10, %v93_v53  ;;  %v97_v55 = vpop.permute.xlu1 %96 }
  0x7c   :  { %v3185_v56 = vmax.f32 %v2996_v11, %v97_v55 }
  0x7d   :  { %364 = vrot.lane.b32.xlu0 %v138_v50, %s2912_s22  ;;  %366 = vrot.lane.b32.xlu1 %v3182_v54, %s2912_s22  ;;  %182 = vst.msk [vmem:[#allocation2 + $0x11] sm:$0x7f] %vm180_vm6, %v3182_v54 }
  0x7e   :  { %v99_v57 = vpop.permute.xlu0 %98  ;;  %184 = vst.msk [vmem:[#allocation2 + $0x21] sm:$0x7f] %vm180_vm6, %v3185_v56 }
  0x7f   :  { %v3195_v58 = vmax.f32 %v3012_v16, %v99_v57  ;;  %v101_v59 = vpop.permute.xlu1 %100  ;;  %v2848_v16 = vpack.c.bf16 %v155_v15, %v154_v14 }
  0x80   :  { %v3198_v60 = vmax.f32 %v3016_v17, %v101_v59  ;;  %v156_v17 = vld [vmem:[%s4944_s1 + $0x10] sm:$0xff]  ;;  %s2921_s1 = smov 64  }
  0x81   :  { %429 = vrot.lane.b32.xlu0 %v138_v50, %s2913_s23  ;;  %214 = vrot.lane.b32.xlu1 %v3182_v54, %s2911_s17  ;;  %185 = vst.msk [vmem:[#allocation2 + $0x29] sm:$0x7f] %vm180_vm6, %v3195_v58  ;;  %v2852_v19 = vpack.c.bf16 %v157_v18, %v156_v17 }
  0x82   :  { %v103_v61 = vpop.permute.xlu0 %102  ;;  %186 = vst.msk [vmem:[#allocation2 + $0x31] sm:$0x7f] %vm180_vm6, %v3198_v60  ;;  %2849 = vmatprep.subr.bf16.mxu0 %v2848_v16 }
  0x83   :  { %v3208_v62 = vmax.f32 %v3032_v22, %v103_v61  ;;  %v3210_v63 = vpop.permute.xlu1 %104  ;;  %2851 = vmatpush3.bf16.msra.mxu0 %v2848_v16 }
  0x84   :  { %2853 = vmatprep.subr.bf16.mxu0 %v2852_v19  ;;  %v145_v21 = vmax.f32 %v3036_v23, %v3210_v63 }
  0x85   :  { %431 = vrot.lane.b32.xlu0 %v3182_v54, %s2913_s23  ;;  %511 = vrot.lane.b32.xlu1 %v138_v50, %s2914_s24  ;;  %187 = vst.msk [vmem:[#allocation2 + $0x39] sm:$0x7f] %vm180_vm6, %v3208_v62 }
  0x86   :  { %v107_v0 = vpop.permute.xlu0 %106 }
  0x87   :  { %v109_v1 = vpop.permute.xlu1 %108  ;;  %v3218_v2 = vmax.f32 %v3052_v28, %v107_v0  ;;  %2855 = vmatpush3.bf16.msra.mxu0 %v2852_v19 }
  0x88   :  { %v3221_v3 = vmax.f32 %v3056_v29, %v109_v1  ;;  %2780 = vmatprep.subr.msk.mxu0 %vm855_vm7, %v158_v20 }
  0x89   :  { %216 = vrot.lane.b32.xlu0 %v3174_v52, %s2911_s17  ;;  %290 = vrot.lane.b32.xlu1 %v3182_v54, %s2910_s0  ;;  %188 = vst.msk [vmem:[#allocation2 + $0x49] sm:$0x7f] %vm180_vm6, %v3218_v2 }
  0x8a   :  { %v111_v4 = vpop.permute.xlu0 %110  ;;  %189 = vst.msk [vmem:[#allocation2 + $0x51] sm:$0x7f] %vm180_vm6, %v3221_v3 }
  0x8b   :  { %v113_v5 = vpop.permute.xlu1 %112  ;;  %v3232_v6 = vmax.f32 %v3072_v34, %v111_v4  ;;  %2781 = vmatpush3.msk.msra.mxu0 %vm855_vm7, %v158_v20  ;;  %vm1429_vm7 = vcmask 57344  }
  0x8c   :  { %v3235_v7 = vmax.f32 %v3076_v35, %v113_v5 }
  0x8d   :  { %513 = vrot.lane.b32.xlu0 %v3182_v54, %s2914_s24  ;;  %597 = vrot.lane.b32.xlu1 %v3182_v54, %s2915_s25  ;;  %190 = vst.msk [vmem:[#allocation2 + $0x59] sm:$0x7f] %vm180_vm6, %v3232_v6 }
  0x8e   :  { %v115_v8 = vpop.permute.xlu0 %114  ;;  %191 = vst.msk [vmem:[#allocation2 + $0x61] sm:$0x7f] %vm180_vm6, %v3235_v7 }
  0x8f   :  { %v117_v9 = vpop.permute.xlu1 %116  ;;  %v3246_v10 = vmax.f32 %v3092_v40, %v115_v8 }
  0x90   :  { %v3249_v11 = vmax.f32 %v3096_v41, %v117_v9 }
  0x91   :  { %292 = vrot.lane.b32.xlu0 %v3174_v52, %s2910_s0  ;;  %368 = vrot.lane.b32.xlu1 %v3174_v52, %s2912_s22  ;;  %192 = vst.msk [vmem:[#allocation2 + $0x69] sm:$0x7f] %vm180_vm6, %v3246_v10 }
  0x92   :  { %v119_v12 = vpop.permute.xlu0 %118  ;;  %193 = vst.msk [vmem:[#allocation2 + $0x71] sm:$0x7f] %vm180_vm6, %v3249_v11 }
  0x93   :  { %v3260_v13 = vmax.f32 %v3112_v46, %v119_v12  ;;  %v3362_v22 = vpop.permute.xlu1 %120 }
  0x94   :  { %v3568_v8 = vmax.f32 %v3116_v47, %v3362_v22 }
  0x95   :  { %599 = vrot.lane.b32.xlu0 %v3174_v52, %s2915_s25  ;;  %657 = vrot.lane.b32.xlu1 %v3182_v54, %s2916_s30  ;;  %194 = vst.msk [vmem:[#allocation2 + $0x79] sm:$0x7f] %vm180_vm6, %v3260_v13  ;;  %vm4951_vm6 = vcmask 64512  }
  0x99   :  { %370 = vrot.lane.b32.xlu0 %v3185_v56, %s2912_s22  ;;  %433 = vrot.lane.b32.xlu1 %v3174_v52, %s2913_s23 }
  0x9d   :  { %659 = vrot.lane.b32.xlu0 %v3174_v52, %s2916_s30  ;;  %733 = vrot.lane.b32.xlu1 %v3182_v54, %s2917_s12 }
  0xa1   :  { %218 = vrot.lane.b32.xlu0 %v3185_v56, %s2911_s17  ;;  %435 = vrot.lane.b32.xlu1 %v3185_v56, %s2913_s23 }
  0xa5   :  { %515 = vrot.lane.b32.xlu0 %v3174_v52, %s2914_s24  ;;  %735 = vrot.lane.b32.xlu1 %v3174_v52, %s2917_s12 }
  0xa9   :  { %294 = vrot.lane.b32.xlu1 %v3185_v56, %s2910_s0  ;;  %220 = vrot.lane.b32.xlu0 %v3195_v58, %s2911_s17 }
  0xad   :  { %601 = vrot.lane.b32.xlu1 %v3185_v56, %s2915_s25  ;;  %517 = vrot.lane.b32.xlu0 %v3185_v56, %s2914_s24 }
  0xb1   :  { %372 = vrot.lane.b32.xlu1 %v3195_v58, %s2912_s22  ;;  %296 = vrot.lane.b32.xlu0 %v3195_v58, %s2910_s0 }
  0xb5   :  { %661 = vrot.lane.b32.xlu1 %v3185_v56, %s2916_s30  ;;  %603 = vrot.lane.b32.xlu0 %v3195_v58, %s2915_s25 }
  0xb9   :  { %374 = vrot.lane.b32.xlu1 %v3198_v60, %s2912_s22  ;;  %224 = vrot.lane.b32.xlu0 %v3208_v62, %s2911_s17 }
  0xbd   :  { %663 = vrot.lane.b32.xlu1 %v3195_v58, %s2916_s30  ;;  %437 = vrot.lane.b32.xlu0 %v3195_v58, %s2913_s23 }
  0xc1   :  { %222 = vrot.lane.b32.xlu1 %v3198_v60, %s2911_s17  ;;  %737 = vrot.lane.b32.xlu0 %v3185_v56, %s2917_s12 }
  0xc5   :  { %439 = vrot.lane.b32.xlu1 %v3198_v60, %s2913_s23  ;;  %300 = vrot.lane.b32.xlu0 %v3208_v62, %s2910_s0 }
  0xc9   :  { %739 = vrot.lane.b32.xlu1 %v3195_v58, %s2917_s12  ;;  %519 = vrot.lane.b32.xlu0 %v3195_v58, %s2914_s24 }
  0xcd   :  { %378 = vrot.lane.b32.xlu1 %v145_v21, %s2912_s22  ;;  %298 = vrot.lane.b32.xlu0 %v3198_v60, %s2910_s0 }
  0xd1   :  { %605 = vrot.lane.b32.xlu1 %v3198_v60, %s2915_s25  ;;  %521 = vrot.lane.b32.xlu0 %v3198_v60, %s2914_s24 }
  0xd5   :  { %443 = vrot.lane.b32.xlu1 %v145_v21, %s2913_s23  ;;  %376 = vrot.lane.b32.xlu0 %v3208_v62, %s2912_s22 }
  0xd9   :  { %665 = vrot.lane.b32.xlu1 %v3198_v60, %s2916_s30  ;;  %607 = vrot.lane.b32.xlu0 %v3208_v62, %s2915_s25 }
  0xdd   :  { %525 = vrot.lane.b32.xlu1 %v145_v21, %s2914_s24  ;;  %441 = vrot.lane.b32.xlu0 %v3208_v62, %s2913_s23 }
  0xe1   :  { %741 = vrot.lane.b32.xlu1 %v3198_v60, %s2917_s12  ;;  %667 = vrot.lane.b32.xlu0 %v3208_v62, %s2916_s30 }
  0xe5   :  { %743 = vrot.lane.b32.xlu1 %v3208_v62, %s2917_s12  ;;  %523 = vrot.lane.b32.xlu0 %v3208_v62, %s2914_s24 }
  0xe9   :  { %609 = vrot.lane.b32.xlu1 %v145_v21, %s2915_s25  ;;  %226 = vrot.lane.b32.xlu0 %v3218_v2, %s2911_s17 }
  0xeb   :  { %v289_v23 = vpop.permute.xlu1 %288  ;;  %v213_v24 = vpop.permute.xlu0 %212 }
  0xec   :  { %254 = vst.msk [vmem:[#allocation2 + $0x8] sm:$0xff] %vm195_vm2, %v213_v24 }
  0xed   :  { %273 = vst.msk [vmem:[#allocation2 + $0xf] sm:$0x1] %vm271_vm3, %v2909_v48  ;;  %380 = vrot.lane.b32.xlu1 %v3218_v2, %s2912_s22  ;;  %302 = vrot.lane.b32.xlu0 %v3218_v2, %s2910_s0 }
  0xee   :  { %331 = vst.msk [vmem:[#allocation2 + $0x7] sm:$0xfe] %vm330_vm8, %v289_v23 }
  0xef   :  { %347 = vst.msk [vmem:[#allocation2 + $0x8] sm:$0x1] %vm4952_vm5, %v2909_v48  ;;  %v367_v25 = vpop.permute.xlu1 %366  ;;  %v365_v26 = vpop.permute.xlu0 %364 }
  0xf0   :  { %414 = vst.msk [vmem:[#allocation2 + $0x9] sm:$0x7f] %vm412_vm9, %v367_v25  ;;  %413 = vst.msk [vmem:[#allocation2 + $0x1] sm:$0x7f] %vm412_vm9, %v365_v26 }
  0xf1   :  { %382 = vrot.lane.b32.xlu1 %v3221_v3, %s2912_s22  ;;  %669 = vrot.lane.b32.xlu0 %v145_v21, %s2916_s30 }
  0xf3   :  { %v215_v27 = vpop.permute.xlu1 %214  ;;  %v430_v28 = vpop.permute.xlu0 %429 }
  0xf4   :  { %255 = vst.msk [vmem:[#allocation2 + $0x10] sm:$0xff] %vm195_vm2, %v215_v27 }
  0xf5   :  { %478 = vst.msk [vmem:[#allocation2] sm:$0xff] %vm477_vm10, %v430_v28  ;;  %745 = vrot.lane.b32.xlu1 %v145_v21, %s2917_s12  ;;  %445 = vrot.lane.b32.xlu0 %v3218_v2, %s2913_s23 }
  0xf6   :  { %274 = vst.msk [vmem:[#allocation2 + $0x17] sm:$0x1] %vm271_vm3, %v2909_v48 }
  0xf7   :  { %495 = vst.msk [vmem:[#allocation2 + $0x7] sm:$0x1] %vm494_vm11, %v2909_v48  ;;  %v512_v29 = vpop.permute.xlu1 %511  ;;  %v432_v30 = vpop.permute.xlu0 %431 }
  0xf8   :  { %560 = vst.msk [vmem:[#allocation2 - $0x1] sm:$0xfe] %vm559_vm12, %v512_v29 }
  0xf9   :  { %479 = vst.msk [vmem:[#allocation2 + $0x8] sm:$0xff] %vm477_vm10, %v432_v30  ;;  %447 = vrot.lane.b32.xlu1 %v3221_v3, %s2913_s23  ;;  %228 = vrot.lane.b32.xlu0 %v3221_v3, %s2911_s17 }
  0xfa   :  { %581 = vst.msk [vmem:[#allocation2] sm:$0x1] %vm580_vm13, %v2909_v48 }
  0xfb   :  { %496 = vst.msk [vmem:[#allocation2 + $0xf] sm:$0x1] %vm494_vm11, %v2909_v48  ;;  %v291_v31 = vpop.permute.xlu1 %290  ;;  %v217_v32 = vpop.permute.xlu0 %216 }
  0xfc   :  { %332 = vst.msk [vmem:[#allocation2 + $0xf] sm:$0xfe] %vm330_vm8, %v291_v31 }
  0xfd   :  { %256 = vst.msk [vmem:[#allocation2 + $0x18] sm:$0xff] %vm195_vm2, %v217_v32  ;;  %527 = vrot.lane.b32.xlu0 %v3218_v2, %s2914_s24  ;;  %230 = vrot.lane.b32.xlu1 %v3232_v6, %s2911_s17 }
  0xfe   :  { %348 = vst.msk [vmem:[#allocation2 + $0x10] sm:$0x1] %vm4952_vm5, %v2909_v48 }
  0xff   :  { %275 = vst.msk [vmem:[#allocation2 + $0x1f] sm:$0x1] %vm271_vm3, %v2909_v48  ;;  %v598_v33 = vpop.permute.xlu1 %597  ;;  %v514_v34 = vpop.permute.xlu0 %513 }
 0x100   :  { %640 = vst.msk [vmem:[#allocation2 + $0x1] sm:$0x7f] %vm639_vm14, %v598_v33 }
 0x101   :  { %561 = vst.msk [vmem:[#allocation2 + $0x7] sm:$0xfe] %vm559_vm12, %v514_v34  ;;  %304 = vrot.lane.b32.xlu0 %v3221_v3, %s2910_s0  ;;  %529 = vrot.lane.b32.xlu1 %v3221_v3, %s2914_s24 }
 0x102   :  { %582 = vst.msk [vmem:[#allocation2 + $0x8] sm:$0x1] %vm580_vm13, %v2909_v48 }
 0x103   :  { %v369_v35 = vpop.permute.xlu1 %368  ;;  %v293_v36 = vpop.permute.xlu0 %292 }
 0x104   :  { %415 = vst.msk [vmem:[#allocation2 + $0x11] sm:$0x7f] %vm412_vm9, %v369_v35 }
 0x105   :  { %333 = vst.msk [vmem:[#allocation2 + $0x17] sm:$0xfe] %vm330_vm8, %v293_v36  ;;  %611 = vrot.lane.b32.xlu0 %v3221_v3, %s2915_s25  ;;  %306 = vrot.lane.b32.xlu1 %v3232_v6, %s2910_s0 }
 0x106   :  { %349 = vst.msk [vmem:[#allocation2 + $0x18] sm:$0x1] %vm4952_vm5, %v2909_v48 }
 0x107   :  { %v658_v37 = vpop.permute.xlu1 %657  ;;  %v600_v38 = vpop.permute.xlu0 %599 }
 0x108   :  { %699 = vst.msk [vmem:[#allocation2] sm:$0xff] %vm654_vm15, %v658_v37 }
 0x109   :  { %641 = vst.msk [vmem:[#allocation2 + $0x9] sm:$0x7f] %vm639_vm14, %v600_v38  ;;  %384 = vrot.lane.b32.xlu0 %v3232_v6, %s2912_s22  ;;  %613 = vrot.lane.b32.xlu1 %v3232_v6, %s2915_s25 }
 0x10a   :  { %717 = vst.msk [vmem:[#allocation2 + $0x7] sm:$0x1] %vm716_vm0, %v2909_v48 }
 0x10b   :  { %v434_v39 = vpop.permute.xlu1 %433  ;;  %v371_v40 = vpop.permute.xlu0 %370 }
 0x10c   :  { %480 = vst.msk [vmem:[#allocation2 + $0x10] sm:$0xff] %vm477_vm10, %v434_v39 }
 0x10d   :  { %416 = vst.msk [vmem:[#allocation2 + $0x19] sm:$0x7f] %vm412_vm9, %v371_v40  ;;  %671 = vrot.lane.b32.xlu0 %v3221_v3, %s2916_s30  ;;  %386 = vrot.lane.b32.xlu1 %v3235_v7, %s2912_s22 }
 0x10e   :  { %497 = vst.msk [vmem:[#allocation2 + $0x17] sm:$0x1] %vm494_vm11, %v2909_v48 }
 0x10f   :  { %v734_v41 = vpop.permute.xlu1 %733  ;;  %v660_v42 = vpop.permute.xlu0 %659 }
 0x110   :  { %776 = vst.msk [vmem:[#allocation2 - $0x1] sm:$0xfe] %vm775_vm1, %v734_v41 }
 0x111   :  { %700 = vst.msk [vmem:[#allocation2 + $0x8] sm:$0xff] %vm654_vm15, %v660_v42  ;;  %449 = vrot.lane.b32.xlu0 %v3232_v6, %s2913_s23  ;;  %673 = vrot.lane.b32.xlu1 %v3232_v6, %s2916_s30 }
 0x112   :  { %718 = vst.msk [vmem:[#allocation2 + $0xf] sm:$0x1] %vm716_vm0, %v2909_v48 }
 0x113   :  { %v436_v43 = vpop.permute.xlu1 %435  ;;  %v219_v44 = vpop.permute.xlu0 %218 }
 0x114   :  { %481 = vst.msk [vmem:[#allocation2 + $0x18] sm:$0xff] %vm477_vm10, %v436_v43 }
 0x115   :  { %257 = vst.msk [vmem:[#allocation2 + $0x20] sm:$0xff] %vm195_vm2, %v219_v44  ;;  %747 = vrot.lane.b32.xlu0 %v3221_v3, %s2917_s12  ;;  %232 = vrot.lane.b32.xlu1 %v3235_v7, %s2911_s17 }
 0x116   :  { %498 = vst.msk [vmem:[#allocation2 + $0x1f] sm:$0x1] %vm494_vm11, %v2909_v48 }
 0x117   :  { %276 = vst.msk [vmem:[#allocation2 + $0x27] sm:$0x1] %vm271_vm3, %v2909_v48  ;;  %v736_v45 = vpop.permute.xlu1 %735  ;;  %v516_v46 = vpop.permute.xlu0 %515  ;;  %v790_v49 = vld [vmem:[#allocation2] sm:$0xff] }
 0x118   :  { %777 = vst.msk [vmem:[#allocation2 + $0x7] sm:$0xfe] %vm775_vm1, %v736_v45  ;;  %2782 = vmatprep.mubr.msk.f32.mxu0 %vm806_vm4, %v790_v49 }
 0x119   :  { %562 = vst.msk [vmem:[#allocation2 + $0xf] sm:$0xfe] %vm559_vm12, %v516_v46  ;;  %451 = vrot.lane.b32.xlu0 %v3235_v7, %s2913_s23  ;;  %531 = vrot.lane.b32.xlu1 %v3232_v6, %s2914_s24 }
 0x11a   :  { %1427 = vst.msk [vmem:[#allocation2] sm:$0xff] %vm4951_vm6, %v2909_v48  ;;  %vm4954_vm6 = vcmask 228544  }
 0x11b   :  { %583 = vst.msk [vmem:[#allocation2 + $0x10] sm:$0x1] %vm580_vm13, %v2909_v48  ;;  %v295_v50 = vpop.permute.xlu1 %294  ;;  %v221_v51 = vpop.permute.xlu0 %220 }
 0x11c   :  { %1430 = vst.msk [vmem:[#allocation2] sm:$0x1] %vm1429_vm7, %v2909_v48 }
 0x11d   :  { %334 = vst.msk [vmem:[#allocation2 + $0x1f] sm:$0xfe] %vm330_vm8, %v295_v50  ;;  %749 = vrot.lane.b32.xlu0 %v3232_v6, %s2917_s12  ;;  %234 = vrot.lane.b32.xlu1 %v3246_v10, %s2911_s17 }
 0x11e   :  { %258 = vst.msk [vmem:[#allocation2 + $0x28] sm:$0xff] %vm195_vm2, %v221_v51 }
 0x11f   :  { %350 = vst.msk [vmem:[#allocation2 + $0x20] sm:$0x1] %vm4952_vm5, %v2909_v48  ;;  %v602_v52 = vpop.permute.xlu1 %601  ;;  %v518_v53 = vpop.permute.xlu0 %517  ;;  %v791_v54 = vld [vmem:[#allocation2 + $0x8] sm:$0xff] }
 0x120   :  { %277 = vst.msk [vmem:[#allocation2 + $0x2f] sm:$0x1] %vm271_vm3, %v2909_v48  ;;  %2783 = vmatmul.mubr.msk.f32.vlgmr.msra.gmra.mrb[0].mxu0 %vm806_vm4, %v791_v54 }
 0x121   :  { %642 = vst.msk [vmem:[#allocation2 + $0x11] sm:$0x7f] %vm639_vm14, %v602_v52  ;;  %308 = vrot.lane.b32.xlu0 %v3235_v7, %s2910_s0  ;;  %533 = vrot.lane.b32.xlu1 %v3235_v7, %s2914_s24 }
 0x122   :  { %563 = vst.msk [vmem:[#allocation2 + $0x17] sm:$0xfe] %vm559_vm12, %v518_v53 }
 0x123   :  { %1431 = vst.msk [vmem:[#allocation2 + $0x8] sm:$0x1] %vm1429_vm7, %v2909_v48  ;;  %v373_v55 = vpop.permute.xlu1 %372  ;;  %v297_v56 = vpop.permute.xlu0 %296 }
 0x124   :  { %584 = vst.msk [vmem:[#allocation2 + $0x18] sm:$0x1] %vm580_vm13, %v2909_v48 }
 0x125   :  { %417 = vst.msk [vmem:[#allocation2 + $0x21] sm:$0x7f] %vm412_vm9, %v373_v55  ;;  %615 = vrot.lane.b32.xlu0 %v3235_v7, %s2915_s25  ;;  %310 = vrot.lane.b32.xlu1 %v3246_v10, %s2910_s0 }
 0x126   :  { %335 = vst.msk [vmem:[#allocation2 + $0x27] sm:$0xfe] %vm330_vm8, %v297_v56 }
 0x127   :  { %351 = vst.msk [vmem:[#allocation2 + $0x28] sm:$0x1] %vm4952_vm5, %v2909_v48  ;;  %v662_v57 = vpop.permute.xlu1 %661  ;;  %v604_v58 = vpop.permute.xlu0 %603 }
 0x128   :  { %701 = vst.msk [vmem:[#allocation2 + $0x10] sm:$0xff] %vm654_vm15, %v662_v57 }
 0x129   :  { %643 = vst.msk [vmem:[#allocation2 + $0x19] sm:$0x7f] %vm639_vm14, %v604_v58  ;;  %388 = vrot.lane.b32.xlu0 %v3246_v10, %s2912_s22  ;;  %617 = vrot.lane.b32.xlu1 %v3246_v10, %s2915_s25 }
 0x12a   :  { %719 = vst.msk [vmem:[#allocation2 + $0x17] sm:$0x1] %vm716_vm0, %v2909_v48 }
 0x12b   :  { %v375_v59 = vpop.permute.xlu1 %374  ;;  %v225_v60 = vpop.permute.xlu0 %224 }
 0x12c   :  { %418 = vst.msk [vmem:[#allocation2 + $0x29] sm:$0x7f] %vm412_vm9, %v375_v59 }
 0x12d   :  { %260 = vst.msk [vmem:[#allocation2 + $0x38] sm:$0xff] %vm195_vm2, %v225_v60  ;;  %675 = vrot.lane.b32.xlu0 %v3235_v7, %s2916_s30  ;;  %238 = vrot.lane.b32.xlu1 %v3260_v13, %s2911_s17 }
 0x12e   :  { %279 = vst.msk [vmem:[#allocation2 + $0x3f] sm:$0x1] %vm271_vm3, %v2909_v48 }
 0x12f   :  { %v664_v61 = vpop.permute.xlu1 %663  ;;  %v438_v62 = vpop.permute.xlu0 %437 }
 0x130   :  { %702 = vst.msk [vmem:[#allocation2 + $0x18] sm:$0xff] %vm654_vm15, %v664_v61 }
 0x131   :  { %482 = vst.msk [vmem:[#allocation2 + $0x20] sm:$0xff] %vm477_vm10, %v438_v62  ;;  %390 = vrot.lane.b32.xlu0 %v3249_v11, %s2912_s22  ;;  %453 = vrot.lane.b32.xlu1 %v3246_v10, %s2913_s23 }
 0x132   :  { %720 = vst.msk [vmem:[#allocation2 + $0x1f] sm:$0x1] %vm716_vm0, %v2909_v48 }
 0x133   :  { %499 = vst.msk [vmem:[#allocation2 + $0x27] sm:$0x1] %vm494_vm11, %v2909_v48  ;;  %v223_v63 = vpop.permute.xlu1 %222  ;;  %v738_v0 = vpop.permute.xlu0 %737 }
 0x134   :  { %259 = vst.msk [vmem:[#allocation2 + $0x30] sm:$0xff] %vm195_vm2, %v223_v63 }
 0x135   :  { %778 = vst.msk [vmem:[#allocation2 + $0xf] sm:$0xfe] %vm775_vm1, %v738_v0  ;;  %677 = vrot.lane.b32.xlu0 %v3246_v10, %s2916_s30  ;;  %751 = vrot.lane.b32.xlu1 %v3235_v7, %s2917_s12 }
 0x136   :  { %278 = vst.msk [vmem:[#allocation2 + $0x37] sm:$0x1] %vm271_vm3, %v2909_v48 }
 0x137   :  { %v440_v1 = vpop.permute.xlu1 %439  ;;  %v301_v2 = vpop.permute.xlu0 %300 }
 0x138   :  { %483 = vst.msk [vmem:[#allocation2 + $0x28] sm:$0xff] %vm477_vm10, %v440_v1 }
 0x139   :  { %337 = vst.msk [vmem:[#allocation2 + $0x37] sm:$0xfe] %vm330_vm8, %v301_v2  ;;  %314 = vrot.lane.b32.xlu1 %v3260_v13, %s2910_s0  ;;  %236 = vrot.lane.b32.xlu0 %v3249_v11, %s2911_s17 }
 0x13a   :  { %500 = vst.msk [vmem:[#allocation2 + $0x2f] sm:$0x1] %vm494_vm11, %v2909_v48 }
 0x13b   :  { %353 = vst.msk [vmem:[#allocation2 + $0x38] sm:$0x1] %vm4952_vm5, %v2909_v48  ;;  %v740_v3 = vpop.permute.xlu1 %739  ;;  %v520_v4 = vpop.permute.xlu0 %519 }
 0x13c   :  { %v792_v5 = vld [vmem:[#allocation2 + $0x10] sm:$0xff]  ;;  %779 = vst.msk [vmem:[#allocation2 + $0x17] sm:$0xfe] %vm775_vm1, %v740_v3 }
 0x13d   :  { %564 = vst.msk [vmem:[#allocation2 + $0x1f] sm:$0xfe] %vm559_vm12, %v520_v4  ;;  %2785 = vmatprep.mubr.msk.f32.mxu0 %vm806_vm4, %v792_v5  ;;  %535 = vrot.lane.b32.xlu1 %v3246_v10, %s2914_s24 }
 0x13e   :  { %1432 = vst.msk [vmem:[#allocation2 + $0x10] sm:$0x1] %vm1429_vm7, %v2909_v48  ;;  %455 = vrot.lane.b32.xlu0 %v3249_v11, %s2913_s23 }
 0x13f   :  { %585 = vst.msk [vmem:[#allocation2 + $0x20] sm:$0x1] %vm580_vm13, %v2909_v48  ;;  %v379_v6 = vpop.permute.xlu1 %378  ;;  %v299_v7 = vpop.permute.xlu0 %298 }
 0x140   :  { %420 = vst.msk [vmem:[#allocation2 + $0x39] sm:$0x7f] %vm412_vm9, %v379_v6 }
 0x141   :  { %336 = vst.msk [vmem:[#allocation2 + $0x2f] sm:$0xfe] %vm330_vm8, %v299_v7  ;;  %312 = vrot.lane.b32.xlu1 %v3249_v11, %s2910_s0 }
 0x142   :  { %352 = vst.msk [vmem:[#allocation2 + $0x30] sm:$0x1] %vm4952_vm5, %v2909_v48  ;;  %753 = vrot.lane.b32.xlu0 %v3246_v10, %s2917_s12  ;;  %vm4953_vm5 = vcmask 294144  }
 0x143   :  { %v606_v9 = vpop.permute.xlu1 %605  ;;  %v522_v12 = vpop.permute.xlu0 %521  ;;  %v793_v14 = vld [vmem:[#allocation2 + $0x18] sm:$0xff] }
 0x144   :  { %644 = vst.msk [vmem:[#allocation2 + $0x21] sm:$0x7f] %vm639_vm14, %v606_v9  ;;  %2786 = vmatmul.mubr.msk.f32.gmra.mrb[2].mxu0 %vm806_vm4, %v793_v14 }
 0x145   :  { %565 = vst.msk [vmem:[#allocation2 + $0x27] sm:$0xfe] %vm559_vm12, %v522_v12  ;;  %537 = vrot.lane.b32.xlu1 %v3249_v11, %s2914_s24 }
 0x146   :  { %1433 = vst.msk [vmem:[#allocation2 + $0x18] sm:$0x1] %vm1429_vm7, %v2909_v48  ;;  %394 = vrot.lane.b32.xlu0 %v3568_v8, %s2912_s22 }
 0x147   :  { %586 = vst.msk [vmem:[#allocation2 + $0x28] sm:$0x1] %vm580_vm13, %v2909_v48  ;;  %v444_v47 = vpop.permute.xlu1 %443  ;;  %v377_v10 = vpop.permute.xlu0 %376 }
 0x148   :  { %485 = vst.msk [vmem:[#allocation2 + $0x38] sm:$0xff] %vm477_vm10, %v444_v47 }
 0x149   :  { %419 = vst.msk [vmem:[#allocation2 + $0x31] sm:$0x7f] %vm412_vm9, %v377_v10  ;;  %392 = vrot.lane.b32.xlu1 %v3260_v13, %s2912_s22  ;;  %s2920_s22 = smov 56  }
 0x14a   :  { %502 = vst.msk [vmem:[#allocation2 + $0x3f] sm:$0x1] %vm494_vm11, %v2909_v48  ;;  %619 = vrot.lane.b32.xlu0 %v3249_v11, %s2915_s25 }
 0x14b   :  { %v666_v15 = vpop.permute.xlu1 %665  ;;  %v608_v16 = vpop.permute.xlu0 %607 }
 0x14c   :  { %703 = vst.msk [vmem:[#allocation2 + $0x20] sm:$0xff] %vm654_vm15, %v666_v15 }
 0x14d   :  { %645 = vst.msk [vmem:[#allocation2 + $0x29] sm:$0x7f] %vm639_vm14, %v608_v16  ;;  %621 = vrot.lane.b32.xlu1 %v3260_v13, %s2915_s25 }
 0x14e   :  { %721 = vst.msk [vmem:[#allocation2 + $0x27] sm:$0x1] %vm716_vm0, %v2909_v48  ;;  %459 = vrot.lane.b32.xlu0 %v3568_v8, %s2913_s23 }
 0x14f   :  { %v526_v17 = vpop.permute.xlu1 %525  ;;  %v442_v18 = vpop.permute.xlu0 %441 }
 0x150   :  { %567 = vst.msk [vmem:[#allocation2 + $0x37] sm:$0xfe] %vm559_vm12, %v526_v17 }
 0x151   :  { %484 = vst.msk [vmem:[#allocation2 + $0x30] sm:$0xff] %vm477_vm10, %v442_v18  ;;  %457 = vrot.lane.b32.xlu1 %v3260_v13, %s2913_s23 }
 0x152   :  { %578 = vst.msk [vmem:[#allocation2 + $0x38] sm:$0xff] %vm4954_vm6, %v2909_v48  ;;  %679 = vrot.lane.b32.xlu0 %v3249_v11, %s2916_s30 }
 0x153   :  { %501 = vst.msk [vmem:[#allocation2 + $0x37] sm:$0x1] %vm494_vm11, %v2909_v48  ;;  %v742_v19 = vpop.permute.xlu1 %741  ;;  %v668_v20 = vpop.permute.xlu0 %667 }
 0x154   :  { %588 = vst.msk [vmem:[#allocation2 + $0x38] sm:$0x1] %vm580_vm13, %v2909_v48 }
 0x155   :  { %655 = vst.msk [vmem:[#allocation2 + $0x38] sm:$0xff] %vm654_vm15, %v2909_v48  ;;  %704 = vst.msk [vmem:[#allocation2 + $0x28] sm:$0xff] %vm654_vm15, %v668_v20  ;;  %681 = vrot.lane.b32.xlu1 %v3260_v13, %s2916_s30 }
 0x156   :  { %780 = vst.msk [vmem:[#allocation2 + $0x1f] sm:$0xfe] %vm775_vm1, %v742_v19  ;;  %541 = vrot.lane.b32.xlu0 %v3568_v8, %s2914_s24 }
 0x157   :  { %714 = vst.msk [vmem:[#allocation2 + $0x38] sm:$0xff] %vm4953_vm5, %v2909_v48  ;;  %v744_v21 = vpop.permute.xlu1 %743  ;;  %v524_v22 = vpop.permute.xlu0 %523  ;;  %vm4956_vm5 = vcmask 122976  }
 0x158   :  { %722 = vst.msk [vmem:[#allocation2 + $0x2f] sm:$0x1] %vm716_vm0, %v2909_v48  ;;  %724 = vst.msk [vmem:[#allocation2 + $0x3f] sm:$0x1] %vm716_vm0, %v2909_v48 }
 0x159   :  { %781 = vst.msk [vmem:[#allocation2 + $0x27] sm:$0xfe] %vm775_vm1, %v744_v21  ;;  %539 = vrot.lane.b32.xlu1 %v3260_v13, %s2914_s24  ;;  %vm4957_vm6 = vmmov %vm4956_vm5 }
 0x15a   :  { %566 = vst.msk [vmem:[#allocation2 + $0x2f] sm:$0xfe] %vm559_vm12, %v524_v22  ;;  %755 = vrot.lane.b32.xlu0 %v3249_v11, %s2917_s12 }
 0x15b   :  { %587 = vst.msk [vmem:[#allocation2 + $0x30] sm:$0x1] %vm580_vm13, %v2909_v48  ;;  %v610_v23 = vpop.permute.xlu1 %609  ;;  %v227_v24 = vpop.permute.xlu0 %226 }
 0x15c   :  { %646 = vst.msk [vmem:[#allocation2 + $0x31] sm:$0x7f] %vm639_vm14, %v610_v23 }
 0x15d   :  { %v794_v25 = vld [vmem:[#allocation2 + $0x20] sm:$0xff]  ;;  %261 = vst.msk [vmem:[#allocation2 + $0x48] sm:$0xff] %vm195_vm2, %v227_v24  ;;  %623 = vrot.lane.b32.xlu1 %v3568_v8, %s2915_s25 }
 0x15e   :  { %2788 = vmatprep.mubr.msk.f32.mxu0 %vm806_vm4, %v794_v25  ;;  %1434 = vst.msk [vmem:[#allocation2 + $0x20] sm:$0x1] %vm1429_vm7, %v2909_v48  ;;  %757 = vrot.lane.b32.xlu0 %v3260_v13, %s2917_s12 }
 0x15f   :  { %v797_v26 = vld [vmem:[#allocation2 + $0x38] sm:$0xff]  ;;  %281 = vst.msk [vmem:[#allocation2 + $0x4f] sm:$0x1] %vm271_vm3, %v2909_v48  ;;  %v381_v11 = vpop.permute.xlu1 %380  ;;  %v303_v27 = vpop.permute.xlu0 %302 }
 0x160   :  { %1437 = vst.msk [vmem:[#allocation2 + $0x38] sm:$0x1] %vm1429_vm7, %v2909_v48  ;;  %v795_v28 = vld [vmem:[#allocation2 + $0x28] sm:$0xff] }
 0x161   :  { %421 = vst.msk [vmem:[#allocation2 + $0x41] sm:$0x7f] %vm412_vm9, %v381_v11  ;;  %2789 = vmatmul.mubr.msk.f32.gmra.mrb[4].mxu0 %vm806_vm4, %v795_v28  ;;  %759 = vrot.lane.b32.xlu1 %v3568_v8, %s2917_s12 }
 0x162   :  { %338 = vst.msk [vmem:[#allocation2 + $0x47] sm:$0xfe] %vm330_vm8, %v303_v27  ;;  %683 = vrot.lane.b32.xlu0 %v3568_v8, %s2916_s30 }
 0x163   :  { %1435 = vst.msk [vmem:[#allocation2 + $0x28] sm:$0x1] %vm1429_vm7, %v2909_v48  ;;  %v383_v13 = vpop.permute.xlu1 %382  ;;  %v670_v29 = vpop.permute.xlu0 %669 }
 0x164   :  { %355 = vst.msk [vmem:[#allocation2 + $0x48] sm:$0x1] %vm4956_vm5, %v2909_v48 }
 0x165   :  { %422 = vst.msk [vmem:[#allocation2 + $0x49] sm:$0x7f] %vm412_vm9, %v383_v13 }
 0x166   :  { %705 = vst.msk [vmem:[#allocation2 + $0x30] sm:$0xff] %vm654_vm15, %v670_v29 }
 0x167   :  { %723 = vst.msk [vmem:[#allocation2 + $0x37] sm:$0x1] %vm716_vm0, %v2909_v48  ;;  %v746_v30 = vpop.permute.xlu1 %745  ;;  %v446_v31 = vpop.permute.xlu0 %445 }
 0x168   :  { %782 = vst.msk [vmem:[#allocation2 + $0x2f] sm:$0xfe] %vm775_vm1, %v746_v30 }
 0x169   :  { %486 = vst.msk [vmem:[#allocation2 + $0x40] sm:$0xff] %vm477_vm10, %v446_v31 }
 0x16a   :  { %503 = vst.msk [vmem:[#allocation2 + $0x47] sm:$0x1] %vm494_vm11, %v2909_v48 }
 0x16b   :  { %v448_v32 = vpop.permute.xlu1 %447  ;;  %v229_v33 = vpop.permute.xlu0 %228 }
 0x16c   :  { %487 = vst.msk [vmem:[#allocation2 + $0x48] sm:$0xff] %vm477_vm10, %v448_v32 }
 0x16d   :  { %262 = vst.msk [vmem:[#allocation2 + $0x50] sm:$0xff] %vm195_vm2, %v229_v33 }
 0x16e   :  { %504 = vst.msk [vmem:[#allocation2 + $0x4f] sm:$0x1] %vm494_vm11, %v2909_v48 }
 0x16f   :  { %282 = vst.msk [vmem:[#allocation2 + $0x57] sm:$0x1] %vm271_vm3, %v2909_v48  ;;  %v231_v34 = vpop.permute.xlu1 %230  ;;  %v528_v35 = vpop.permute.xlu0 %527  ;;  %v796_v36 = vld [vmem:[#allocation2 + $0x30] sm:$0xff] }
 0x170   :  { %263 = vst.msk [vmem:[#allocation2 + $0x58] sm:$0xff] %vm195_vm2, %v231_v34  ;;  %2791 = vmatprep.mubr.msk.f32.mxu0 %vm806_vm4, %v796_v36 }
 0x171   :  { %568 = vst.msk [vmem:[#allocation2 + $0x3f] sm:$0xfe] %vm559_vm12, %v528_v35  ;;  %2792 = vmatmul.mubr.msk.f32.gmra.mrb[6].mxu0 %vm806_vm4, %v797_v26 }
 0x172   :  { %1436 = vst.msk [vmem:[#allocation2 + $0x30] sm:$0x1] %vm1429_vm7, %v2909_v48 }
 0x173   :  { %283 = vst.msk [vmem:[#allocation2 + $0x5f] sm:$0x1] %vm271_vm3, %v2909_v48  ;;  %v530_v37 = vpop.permute.xlu1 %529  ;;  %v305_v38 = vpop.permute.xlu0 %304 }
 0x174   :  { %589 = vst.msk [vmem:[#allocation2 + $0x40] sm:$0x1] %vm580_vm13, %v2909_v48 }
 0x175   :  { %569 = vst.msk [vmem:[#allocation2 + $0x47] sm:$0xfe] %vm559_vm12, %v530_v37 }
 0x176   :  { %339 = vst.msk [vmem:[#allocation2 + $0x4f] sm:$0xfe] %vm330_vm8, %v305_v38 }
 0x177   :  { %590 = vst.msk [vmem:[#allocation2 + $0x48] sm:$0x1] %vm580_vm13, %v2909_v48  ;;  %v307_v39 = vpop.permute.xlu1 %306  ;;  %v612_v40 = vpop.permute.xlu0 %611 }
 0x178   :  { %356 = vst.msk [vmem:[#allocation2 + $0x50] sm:$0x1] %vm4956_vm5, %v2909_v48 }
 0x179   :  { %340 = vst.msk [vmem:[#allocation2 + $0x57] sm:$0xfe] %vm330_vm8, %v307_v39 }
 0x17a   :  { %647 = vst.msk [vmem:[#allocation2 + $0x41] sm:$0x7f] %vm639_vm14, %v612_v40 }
 0x17b   :  { %357 = vst.msk [vmem:[#allocation2 + $0x58] sm:$0x1] %vm4957_vm6, %v2909_v48  ;;  %v614_v41 = vpop.permute.xlu1 %613  ;;  %v385_v42 = vpop.permute.xlu0 %384  ;;  %vm4958_vm6 = vcmask 64512  }
 0x17c   :  { %648 = vst.msk [vmem:[#allocation2 + $0x49] sm:$0x7f] %vm639_vm14, %v614_v41 }
 0x17d   :  { %423 = vst.msk [vmem:[#allocation2 + $0x51] sm:$0x7f] %vm412_vm9, %v385_v42 }
 0x17f   :  { %v387_v43 = vpop.permute.xlu1 %386  ;;  %v672_v44 = vpop.permute.xlu0 %671 }
 0x180   :  { %424 = vst.msk [vmem:[#allocation2 + $0x59] sm:$0x7f] %vm412_vm9, %v387_v43 }
 0x181   :  { %706 = vst.msk [vmem:[#allocation2 + $0x40] sm:$0xff] %vm654_vm15, %v672_v44 }
 0x182   :  { %725 = vst.msk [vmem:[#allocation2 + $0x47] sm:$0x1] %vm716_vm0, %v2909_v48 }
 0x183   :  { %v674_v45 = vpop.permute.xlu1 %673  ;;  %v450_v46 = vpop.permute.xlu0 %449 }
 0x184   :  { %707 = vst.msk [vmem:[#allocation2 + $0x48] sm:$0xff] %vm654_vm15, %v674_v45 }
 0x185   :  { %488 = vst.msk [vmem:[#allocation2 + $0x50] sm:$0xff] %vm477_vm10, %v450_v46 }
 0x186   :  { %726 = vst.msk [vmem:[#allocation2 + $0x4f] sm:$0x1] %vm716_vm0, %v2909_v48 }
 0x187   :  { %505 = vst.msk [vmem:[#allocation2 + $0x57] sm:$0x1] %vm494_vm11, %v2909_v48  ;;  %v233_v49 = vpop.permute.xlu1 %232  ;;  %v748_v50 = vpop.permute.xlu0 %747 }
 0x188   :  { %264 = vst.msk [vmem:[#allocation2 + $0x60] sm:$0xff] %vm195_vm2, %v233_v49 }
 0x189   :  { %783 = vst.msk [vmem:[#allocation2 + $0x3f] sm:$0xfe] %vm775_vm1, %v748_v50 }
 0x18a   :  { %284 = vst.msk [vmem:[#allocation2 + $0x67] sm:$0x1] %vm271_vm3, %v2909_v48 }
 0x18b   :  { %v532_v51 = vpop.permute.xlu1 %531  ;;  %v452_v52 = vpop.permute.xlu0 %451 }
 0x18c   :  { %570 = vst.msk [vmem:[#allocation2 + $0x4f] sm:$0xfe] %vm559_vm12, %v532_v51 }
 0x18d   :  { %489 = vst.msk [vmem:[#allocation2 + $0x58] sm:$0xff] %vm477_vm10, %v452_v52 }
 0x18e   :  { %591 = vst.msk [vmem:[#allocation2 + $0x50] sm:$0x1] %vm580_vm13, %v2909_v48 }
 0x18f   :  { %506 = vst.msk [vmem:[#allocation2 + $0x5f] sm:$0x1] %vm494_vm11, %v2909_v48  ;;  %v235_v53 = vpop.permute.xlu1 %234  ;;  %v750_v54 = vpop.permute.xlu0 %749 }
 0x190   :  { %v798_v55 = vld [vmem:[#allocation2 + $0x40] sm:$0xff]  ;;  %265 = vst.msk [vmem:[#allocation2 + $0x68] sm:$0xff] %vm195_vm2, %v235_v53 }
 0x191   :  { %784 = vst.msk [vmem:[#allocation2 + $0x47] sm:$0xfe] %vm775_vm1, %v750_v54  ;;  %2794 = vmatprep.mubr.msk.f32.mxu0 %vm806_vm4, %v798_v55 }
 0x192   :  { %1428 = vst.msk [vmem:[#allocation2 + $0x40] sm:$0xff] %vm4958_vm6, %v2909_v48  ;;  %vm4959_vm6 = vmmov %vm4956_vm5 }
 0x193   :  { %285 = vst.msk [vmem:[#allocation2 + $0x6f] sm:$0x1] %vm271_vm3, %v2909_v48  ;;  %v534_v56 = vpop.permute.xlu1 %533  ;;  %v309_v57 = vpop.permute.xlu0 %308 }
 0x194   :  { %1438 = vst.msk [vmem:[#allocation2 + $0x40] sm:$0x1] %vm1429_vm7, %v2909_v48 }
 0x195   :  { %571 = vst.msk [vmem:[#allocation2 + $0x57] sm:$0xfe] %vm559_vm12, %v534_v56 }
 0x196   :  { %341 = vst.msk [vmem:[#allocation2 + $0x5f] sm:$0xfe] %vm330_vm8, %v309_v57 }
 0x197   :  { %592 = vst.msk [vmem:[#allocation2 + $0x58] sm:$0x1] %vm580_vm13, %v2909_v48  ;;  %v311_v58 = vpop.permute.xlu1 %310  ;;  %v616_v59 = vpop.permute.xlu0 %615 }
 0x198   :  { %358 = vst.msk [vmem:[#allocation2 + $0x60] sm:$0x1] %vm4956_vm5, %v2909_v48  ;;  %v799_v60 = vld [vmem:[#allocation2 + $0x48] sm:$0xff] }
 0x199   :  { %342 = vst.msk [vmem:[#allocation2 + $0x67] sm:$0xfe] %vm330_vm8, %v311_v58  ;;  %2795 = vmatmul.mubr.msk.f32.gmra.mrb[8].mxu0 %vm806_vm4, %v799_v60 }
 0x19a   :  { %649 = vst.msk [vmem:[#allocation2 + $0x51] sm:$0x7f] %vm639_vm14, %v616_v59 }
 0x19b   :  { %1439 = vst.msk [vmem:[#allocation2 + $0x48] sm:$0x1] %vm1429_vm7, %v2909_v48  ;;  %v618_v61 = vpop.permute.xlu1 %617  ;;  %v389_v62 = vpop.permute.xlu0 %388 }
 0x19c   :  { %359 = vst.msk [vmem:[#allocation2 + $0x68] sm:$0x1] %vm4959_vm6, %v2909_v48 }
 0x19d   :  { %650 = vst.msk [vmem:[#allocation2 + $0x59] sm:$0x7f] %vm639_vm14, %v618_v61 }
 0x19e   :  { %425 = vst.msk [vmem:[#allocation2 + $0x61] sm:$0x7f] %vm412_vm9, %v389_v62 }
 0x19f   :  { %v239_v63 = vpop.permute.xlu1 %238  ;;  %v676_v0 = vpop.permute.xlu0 %675 }
 0x1a0   :  { %267 = vst.msk [vmem:[#allocation2 + $0x78] sm:$0xff] %vm195_vm2, %v239_v63 }
 0x1a1   :  { %708 = vst.msk [vmem:[#allocation2 + $0x50] sm:$0xff] %vm654_vm15, %v676_v0 }
 0x1a2   :  { %287 = vst.msk [vmem:[#allocation2 + $0x7f] sm:$0x1] %vm271_vm3, %v2909_v48 }
 0x1a3   :  { %727 = vst.msk [vmem:[#allocation2 + $0x57] sm:$0x1] %vm716_vm0, %v2909_v48  ;;  %v454_v1 = vpop.permute.xlu1 %453  ;;  %v391_v2 = vpop.permute.xlu0 %390 }
 0x1a4   :  { %490 = vst.msk [vmem:[#allocation2 + $0x60] sm:$0xff] %vm477_vm10, %v454_v1 }
 0x1a5   :  { %426 = vst.msk [vmem:[#allocation2 + $0x69] sm:$0x7f] %vm412_vm9, %v391_v2 }
 0x1a6   :  { %507 = vst.msk [vmem:[#allocation2 + $0x67] sm:$0x1] %vm494_vm11, %v2909_v48 }
 0x1a7   :  { %v752_v3 = vpop.permute.xlu1 %751  ;;  %v678_v4 = vpop.permute.xlu0 %677 }
 0x1a8   :  { %785 = vst.msk [vmem:[#allocation2 + $0x4f] sm:$0xfe] %vm775_vm1, %v752_v3 }
 0x1a9   :  { %709 = vst.msk [vmem:[#allocation2 + $0x58] sm:$0xff] %vm654_vm15, %v678_v4 }
 0x1aa   :  { %728 = vst.msk [vmem:[#allocation2 + $0x5f] sm:$0x1] %vm716_vm0, %v2909_v48 }
 0x1ab   :  { %v315_v5 = vpop.permute.xlu1 %314  ;;  %v237_v6 = vpop.permute.xlu0 %236 }
 0x1ac   :  { %344 = vst.msk [vmem:[#allocation2 + $0x77] sm:$0xfe] %vm330_vm8, %v315_v5 }
 0x1ad   :  { %266 = vst.msk [vmem:[#allocation2 + $0x70] sm:$0xff] %vm195_vm2, %v237_v6  ;;  %vm4960_vm2 = vmmov %vm4956_vm5 }
 0x1ae   :  { %361 = vst.msk [vmem:[#allocation2 + $0x78] sm:$0x1] %vm4956_vm5, %v2909_v48 }
 0x1af   :  { %286 = vst.msk [vmem:[#allocation2 + $0x77] sm:$0x1] %vm271_vm3, %v2909_v48  ;;  %v536_v7 = vpop.permute.xlu1 %535  ;;  %v800_v9 = vld [vmem:[#allocation2 + $0x50] sm:$0xff]  ;;  %vm4961_vm3 = vcmask 228544  }
 0x1b0   :  { %v456_v8 = vpop.permute.xlu0 %455  ;;  %572 = vst.msk [vmem:[#allocation2 + $0x5f] sm:$0xfe] %vm559_vm12, %v536_v7  ;;  %2797 = vmatprep.mubr.msk.f32.mxu0 %vm806_vm4, %v800_v9 }
 0x1b1   :  { %491 = vst.msk [vmem:[#allocation2 + $0x68] sm:$0xff] %vm477_vm10, %v456_v8 }
 0x1b2   :  { %1440 = vst.msk [vmem:[#allocation2 + $0x50] sm:$0x1] %vm1429_vm7, %v2909_v48 }
 0x1b3   :  { %593 = vst.msk [vmem:[#allocation2 + $0x60] sm:$0x1] %vm580_vm13, %v2909_v48  ;;  %v313_v12 = vpop.permute.xlu1 %312 }
 0x1b4   :  { %508 = vst.msk [vmem:[#allocation2 + $0x6f] sm:$0x1] %vm494_vm11, %v2909_v48  ;;  %v754_v14 = vpop.permute.xlu0 %753 }
 0x1b5   :  { %343 = vst.msk [vmem:[#allocation2 + $0x6f] sm:$0xfe] %vm330_vm8, %v313_v12  ;;  %vm4962_vm8 = vcmask 294144  }
 0x1b6   :  { %786 = vst.msk [vmem:[#allocation2 + $0x57] sm:$0xfe] %vm775_vm1, %v754_v14 }
 0x1b7   :  { %360 = vst.msk [vmem:[#allocation2 + $0x70] sm:$0x1] %vm4960_vm2, %v2909_v48  ;;  %v538_v47 = vpop.permute.xlu1 %537 }
 0x1b8   :  { %v395_v10 = vpop.permute.xlu0 %394  ;;  %573 = vst.msk [vmem:[#allocation2 + $0x67] sm:$0xfe] %vm559_vm12, %v538_v47 }
 0x1b9   :  { %428 = vst.msk [vmem:[#allocation2 + $0x79] sm:$0x7f] %vm412_vm9, %v395_v10 }
 0x1ba   :  { %594 = vst.msk [vmem:[#allocation2 + $0x68] sm:$0x1] %vm580_vm13, %v2909_v48 }
 0x1bb   :  { %v393_v15 = vpop.permute.xlu1 %392 }
 0x1bc   :  { %v620_v16 = vpop.permute.xlu0 %619  ;;  %427 = vst.msk [vmem:[#allocation2 + $0x71] sm:$0x7f] %vm412_vm9, %v393_v15  ;;  %vm4963_vm9 = vcmask 64512  }
 0x1bd   :  { %v801_v17 = vld [vmem:[#allocation2 + $0x58] sm:$0xff]  ;;  %651 = vst.msk [vmem:[#allocation2 + $0x61] sm:$0x7f] %vm639_vm14, %v620_v16 }
 0x1be   :  { %2798 = vmatmul.mubr.msk.f32.gmra.mrb[10].mxu0 %vm806_vm4, %v801_v17  ;;  %1441 = vst.msk [vmem:[#allocation2 + $0x58] sm:$0x1] %vm1429_vm7, %v2909_v48 }
 0x1bf   :  { %v622_v18 = vpop.permute.xlu1 %621 }
 0x1c0   :  { %v460_v19 = vpop.permute.xlu0 %459  ;;  %652 = vst.msk [vmem:[#allocation2 + $0x69] sm:$0x7f] %vm639_vm14, %v622_v18 }
 0x1c1   :  { %493 = vst.msk [vmem:[#allocation2 + $0x78] sm:$0xff] %vm477_vm10, %v460_v19 }
 0x1c2   :  { %510 = vst.msk [vmem:[#allocation2 + $0x7f] sm:$0x1] %vm494_vm11, %v2909_v48 }
 0x1c3   :  { %v458_v20 = vpop.permute.xlu1 %457 }
 0x1c4   :  { %v680_v21 = vpop.permute.xlu0 %679  ;;  %492 = vst.msk [vmem:[#allocation2 + $0x70] sm:$0xff] %vm477_vm10, %v458_v20  ;;  %vm4964_vm10 = vmmov %vm4963_vm9 }
 0x1c5   :  { %710 = vst.msk [vmem:[#allocation2 + $0x60] sm:$0xff] %vm654_vm15, %v680_v21 }
 0x1c6   :  { %509 = vst.msk [vmem:[#allocation2 + $0x77] sm:$0x1] %vm494_vm11, %v2909_v48  ;;  %vm4965_vm11 = vmmov %vm4963_vm9 }
 0x1c7   :  { %729 = vst.msk [vmem:[#allocation2 + $0x67] sm:$0x1] %vm716_vm0, %v2909_v48  ;;  %v682_v22 = vpop.permute.xlu1 %681 }
 0x1c8   :  { %v542_v23 = vpop.permute.xlu0 %541  ;;  %711 = vst.msk [vmem:[#allocation2 + $0x68] sm:$0xff] %vm654_vm15, %v682_v22 }
 0x1c9   :  { %575 = vst.msk [vmem:[#allocation2 + $0x77] sm:$0xfe] %vm559_vm12, %v542_v23 }
 0x1ca   :  { %730 = vst.msk [vmem:[#allocation2 + $0x6f] sm:$0x1] %vm716_vm0, %v2909_v48 }
 0x1cb   :  { %579 = vst.msk [vmem:[#allocation2 + $0x78] sm:$0xff] %vm4961_vm3, %v2909_v48  ;;  %v540_v24 = vpop.permute.xlu1 %539 }
 0x1cc   :  { %596 = vst.msk [vmem:[#allocation2 + $0x78] sm:$0x1] %vm580_vm13, %v2909_v48  ;;  %v756_v25 = vpop.permute.xlu0 %755 }
 0x1cd   :  { %656 = vst.msk [vmem:[#allocation2 + $0x78] sm:$0xff] %vm654_vm15, %v2909_v48 }
 0x1ce   :  { %715 = vst.msk [vmem:[#allocation2 + $0x78] sm:$0xff] %vm4962_vm8, %v2909_v48 }
 0x1cf   :  { %574 = vst.msk [vmem:[#allocation2 + $0x6f] sm:$0xfe] %vm559_vm12, %v540_v24  ;;  %v624_v26 = vpop.permute.xlu1 %623  ;;  %vm4966_vm12 = vmmov %vm4963_vm9 }
 0x1d0   :  { %787 = vst.msk [vmem:[#allocation2 + $0x5f] sm:$0xfe] %vm775_vm1, %v756_v25  ;;  %v758_v11 = vpop.permute.xlu0 %757 }
 0x1d1   :  { %595 = vst.msk [vmem:[#allocation2 + $0x70] sm:$0x1] %vm580_vm13, %v2909_v48  ;;  %vm4967_vm13 = vmmov %vm4963_vm9 }
 0x1d2   :  { %732 = vst.msk [vmem:[#allocation2 + $0x7f] sm:$0x1] %vm716_vm0, %v2909_v48 }
 0x1d3   :  { %653 = vst.msk [vmem:[#allocation2 + $0x71] sm:$0x7f] %vm639_vm14, %v624_v26  ;;  %v760_v27 = vpop.permute.xlu1 %759  ;;  %vm4968_vm14 = vmmov %vm4963_vm9 }
 0x1d4   :  { %788 = vst.msk [vmem:[#allocation2 + $0x67] sm:$0xfe] %vm775_vm1, %v758_v11  ;;  %v684_v28 = vpop.permute.xlu0 %683 }
 0x1d5   :  { %712 = vst.msk [vmem:[#allocation2 + $0x70] sm:$0xff] %vm654_vm15, %v684_v28  ;;  %vm4969_vm15 = vmmov %vm4963_vm9 }
 0x1d6   :  { %731 = vst.msk [vmem:[#allocation2 + $0x77] sm:$0x1] %vm716_vm0, %v2909_v48  ;;  %vm4970_vm0 = vmmov %vm4963_vm9 }
 0x1d7   :  { %v802_v13 = vld [vmem:[#allocation2 + $0x60] sm:$0xff]  ;;  %789 = vst.msk [vmem:[#allocation2 + $0x6f] sm:$0xfe] %vm775_vm1, %v760_v27  ;;  %vm4971_vm1 = vmmov %vm4970_vm0 }
 0x1d8   :  { %2800 = vmatprep.mubr.msk.f32.mxu0 %vm806_vm4, %v802_v13  ;;  %1442 = vst.msk [vmem:[#allocation2 + $0x60] sm:$0x1] %vm1429_vm7, %v2909_v48  ;;  %vm4974_vm6 = vmmov %vm4970_vm0 }
 0x1d9   :  { %v805_v29 = vld [vmem:[#allocation2 + $0x78] sm:$0xff]  ;;  %vm4975_vm5 = vmmov %vm4970_vm0 }
 0x1da   :  { %1445 = vst.msk [vmem:[#allocation2 + $0x78] sm:$0x1] %vm1429_vm7, %v2909_v48  ;;  %vm4976_vm2 = vmmov %vm4970_vm0 }
 0x1db   :  { %v803_v30 = vld [vmem:[#allocation2 + $0x68] sm:$0xff]  ;;  %vm4977_vm3 = vmmov %vm4970_vm0 }
 0x1dc   :  { %2801 = vmatmul.mubr.msk.f32.gmra.mrb[12].mxu0 %vm806_vm4, %v803_v30  ;;  %1443 = vst.msk [vmem:[#allocation2 + $0x68] sm:$0x1] %vm1429_vm7, %v2909_v48  ;;  %vm4978_vm8 = vmmov %vm4970_vm0 }
 0x1de   :  { %v804_v31 = vld [vmem:[#allocation2 + $0x70] sm:$0xff] }
 0x1df   :  { %2803 = vmatprep.mubr.msk.f32.mxu0 %vm806_vm4, %v804_v31  ;;  %1444 = vst.msk [vmem:[#allocation2 + $0x70] sm:$0x1] %vm1429_vm7, %v2909_v48  ;;  %vm4973_vm7 = vmmov %vm4970_vm0 }
 0x1e0   :  { %2804 = vmatmul.mubr.msk.f32.gmra.mrb[14].mxu0 %vm806_vm4, %v805_v29  ;;  %vm4972_vm4 = vmmov %vm4970_vm0 }
 0x1f3   :  { %v3823_v32 = vpop.f32.mrb[0].mxu0 }
 0x1f4   :  { %v1014_v33 = vsel %vm4963_vm9, %v3823_v32, 0.0  ;;  %v1150_v34 = vmul.f32 %v3823_v32, %v3823_v32  ;;  %v3829_v35 = vpop.f32.mrb[1].mxu0  ;;  %vm4979_vm9 = vmmov %vm4970_vm0 }
 0x1f5   :  { %v1015_v36 = vrot.slane %v1014_v33, 4  ;;  %v1007_v37 = vsel %vm4964_vm10, %v3829_v35, 0.0  ;;  %v1149_v38 = vmul.f32 %v3829_v35, %v3829_v35  ;;  %vm4980_vm10 = vmmov %vm4970_vm0 }
 0x1f6   :  { %v1172_v39 = vsel %vm4965_vm11, %v1150_v34, 0.0  ;;  %v1008_v40 = vrot.slane %v1007_v37, 4  ;;  %vm4981_vm11 = vmmov %vm4970_vm0 }
 0x1f7   :  { %v1016_v41 = vadd.f32 %v1015_v36, %v1014_v33  ;;  %v1173_v42 = vrot.slane %v1172_v39, 4  ;;  %v1165_v43 = vsel %vm4966_vm12, %v1149_v38, 0.0  ;;  %vm4982_vm12 = vmmov %vm4970_vm0 }
 0x1f8   :  { %v1009_v44 = vadd.f32 %v1008_v40, %v1007_v37  ;;  %v1166_v45 = vrot.slane %v1165_v43, 4 }
 0x1f9   :  { %v1017_v46 = vrot.slane %v1016_v41, 2  ;;  %v1174_v49 = vadd.f32 %v1173_v42, %v1172_v39 }
 0x1fa   :  { %v1010_v50 = vrot.slane %v1009_v44, 2  ;;  %v1167_v51 = vadd.f32 %v1166_v45, %v1165_v43 }
 0x1fb   :  { %v1018_v52 = vadd.f32 %v1017_v46, %v1016_v41  ;;  %v1175_v53 = vrot.slane %v1174_v49, 2 }
 0x1fc   :  { %v1011_v54 = vadd.f32 %v1010_v50, %v1009_v44  ;;  %v1168_v55 = vrot.slane %v1167_v51, 2 }
 0x1fd   :  { %v1019_v56 = vrot.slane %v1018_v52, 1  ;;  %v1176_v57 = vadd.f32 %v1175_v53, %v1174_v49 }
 0x1fe   :  { %v1012_v58 = vrot.slane %v1011_v54, 1  ;;  %v1169_v59 = vadd.f32 %v1168_v55, %v1167_v51 }
 0x1ff   :  { %v1020_v60 = vadd.f32 %v1019_v56, %v1018_v52  ;;  %v1177_v61 = vrot.slane %v1176_v57, 1 }
 0x200   :  { %v1013_v62 = vadd.f32 %v1012_v58, %v1011_v54  ;;  %v1170_v63 = vrot.slane %v1169_v59, 1 }
 0x201   :  { %v1120_v0 = vsel %vm4967_vm13, %v1020_v60, 0.0  ;;  %v1178_v1 = vadd.f32 %v1177_v61, %v1176_v57  ;;  %vm4983_vm13 = vmmov %vm4970_vm0 }
 0x202   :  { %v1119_v2 = vsel %vm4968_vm14, %v1013_v62, 0.0  ;;  %v1171_v3 = vadd.f32 %v1170_v63, %v1169_v59  ;;  %vm4984_vm14 = vmmov %vm4970_vm0 }
 0x203   :  { %v1278_v4 = vsel %vm4969_vm15, %v1178_v1, 0.0  ;;  %v1121_v5 = vadd.f32 %v1120_v0, %v1119_v2  ;;  %vm4985_vm15 = vmmov %vm4970_vm0 }
 0x204   :  { %v1277_v6 = vsel %vm4970_vm0, %v1171_v3, 0.0 }
 0x205   :  { %v1279_v7 = vadd.f32 %v1278_v4, %v1277_v6 }
 0x217   :  { %v3841_v8 = vpop.f32.mrb[2].mxu0 }
 0x218   :  { %v1028_v9 = vsel %vm4971_vm1, %v3841_v8, 0.0  ;;  %v1152_v12 = vmul.f32 %v3841_v8, %v3841_v8  ;;  %v3847_v14 = vpop.f32.mrb[3].mxu0  ;;  %vm4986_vm1 = vmmov %vm4970_vm0 }
 0x219   :  { %v1029_v47 = vrot.slane %v1028_v9, 4  ;;  %v1021_v10 = vsel %vm4972_vm4, %v3847_v14, 0.0  ;;  %v1151_v15 = vmul.f32 %v3847_v14, %v3847_v14  ;;  %vm4987_vm4 = vmmov %vm4970_vm0 }
 0x21a   :  { %v1186_v16 = vsel %vm4973_vm7, %v1152_v12, 0.0  ;;  %v1022_v17 = vrot.slane %v1021_v10, 4  ;;  %vm4988_vm7 = vmmov %vm4970_vm0 }
 0x21b   :  { %v1030_v18 = vadd.f32 %v1029_v47, %v1028_v9  ;;  %v1187_v19 = vrot.slane %v1186_v16, 4  ;;  %v1179_v20 = vsel %vm4974_vm6, %v1151_v15, 0.0  ;;  %vm4989_vm6 = vmmov %vm4970_vm0 }
 0x21c   :  { %v1023_v21 = vadd.f32 %v1022_v17, %v1021_v10  ;;  %v1180_v22 = vrot.slane %v1179_v20, 4 }
 0x21d   :  { %v1031_v23 = vrot.slane %v1030_v18, 2  ;;  %v1188_v24 = vadd.f32 %v1187_v19, %v1186_v16 }
 0x21e   :  { %v1024_v25 = vrot.slane %v1023_v21, 2  ;;  %v1181_v26 = vadd.f32 %v1180_v22, %v1179_v20 }
 0x21f   :  { %v1032_v11 = vadd.f32 %v1031_v23, %v1030_v18  ;;  %v1189_v27 = vrot.slane %v1188_v24, 2 }
 0x220   :  { %v1025_v28 = vadd.f32 %v1024_v25, %v1023_v21  ;;  %v1182_v13 = vrot.slane %v1181_v26, 2 }
 0x221   :  { %v1033_v29 = vrot.slane %v1032_v11, 1  ;;  %v1190_v30 = vadd.f32 %v1189_v27, %v1188_v24 }
 0x222   :  { %v1026_v31 = vrot.slane %v1025_v28, 1  ;;  %v1183_v33 = vadd.f32 %v1182_v13, %v1181_v26 }
 0x223   :  { %v1191_v34 = vrot.slane %v1190_v30, 1  ;;  %v1034_v36 = vadd.f32 %v1033_v29, %v1032_v11 }
 0x224   :  { %v1027_v37 = vadd.f32 %v1026_v31, %v1025_v28  ;;  %v1184_v38 = vrot.slane %v1183_v33, 1 }
 0x225   :  { %v1192_v39 = vadd.f32 %v1191_v34, %v1190_v30  ;;  %v1124_v43 = vsel %vm4976_vm2, %v1034_v36, 0.0  ;;  %vm4991_vm2 = vmmov %vm4970_vm0 }
 0x226   :  { %v1122_v40 = vsel %vm4975_vm5, %v1027_v37, 0.0  ;;  %v1185_v41 = vadd.f32 %v1184_v38, %v1183_v33  ;;  %vm4990_vm5 = vmmov %vm4970_vm0 }
 0x227   :  { %v1123_v42 = vadd.f32 %v1122_v40, %v1121_v5  ;;  %v1282_v49 = vsel %vm4978_vm8, %v1192_v39, 0.0  ;;  %vm4993_vm8 = vmmov %vm4970_vm0 }
 0x228   :  { %v1280_v44 = vsel %vm4977_vm3, %v1185_v41, 0.0  ;;  %vm4992_vm3 = vmmov %vm4970_vm0 }
 0x229   :  { %v1281_v45 = vadd.f32 %v1280_v44, %v1279_v7  ;;  %v1125_v46 = vadd.f32 %v1124_v43, %v1123_v42 }
 0x22b   :  { %v1283_v50 = vadd.f32 %v1282_v49, %v1281_v45 }
 0x234   :  { %v3859_v51 = vpop.f32.mrb[4].mxu0 }
 0x235   :  { %v1042_v52 = vsel %vm4979_vm9, %v3859_v51, 0.0  ;;  %v1154_v53 = vmul.f32 %v3859_v51, %v3859_v51  ;;  %v3865_v54 = vpop.f32.mrb[5].mxu0  ;;  %vm4994_vm9 = vmmov %vm4970_vm0 }
 0x236   :  { %v1043_v55 = vrot.slane %v1042_v52, 4  ;;  %v1035_v56 = vsel %vm4980_vm10, %v3865_v54, 0.0  ;;  %v1153_v57 = vmul.f32 %v3865_v54, %v3865_v54  ;;  %vm4995_vm10 = vmmov %vm4970_vm0 }
 0x237   :  { %v1200_v58 = vsel %vm4981_vm11, %v1154_v53, 0.0  ;;  %v1036_v59 = vrot.slane %v1035_v56, 4  ;;  %vm4996_vm11 = vmmov %vm4970_vm0 }
 0x238   :  { %v1044_v60 = vadd.f32 %v1043_v55, %v1042_v52  ;;  %v1201_v61 = vrot.slane %v1200_v58, 4  ;;  %v1193_v62 = vsel %vm4982_vm12, %v1153_v57, 0.0  ;;  %vm4997_vm12 = vmmov %vm4970_vm0 }
 0x239   :  { %v1037_v63 = vadd.f32 %v1036_v59, %v1035_v56  ;;  %v1194_v0 = vrot.slane %v1193_v62, 4 }
 0x23a   :  { %v1045_v1 = vrot.slane %v1044_v60, 2  ;;  %v1202_v2 = vadd.f32 %v1201_v61, %v1200_v58 }
 0x23b   :  { %v1038_v3 = vrot.slane %v1037_v63, 2  ;;  %v1195_v4 = vadd.f32 %v1194_v0, %v1193_v62 }
 0x23c   :  { %v1046_v5 = vadd.f32 %v1045_v1, %v1044_v60  ;;  %v1203_v6 = vrot.slane %v1202_v2, 2 }
 0x23d   :  { %v1039_v7 = vadd.f32 %v1038_v3, %v1037_v63  ;;  %v1196_v9 = vrot.slane %v1195_v4, 2 }
 0x23e   :  { %v1047_v12 = vrot.slane %v1046_v5, 1  ;;  %v1204_v47 = vadd.f32 %v1203_v6, %v1202_v2 }
 0x23f   :  { %v1040_v10 = vrot.slane %v1039_v7, 1  ;;  %v1197_v15 = vadd.f32 %v1196_v9, %v1195_v4 }
 0x240   :  { %v1205_v16 = vrot.slane %v1204_v47, 1  ;;  %v1048_v17 = vadd.f32 %v1047_v12, %v1046_v5 }
 0x241   :  { %v1041_v18 = vadd.f32 %v1040_v10, %v1039_v7  ;;  %v1198_v19 = vrot.slane %v1197_v15, 1 }
 0x242   :  { %v1206_v20 = vadd.f32 %v1205_v16, %v1204_v47  ;;  %v1128_v24 = vsel %vm4984_vm14, %v1048_v17, 0.0  ;;  %vm4999_vm14 = vmmov %vm4970_vm0 }
 0x243   :  { %v1126_v21 = vsel %vm4983_vm13, %v1041_v18, 0.0  ;;  %v1199_v22 = vadd.f32 %v1198_v19, %v1197_v15  ;;  %vm4998_vm13 = vmmov %vm4970_vm0 }
 0x244   :  { %v1127_v23 = vadd.f32 %v1126_v21, %v1125_v46  ;;  %v3876_v26 = vpop.f32.mrb[6].mxu0  ;;  %v1286_v30 = vsel %vm4986_vm1, %v1206_v20, 0.0  ;;  %vm5001_vm1 = vmmov %vm4970_vm0 }
 0x245   :  { %v1284_v25 = vsel %vm4985_vm15, %v1199_v22, 0.0  ;;  %v1056_v27 = vsel %vm4970_vm0, %v3876_v26, 0.0  ;;  %v1156_v28 = vmul.f32 %v3876_v26, %v3876_v26  ;;  %v3882_v13 = vpop.f32.mrb[7].mxu0  ;;  %vm5000_vm15 = vmmov %vm4970_vm0 }
 0x246   :  { %v1285_v11 = vadd.f32 %v1284_v25, %v1283_v50  ;;  %v1129_v29 = vadd.f32 %v1128_v24, %v1127_v23  ;;  %v1057_v31 = vrot.slane %v1056_v27, 4  ;;  %v1049_v33 = vsel %vm4987_vm4, %v3882_v13, 0.0  ;;  %vm5002_vm4 = vmmov %vm4970_vm0 }
 0x247   :  { %v1155_v34 = vmul.f32 %v3882_v13, %v3882_v13  ;;  %v1214_v36 = vsel %vm4988_vm7, %v1156_v28, 0.0  ;;  %v1050_v37 = vrot.slane %v1049_v33, 4  ;;  %vm5003_vm7 = vmmov %vm4970_vm0 }
 0x248   :  { %v1287_v38 = vadd.f32 %v1286_v30, %v1285_v11  ;;  %v1058_v39 = vadd.f32 %v1057_v31, %v1056_v27  ;;  %v1215_v40 = vrot.slane %v1214_v36, 4 }
 0x249   :  { %v1207_v41 = vsel %vm4989_vm6, %v1155_v34, 0.0  ;;  %v1051_v42 = vadd.f32 %v1050_v37, %v1049_v33  ;;  %vm5004_vm6 = vmmov %vm4970_vm0 }
 0x24a   :  { %v1208_v43 = vrot.slane %v1207_v41, 4  ;;  %v1059_v44 = vrot.slane %v1058_v39, 2  ;;  %v1216_v45 = vadd.f32 %v1215_v40, %v1214_v36 }
 0x24b   :  { %v1052_v46 = vrot.slane %v1051_v42, 2 }
 0x24c   :  { %v1209_v49 = vadd.f32 %v1208_v43, %v1207_v41  ;;  %v1060_v50 = vadd.f32 %v1059_v44, %v1058_v39  ;;  %v1217_v52 = vrot.slane %v1216_v45, 2 }
 0x24d   :  { %v1053_v53 = vadd.f32 %v1052_v46, %v1051_v42 }
 0x24e   :  { %v1210_v55 = vrot.slane %v1209_v49, 2  ;;  %v1061_v56 = vrot.slane %v1060_v50, 1  ;;  %v1218_v57 = vadd.f32 %v1217_v52, %v1216_v45 }
 0x24f   :  { %v1054_v58 = vrot.slane %v1053_v53, 1 }
 0x250   :  { %v1211_v59 = vadd.f32 %v1210_v55, %v1209_v49  ;;  %v1062_v60 = vadd.f32 %v1061_v56, %v1060_v50  ;;  %v1219_v61 = vrot.slane %v1218_v57, 1 }
 0x251   :  { %v1055_v62 = vadd.f32 %v1054_v58, %v1053_v53 }
 0x252   :  { %v1212_v63 = vrot.slane %v1211_v59, 1  ;;  %v1220_v0 = vadd.f32 %v1219_v61, %v1218_v57  ;;  %v1132_v1 = vsel %vm4990_vm5, %v1062_v60, 0.0  ;;  %vm5005_vm5 = vmmov %vm4970_vm0 }
 0x253   :  { %v1130_v2 = vsel %vm4991_vm2, %v1055_v62, 0.0  ;;  %vm5006_vm2 = vmmov %vm4970_vm0 }
 0x254   :  { %v1213_v3 = vadd.f32 %v1212_v63, %v1211_v59  ;;  %v1131_v4 = vadd.f32 %v1130_v2, %v1129_v29  ;;  %v1290_v5 = vsel %vm4992_vm3, %v1220_v0, 0.0  ;;  %vm5007_vm3 = vmmov %vm4970_vm0 }
 0x256   :  { %v1288_v6 = vsel %vm4993_vm8, %v1213_v3, 0.0  ;;  %v3895_v7 = vadd.f32 %v1132_v1, %v1131_v4  ;;  %vm5008_vm8 = vmmov %vm4970_vm0 }
 0x257   :  { %v1289_v9 = vadd.f32 %v1288_v6, %v1287_v38 }
 0x258   :  { %v3900_v47 = vmul.f32 0.015625, %v3895_v7 }
 0x259   :  { %v3897_v12 = vadd.f32 %v1290_v5, %v1289_v9 }
 0x25a   :  { %v3907_v15 = vmul.f32 %v3900_v47, %v3900_v47 }
 0x25b   :  { %v3903_v10 = vmul.f32 0.015625, %v3897_v12 }
 0x25d   :  { %v1313_v16 = vsub.f32 %v3903_v10, %v3907_v15 }
 0x26c   :  { %v3911_v17 = vpop.f32.mrb[8].mxu0 }
 0x26d   :  { %v1070_v18 = vsel %vm4994_vm9, %v3911_v17, 0.0  ;;  %v1158_v19 = vmul.f32 %v3911_v17, %v3911_v17  ;;  %v3917_v20 = vpop.f32.mrb[9].mxu0  ;;  %vm5009_vm9 = vmmov %vm4970_vm0 }
 0x26e   :  { %v1071_v21 = vrot.slane %v1070_v18, 4  ;;  %v1063_v22 = vsel %vm4995_vm10, %v3917_v20, 0.0  ;;  %v1157_v23 = vmul.f32 %v3917_v20, %v3917_v20  ;;  %vm5010_vm10 = vmmov %vm4970_vm0 }
 0x26f   :  { %v1228_v24 = vsel %vm4996_vm11, %v1158_v19, 0.0  ;;  %v1064_v25 = vrot.slane %v1063_v22, 4  ;;  %vm5011_vm11 = vmmov %vm4970_vm0 }
 0x270   :  { %v1072_v11 = vadd.f32 %v1071_v21, %v1070_v18  ;;  %v1229_v27 = vrot.slane %v1228_v24, 4  ;;  %v1221_v28 = vsel %vm4997_vm12, %v1157_v23, 0.0  ;;  %vm5012_vm12 = vmmov %vm4970_vm0 }
 0x271   :  { %v1065_v29 = vadd.f32 %v1064_v25, %v1063_v22  ;;  %v1222_v30 = vrot.slane %v1221_v28, 4 }
 0x272   :  { %v1073_v31 = vrot.slane %v1072_v11, 2  ;;  %v1230_v33 = vadd.f32 %v1229_v27, %v1228_v24 }
 0x273   :  { %v1066_v34 = vrot.slane %v1065_v29, 2  ;;  %v1223_v36 = vadd.f32 %v1222_v30, %v1221_v28 }
 0x274   :  { %v1074_v37 = vadd.f32 %v1073_v31, %v1072_v11  ;;  %v1231_v38 = vrot.slane %v1230_v33, 2 }
 0x275   :  { %v1067_v39 = vadd.f32 %v1066_v34, %v1065_v29  ;;  %v1224_v40 = vrot.slane %v1223_v36, 2 }
 0x276   :  { %v1075_v41 = vrot.slane %v1074_v37, 1  ;;  %v1232_v42 = vadd.f32 %v1231_v38, %v1230_v33 }
 0x277   :  { %v1068_v43 = vrot.slane %v1067_v39, 1  ;;  %v1225_v44 = vadd.f32 %v1224_v40, %v1223_v36 }
 0x278   :  { %v1076_v45 = vadd.f32 %v1075_v41, %v1074_v37  ;;  %v1233_v46 = vrot.slane %v1232_v42, 1 }
 0x279   :  { %v1069_v49 = vadd.f32 %v1068_v43, %v1067_v39  ;;  %v1226_v50 = vrot.slane %v1225_v44, 1 }
 0x27a   :  { %v1135_v52 = vsel %vm4998_vm13, %v1076_v45, 0.0  ;;  %v1234_v53 = vadd.f32 %v1233_v46, %v1232_v42  ;;  %vm5013_vm13 = vmmov %vm4970_vm0 }
 0x27b   :  { %v1134_v55 = vsel %vm4999_vm14, %v1069_v49, 0.0  ;;  %v1227_v56 = vadd.f32 %v1226_v50, %v1225_v44  ;;  %vm5014_vm14 = vmmov %vm4970_vm0 }
 0x27c   :  { %v1293_v57 = vsel %vm5000_vm15, %v1234_v53, 0.0  ;;  %v1136_v58 = vadd.f32 %v1135_v52, %v1134_v55  ;;  %vm5015_vm15 = vmmov %vm4970_vm0 }
 0x27d   :  { %v1292_v59 = vsel %vm4970_vm0, %v1227_v56, 0.0 }
 0x27e   :  { %v1294_v60 = vadd.f32 %v1293_v57, %v1292_v59 }
 0x291   :  { %v3929_v61 = vpop.f32.mrb[10].mxu0 }
 0x292   :  { %v1084_v62 = vsel %vm5001_vm1, %v3929_v61, 0.0  ;;  %v1160_v63 = vmul.f32 %v3929_v61, %v3929_v61  ;;  %v3935_v0 = vpop.f32.mrb[11].mxu0  ;;  %vm5016_vm1 = vmmov %vm4970_vm0 }
 0x293   :  { %v1085_v1 = vrot.slane %v1084_v62, 4  ;;  %v1077_v2 = vsel %vm5002_vm4, %v3935_v0, 0.0  ;;  %v1159_v3 = vmul.f32 %v3935_v0, %v3935_v0  ;;  %vm5017_vm4 = vmmov %vm4970_vm0 }
 0x294   :  { %v1242_v4 = vsel %vm5003_vm7, %v1160_v63, 0.0  ;;  %v1078_v5 = vrot.slane %v1077_v2, 4  ;;  %vm5018_vm7 = vmmov %vm4970_vm0 }
 0x295   :  { %v1086_v6 = vadd.f32 %v1085_v1, %v1084_v62  ;;  %v1243_v9 = vrot.slane %v1242_v4, 4  ;;  %v1235_v18 = vsel %vm5004_vm6, %v1159_v3, 0.0  ;;  %vm5019_vm6 = vmmov %vm4970_vm0 }
 0x296   :  { %v1079_v19 = vadd.f32 %v1078_v5, %v1077_v2  ;;  %v1236_v21 = vrot.slane %v1235_v18, 4 }
 0x297   :  { %v1087_v22 = vrot.slane %v1086_v6, 2  ;;  %v1244_v23 = vadd.f32 %v1243_v9, %v1242_v4 }
 0x298   :  { %v1080_v24 = vrot.slane %v1079_v19, 2  ;;  %v1237_v25 = vadd.f32 %v1236_v21, %v1235_v18 }
 0x299   :  { %v1088_v11 = vadd.f32 %v1087_v22, %v1086_v6  ;;  %v1245_v27 = vrot.slane %v1244_v23, 2 }
 0x29a   :  { %v1081_v28 = vadd.f32 %v1080_v24, %v1079_v19  ;;  %v1238_v29 = vrot.slane %v1237_v25, 2 }
 0x29b   :  { %v1089_v30 = vrot.slane %v1088_v11, 1  ;;  %v1246_v31 = vadd.f32 %v1245_v27, %v1244_v23 }
 0x29c   :  { %v1082_v33 = vrot.slane %v1081_v28, 1  ;;  %v1239_v34 = vadd.f32 %v1238_v29, %v1237_v25 }
 0x29d   :  { %v1247_v36 = vrot.slane %v1246_v31, 1  ;;  %v1090_v37 = vadd.f32 %v1089_v30, %v1088_v11 }
 0x29e   :  { %v1083_v38 = vadd.f32 %v1082_v33, %v1081_v28  ;;  %v1240_v39 = vrot.slane %v1239_v34, 1 }
 0x29f   :  { %v1248_v40 = vadd.f32 %v1247_v36, %v1246_v31  ;;  %v1139_v44 = vsel %vm5006_vm2, %v1090_v37, 0.0  ;;  %vm5021_vm2 = vmmov %vm4970_vm0 }
 0x2a0   :  { %v1137_v41 = vsel %vm5005_vm5, %v1083_v38, 0.0  ;;  %v1241_v42 = vadd.f32 %v1240_v39, %v1239_v34  ;;  %vm5020_vm5 = vmmov %vm4970_vm0 }
 0x2a1   :  { %v1138_v43 = vadd.f32 %v1137_v41, %v1136_v58  ;;  %v1297_v50 = vsel %vm5008_vm8, %v1248_v40, 0.0  ;;  %vm5023_vm8 = vmmov %vm4970_vm0 }
 0x2a2   :  { %v1295_v45 = vsel %vm5007_vm3, %v1241_v42, 0.0  ;;  %vm5022_vm3 = vmmov %vm4970_vm0 }
 0x2a3   :  { %v1296_v46 = vadd.f32 %v1295_v45, %v1294_v60  ;;  %v1140_v49 = vadd.f32 %v1139_v44, %v1138_v43 }
 0x2a5   :  { %v1298_v52 = vadd.f32 %v1297_v50, %v1296_v46 }
 0x2af   :  { %v3947_v53 = vpop.f32.mrb[12].mxu0 }
 0x2b0   :  { %v1098_v55 = vsel %vm5009_vm9, %v3947_v53, 0.0  ;;  %v1162_v56 = vmul.f32 %v3947_v53, %v3947_v53  ;;  %v3953_v57 = vpop.f32.mrb[13].mxu0  ;;  %vm5024_vm9 = vmmov %vm4970_vm0 }
 0x2b1   :  { %v1099_v58 = vrot.slane %v1098_v55, 4  ;;  %v1091_v59 = vsel %vm5010_vm10, %v3953_v57, 0.0  ;;  %v1161_v60 = vmul.f32 %v3953_v57, %v3953_v57 }
 0x2b2   :  { %v1256_v62 = vsel %vm5011_vm11, %v1162_v56, 0.0  ;;  %v1092_v63 = vrot.slane %v1091_v59, 4  ;;  %vm5025_vm11 = vmmov %vm4970_vm0 }
 0x2b3   :  { %v1100_v1 = vadd.f32 %v1099_v58, %v1098_v55  ;;  %v1257_v2 = vrot.slane %v1256_v62, 4  ;;  %v1249_v3 = vsel %vm5012_vm12, %v1161_v60, 0.0  ;;  %v3961_v18 = vpop.f32.mrb[14].mxu0  ;;  %vm5026_vm12 = vmmov %vm4970_vm0 }
 0x2b4   :  { %v1093_v4 = vadd.f32 %v1092_v63, %v1091_v59  ;;  %v1250_v5 = vrot.slane %v1249_v3, 4  ;;  %v1112_v22 = vsel %vm5013_vm13, %v3961_v18, 0.0  ;;  %v1164_v23 = vmul.f32 %v3961_v18, %v3961_v18  ;;  %v3967_v24 = vpop.f32.mrb[15].mxu0  ;;  %vm5027_vm13 = vmmov %vm4970_vm0 }
 0x2b5   :  { %v1101_v6 = vrot.slane %v1100_v1, 2  ;;  %v1258_v9 = vadd.f32 %v1257_v2, %v1256_v62  ;;  %v1113_v27 = vrot.slane %v1112_v22, 4  ;;  %v1105_v28 = vsel %vm5014_vm14, %v3967_v24, 0.0 }
 0x2b6   :  { %v1094_v19 = vrot.slane %v1093_v4, 2  ;;  %v1251_v21 = vadd.f32 %v1250_v5, %v1249_v3  ;;  %v1270_v31 = vsel %vm5015_vm15, %v1164_v23, 0.0  ;;  %v1106_v33 = vrot.slane %v1105_v28, 4 }
 0x2b7   :  { %v1102_v25 = vadd.f32 %v1101_v6, %v1100_v1  ;;  %v1259_v11 = vrot.slane %v1258_v9, 2  ;;  %v1114_v37 = vadd.f32 %v1113_v27, %v1112_v22  ;;  %v1271_v38 = vrot.slane %v1270_v31, 4 }
 0x2b8   :  { %v1095_v29 = vadd.f32 %v1094_v19, %v1093_v4  ;;  %v1252_v30 = vrot.slane %v1251_v21, 2  ;;  %v1107_v41 = vadd.f32 %v1106_v33, %v1105_v28  ;;  %v1163_v42 = vmul.f32 %v3967_v24, %v3967_v24 }
 0x2b9   :  { %v1103_v34 = vrot.slane %v1102_v25, 1  ;;  %v1260_v36 = vadd.f32 %v1259_v11, %v1258_v9  ;;  %v1115_v45 = vrot.slane %v1114_v37, 2  ;;  %v1272_v46 = vadd.f32 %v1271_v38, %v1270_v31 }
 0x2ba   :  { %v1096_v39 = vrot.slane %v1095_v29, 1  ;;  %v1253_v40 = vadd.f32 %v1252_v30, %v1251_v21  ;;  %v1108_v56 = vrot.slane %v1107_v41, 2  ;;  %v1263_v58 = vsel %vm4970_vm0, %v1163_v42, 0.0 }
 0x2bb   :  { %v1104_v43 = vadd.f32 %v1103_v34, %v1102_v25  ;;  %v1261_v44 = vrot.slane %v1260_v36, 1  ;;  %v1116_v60 = vadd.f32 %v1115_v45, %v1114_v37  ;;  %v1273_v62 = vrot.slane %v1272_v46, 2 }
 0x2bc   :  { %v1097_v50 = vadd.f32 %v1096_v39, %v1095_v29  ;;  %v1254_v55 = vrot.slane %v1253_v40, 1  ;;  %v1109_v2 = vadd.f32 %v1108_v56, %v1107_v41  ;;  %v1264_v3 = vrot.slane %v1263_v58, 4 }
 0x2bd   :  { %v1262_v59 = vadd.f32 %v1261_v44, %v1260_v36  ;;  %v1143_v4 = vsel %vm5017_vm4, %v1104_v43, 0.0  ;;  %v1117_v6 = vrot.slane %v1116_v60, 1  ;;  %v1274_v19 = vadd.f32 %v1273_v62, %v1272_v46 }
 0x2be   :  { %v1141_v63 = vsel %vm5016_vm1, %v1097_v50, 0.0  ;;  %v1255_v1 = vadd.f32 %v1254_v55, %v1253_v40  ;;  %v1110_v21 = vrot.slane %v1109_v2, 1  ;;  %v1265_v22 = vadd.f32 %v1264_v3, %v1263_v58 }
 0x2bf   :  { %v1142_v5 = vadd.f32 %v1141_v63, %v1140_v49  ;;  %v1301_v11 = vsel %vm5019_vm6, %v1262_v59, 0.0  ;;  %v1118_v27 = vadd.f32 %v1117_v6, %v1116_v60  ;;  %v1325_v31 = vlaneseq }
 0x2c0   :  { %v1299_v9 = vsel %vm5018_vm7, %v1255_v1, 0.0  ;;  %v1111_v28 = vadd.f32 %v1110_v21, %v1109_v2  ;;  %v1266_v29 = vrot.slane %v1265_v22, 2  ;;  %v1275_v33 = vrot.slane %v1274_v19, 1 }
 0x2c1   :  { %v1300_v23 = vadd.f32 %v1299_v9, %v1298_v52  ;;  %v1144_v25 = vadd.f32 %v1143_v4, %v1142_v5  ;;  %v1147_v37 = vsel %vm5021_vm2, %v1118_v27, 0.0  ;;  %v3981_v40 = vand.u32 127, %v1325_v31 }
 0x2c2   :  { %v1145_v34 = vsel %vm5020_vm5, %v1111_v28, 0.0  ;;  %v1267_v36 = vadd.f32 %v1266_v29, %v1265_v22  ;;  %v1276_v52 = vadd.f32 %v1275_v33, %v1274_v19  ;;  %v1315_v42 = vsel %vm5022_vm3, %v3895_v7, 0.0  ;;  %v1005_v28 = vld [vmem:[%s4946_s3] sm:$0x1]  ;;  %s2919_s3 = smov 48  }
 0x2c3   :  { %v1302_v30 = vadd.f32 %v1301_v11, %v1300_v23  ;;  %v1146_v49 = vadd.f32 %v1145_v34, %v1144_v25  ;;  %vm4955_vm10 = vcmp.lt.s32.totalorder %v3981_v40, 4  ;;  %v1319_v62 = vsel %vm5026_vm12, %v3897_v12, 0.0  ;;  %v1004_v23 = vld [vmem:[%s4945_s2] sm:$0x1]  ;;  %s2918_s2 = smov 40  }
 0x2c4   :  { %v1268_v38 = vrot.slane %v1267_v36, 1  ;;  %v1305_v55 = vsel %vm5025_vm11, %v1276_v52, 0.0  ;;  %v1332_v5 = vadd.f32 1e-05, %v1313_v16  ;;  %v1349_v21 = vshrl.u32 %v1325_v31, 7 }
 0x2c5   :  { %v1148_v39 = vadd.f32 %v1147_v37, %v1146_v49  ;;  %vm1461_vm14 = vcmask 130112   ;;  %vm1446_vm15 = vcmask 63488   ;;  %vm1534_vm0 = vcmask 195712  }
 0x2c6   :  { %v1269_v41 = vadd.f32 %v1268_v38, %v1267_v36  ;;  %2896 = vrsqrt.f32 %v1332_v5  ;;  %v4003_v11 = vsub.s32 0, %v1349_v21  ;;  %1462 = vst.msk [vmem:[#allocation2] sm:$0xff] %vm1461_vm14, %v2909_v48  ;;  %1463 = vst.msk [vmem:[#allocation2 + $0x40] sm:$0xff] %vm1461_vm14, %v2909_v48  ;;  %vm1537_vm1 = vcmask 188544  }
 0x2c7   :  { %v1308_v43 = vmul.f32 0.015625, %v1148_v39  ;;  %v1316_v44 = vsel %vm5023_vm8, %v1148_v39, 0.0  ;;  %vm1611_vm4 = vcmask 254144   ;;  %1536 = vst.msk [vmem:[#allocation2 + $0x40] sm:$0xff] %vm1534_vm0, %v2909_v48  ;;  %1535 = vst.msk [vmem:[#allocation2] sm:$0xff] %vm1534_vm0, %v2909_v48  ;;  %vm1596_vm7 = vcmask 195713  }
 0x2c8   :  { %v1303_v45 = vsel %vm5024_vm9, %v1269_v41, 0.0  ;;  %v1317_v46 = vadd.f32 %v1316_v44, %v1315_v42  ;;  %1546 = vst.msk [vmem:[#allocation2 + $0x47] sm:$0x1] %vm1537_vm1, %v2909_v48  ;;  %1538 = vst.msk [vmem:[#allocation2 + $0x7] sm:$0x1] %vm1537_vm1, %v2909_v48  ;;  %vm1678_vm6 = vcmask 260288  }
 0x2c9   :  { %v1304_v50 = vadd.f32 %v1303_v45, %v1302_v30  ;;  %v1312_v59 = vmul.f32 %v1308_v43, %v1308_v43  ;;  %1620 = vst.msk [vmem:[#allocation2 + $0x40] sm:$0x1] %vm1611_vm4, %v2909_v48  ;;  %1612 = vst.msk [vmem:[#allocation2] sm:$0x1] %vm1611_vm4, %v2909_v48  ;;  %vm1743_vm5 = vcmask 326912   ;;  %vm1760_vm2 = vcmask 385344  }
 0x2ca   :  { %v1318_v56 = vmul.f32 0.0078125, %v1317_v46  ;;  %vm1825_vm3 = vcmask 392513   ;;  %vm1845_vm8 = vcmask 450944   ;;  %vm1904_vm9 = vcmask 457088  }
 0x2cb   :  { %v1306_v58 = vadd.f32 %v1305_v55, %v1304_v50  ;;  %vm1919_vm11 = vcmask 523712   ;;  %vm1981_vm12 = vcmask 582144   ;;  %vm1842_vm0 = vcmask 458112  }
 0x2cc   :  { %v1330_v60 = vsel %vm4955_vm10, %v3900_v47, %v1318_v56  ;;  %v1331_v7 = vsel %vm4955_vm10, %v1308_v43, %v1318_v56  ;;  %v1323_v3 = vmul.f32 %v1318_v56, %v1318_v56 }
 0x2cd   :  { %v1310_v63 = vmul.f32 0.015625, %v1306_v58  ;;  %v1320_v1 = vsel %vm5027_vm13, %v1306_v58, 0.0  ;;  %vm2040_vm13 = vcmask 589313  }
 0x2ce   :  { %v1321_v2 = vadd.f32 %v1320_v1, %v1319_v62 }
 0x2cf   :  { %v1314_v4 = vsub.f32 %v1310_v63, %v1312_v59 }
 0x2d0   :  { %v1322_v6 = vmul.f32 0.0078125, %v1321_v2  ;;  %v2897_v22 = vpop.eup %2896 }
 0x2d1   :  { %v1333_v9 = vadd.f32 1e-05, %v1314_v4 }
 0x2d2   :  { %v1324_v19 = vsub.f32 %v1322_v6, %v1323_v3 }
 0x2d3   :  { %2898 = vrsqrt.f32 %v1333_v9 }
 0x2d4   :  { %v1336_v47 = vadd.f32 1e-05, %v1324_v19 }
 0x2d6   :  { %2900 = vrsqrt.f32 %v1336_v47 }
 0x2dd   :  { %v2899_v12 = vpop.eup %2898 }
 0x2e0   :  { %v2901_v25 = vpop.eup %2900 }
 0x2e1   :  { %v1338_v10 = vsel %vm4955_vm10, %v2897_v22, %v2901_v25  ;;  %v1339_v15 = vsel %vm4955_vm10, %v2899_v12, %v2901_v25  ;;  %v1419_v25 = vld [vmem:[%s4947_s4 + $0x8] sm:$0xff]  ;;  %vm1978_vm10 = vcmask 589312  }
 0x2e2   :  { %v1340_v16 = vmul.f32 %v1338_v10, %v1004_v23  ;;  %v1341_v27 = vmul.f32 %v1339_v15, %v1004_v23  ;;  %v1420_v15 = vld [vmem:[%s4947_s4 + $0x10] sm:$0xff] }
 0x2e4   :  { %v1342_v29 = vmul.f32 %v1340_v16, %v1330_v60  ;;  %v1343_v30 = vmul.f32 %v1341_v27, %v1331_v7  ;;  %v1351_v31 = vrot.slane %v1340_v16, %v4003_v11  ;;  %v1355_v33 = vrot.slane %v1341_v27, %v4003_v11  ;;  %v1421_v16 = vld [vmem:[%s4947_s4 + $0x18] sm:$0xff] }
 0x2e5   :  { %v2860_v27 = vpack.c.bf16 %v1421_v16, %v1420_v15 }
 0x2e6   :  { %v1344_v34 = vsub.f32 %v1005_v28, %v1342_v29  ;;  %v1345_v36 = vsub.f32 %v1005_v28, %v1343_v30  ;;  %v1372_v49 = vmul.f32 %v1355_v33, %v3967_v24  ;;  %v1360_v37 = vmul.f32 %v1351_v31, %v3847_v14  ;;  %v1422_v28 = vld [vmem:[%s4947_s4 + $0x20] sm:$0xff]  ;;  %v1423_v29 = vld [vmem:[%s4947_s4 + $0x28] sm:$0xff] }
 0x2e7   :  { %v1359_v38 = vmul.f32 %v3823_v32, %v1351_v31  ;;  %v1361_v39 = vmul.f32 %v3841_v8, %v1351_v31  ;;  %v1362_v52 = vmul.f32 %v1351_v31, %v3865_v54  ;;  %v1363_v41 = vmul.f32 %v3859_v51, %v1351_v31 }
 0x2e8   :  { %v1379_v42 = vrot.slane %v1344_v34, %v4003_v11  ;;  %v1383_v43 = vrot.slane %v1345_v36, %v4003_v11  ;;  %v1364_v44 = vmul.f32 %v1351_v31, %v3882_v13  ;;  %v1365_v45 = vmul.f32 %v3876_v26, %v1351_v31  ;;  %v1426_v36 = vld [vmem:[%s4947_s4 + $0x40] sm:$0xff] }
 0x2e9   :  { %v1366_v24 = vmul.f32 %v1355_v33, %v3917_v20  ;;  %v1358_v14 = vmul.f32 %v1351_v31, %v3829_v35  ;;  %v1367_v32 = vmul.f32 %v3911_v17, %v1355_v33  ;;  %v1368_v8 = vmul.f32 %v1355_v33, %v3935_v0  ;;  %v1424_v31 = vld [vmem:[%s4947_s4 + $0x30] sm:$0xff] }
 0x2ea   :  { %v1400_v46 = vadd.f32 %v1383_v43, %v1372_v49  ;;  %v1388_v54 = vadd.f32 %v1379_v42, %v1360_v37  ;;  %v1387_v50 = vadd.f32 %v1379_v42, %v1359_v38  ;;  %v1389_v51 = vadd.f32 %v1379_v42, %v1361_v39 }
 0x2eb   :  { %v1390_v55 = vadd.f32 %v1379_v42, %v1362_v52  ;;  %v1391_v56 = vadd.f32 %v1379_v42, %v1363_v41  ;;  %v1392_v58 = vadd.f32 %v1379_v42, %v1364_v44  ;;  %v4032_v59 = vadd.f32 %v1379_v42, %v1365_v45 }
 0x2ec   :  { %v4034_v13 = vmax.f32 %v1400_v46, 0.0  ;;  %v4036_v26 = vmax.f32 %v1388_v54, 0.0  ;;  %v4038_v20 = vmax.f32 %v1387_v50, 0.0  ;;  %v4040_v35 = vmax.f32 %v1389_v51, 0.0 }
 0x2ed   :  { %v4042_v17 = vmax.f32 %v1390_v55, 0.0  ;;  %v4044_v0 = vmax.f32 %v1391_v56, 0.0  ;;  %v4046_v60 = vmax.f32 %v1392_v58, 0.0  ;;  %v1394_v7 = vadd.f32 %v1383_v43, %v1366_v24 }
 0x2ee   :  { %1482 = vrot.lane.b32.xlu1 %v4036_v26, %s2910_s0  ;;  %1480 = vrot.lane.b32.xlu0 %v4038_v20, %s2910_s0  ;;  %v1386_v62 = vadd.f32 %v1379_v42, %v1358_v14  ;;  %v1395_v63 = vadd.f32 %v1383_v43, %v1367_v32  ;;  %1449 = vst.msk [vmem:[#allocation2 + $0x19] sm:$0x7f] %vm1446_vm15, %v4036_v26  ;;  %1448 = vst.msk [vmem:[#allocation2 + $0x11] sm:$0x7f] %vm1446_vm15, %v4038_v20  ;;  %v1409_v49 = vmax.f32 %v4032_v59, 0.0 }
 0x2ef   :  { %1450 = vst.msk [vmem:[#allocation2 + $0x21] sm:$0x7f] %vm1446_vm15, %v4040_v35  ;;  %1460 = vst.msk [vmem:[#allocation2 + $0x79] sm:$0x7f] %vm1446_vm15, %v4034_v13  ;;  %v1396_v1 = vadd.f32 %v1383_v43, %v1368_v8  ;;  %v4066_v2 = vmax.f32 %v1394_v7, 0.0  ;;  %v1369_v6 = vmul.f32 %v3929_v61, %v1355_v33  ;;  %v1370_v9 = vmul.f32 %v1355_v33, %v3953_v57 }
 0x2f0   :  { %1451 = vst.msk [vmem:[#allocation2 + $0x29] sm:$0x7f] %vm1446_vm15, %v4042_v17  ;;  %1452 = vst.msk [vmem:[#allocation2 + $0x31] sm:$0x7f] %vm1446_vm15, %v4044_v0  ;;  %v4068_v3 = vmax.f32 %v1386_v62, 0.0  ;;  %v4070_v4 = vmax.f32 %v1395_v63, 0.0  ;;  %v1371_v19 = vmul.f32 %v3947_v53, %v1355_v33  ;;  %v1373_v61 = vmul.f32 %v3961_v18, %v1355_v33 }
 0x2f1   :  { %1453 = vst.msk [vmem:[#allocation2 + $0x39] sm:$0x7f] %vm1446_vm15, %v4046_v60  ;;  %v4072_v5 = vmax.f32 %v1396_v1, 0.0  ;;  %1454 = vst.msk [vmem:[#allocation2 + $0x49] sm:$0x7f] %vm1446_vm15, %v4066_v2  ;;  %v1397_v53 = vadd.f32 %v1383_v43, %v1369_v6  ;;  %v1398_v57 = vadd.f32 %v1383_v43, %v1370_v9  ;;  %v1418_v18 = vld [vmem:[%s4947_s4] sm:$0xff]  ;;  %v2864_v30 = vpack.c.bf16 %v1423_v29, %v1422_v28 }
 0x2f2   :  { %1558 = vrot.lane.b32.xlu1 %v4036_v26, %s2913_s23  ;;  %1556 = vrot.lane.b32.xlu0 %v4038_v20, %s2913_s23  ;;  %1447 = vst.msk [vmem:[#allocation2 + $0x9] sm:$0x7f] %vm1446_vm15, %v4068_v3  ;;  %1455 = vst.msk [vmem:[#allocation2 + $0x51] sm:$0x7f] %vm1446_vm15, %v4070_v4  ;;  %v1399_v47 = vadd.f32 %v1383_v43, %v1371_v19  ;;  %v4090_v21 = vadd.f32 %v1383_v43, %v1373_v61  ;;  %v1425_v33 = vld [vmem:[%s4947_s4 + $0x38] sm:$0xff] }
 0x2f3   :  { %1456 = vst.msk [vmem:[#allocation2 + $0x59] sm:$0x7f] %vm1446_vm15, %v4072_v5  ;;  %v4092_v22 = vmax.f32 %v1397_v53, 0.0  ;;  %v4094_v12 = vmax.f32 %v1398_v57, 0.0  ;;  %v2856_v10 = vpack.c.bf16 %v1419_v25, %v1418_v18  ;;  %v2868_v34 = vpack.c.bf16 %v1425_v33, %v1424_v31 }
 0x2f4   :  { %v4096_v23 = vmax.f32 %v1399_v47, 0.0  ;;  %v1417_v29 = vmax.f32 %v4090_v21, 0.0 }
 0x2f5   :  { %1457 = vst.msk [vmem:[#allocation2 + $0x61] sm:$0x7f] %vm1446_vm15, %v4092_v22  ;;  %1458 = vst.msk [vmem:[#allocation2 + $0x69] sm:$0x7f] %vm1446_vm15, %v4094_v12  ;;  %2872 = vmatprep.subr.bf16.mxu1 %v2856_v10  ;;  %2857 = vmatprep.subr.bf16.mxu0 %v2856_v10 }
 0x2f6   :  { %1636 = vrot.lane.b32.xlu1 %v4040_v35, %s2915_s25  ;;  %1634 = vrot.lane.b32.xlu0 %v4036_v26, %s2915_s25  ;;  %1459 = vst.msk [vmem:[#allocation2 + $0x71] sm:$0x7f] %vm1446_vm15, %v4096_v23  ;;  %vm2071_vm15 = vcmask 588800  }
 0x2f7   :  { %2877 = vmatpush3.bf16.msra.mxu1 %v2856_v10  ;;  %2859 = vmatpush3.bf16.msra.mxu0 %v2856_v10 }
 0x2f8   :  { %2873 = vmatprep.subr.bf16.mxu1 %v2860_v27  ;;  %2861 = vmatprep.subr.bf16.mxu0 %v2860_v27 }
 0x2fa   :  { %1484 = vrot.lane.b32.xlu1 %v4040_v35, %s2910_s0  ;;  %1699 = vrot.lane.b32.xlu0 %v4036_v26, %s2917_s12 }
 0x2fb   :  { %2878 = vmatpush3.bf16.msra.mxu1 %v2860_v27  ;;  %2863 = vmatpush3.bf16.msra.mxu0 %v2860_v27 }
 0x2fc   :  { %2874 = vmatprep.subr.bf16.mxu1 %v2864_v30  ;;  %2865 = vmatprep.subr.bf16.mxu0 %v2864_v30 }
 0x2fe   :  { %1781 = vrot.lane.b32.xlu1 %v4036_v26, %s2918_s2  ;;  %1701 = vrot.lane.b32.xlu0 %v4040_v35, %s2917_s12 }
 0x2ff   :  { %2879 = vmatpush3.bf16.msra.mxu1 %v2864_v30  ;;  %2867 = vmatpush3.bf16.msra.mxu0 %v2864_v30 }
 0x300   :  { %2875 = vmatprep.subr.bf16.mxu1 %v2868_v34  ;;  %2869 = vmatprep.subr.bf16.mxu0 %v2868_v34 }
 0x302   :  { %1560 = vrot.lane.b32.xlu1 %v4040_v35, %s2913_s23  ;;  %1486 = vrot.lane.b32.xlu0 %v4042_v17, %s2910_s0 }
 0x303   :  { %2880 = vmatpush3.bf16.msra.mxu1 %v2868_v34  ;;  %2871 = vmatpush3.bf16.msra.mxu0 %v2868_v34 }
 0x304   :  { %2876 = vmatprep.subr.mxu1 %v1426_v36  ;;  %2822 = vmatprep.subr.mxu0 %v1426_v36 }
 0x306   :  { %1866 = vrot.lane.b32.xlu1 %v4040_v35, %s2919_s3  ;;  %1783 = vrot.lane.b32.xlu0 %v4040_v35, %s2918_s2 }
 0x307   :  { %2881 = vmatpush3.msra.mxu1 %v1426_v36  ;;  %2823 = vmatpush3.msra.mxu0 %v1426_v36 }
 0x30a   :  { %1638 = vrot.lane.b32.xlu1 %v4042_v17, %s2915_s25  ;;  %1562 = vrot.lane.b32.xlu0 %v4042_v17, %s2913_s23 }
 0x30e   :  { %1926 = vrot.lane.b32.xlu1 %v4040_v35, %s2920_s22  ;;  %1868 = vrot.lane.b32.xlu0 %v4042_v17, %s2919_s3 }
 0x312   :  { %1640 = vrot.lane.b32.xlu1 %v4044_v0, %s2915_s25  ;;  %1490 = vrot.lane.b32.xlu0 %v4046_v60, %s2910_s0 }
 0x316   :  { %1928 = vrot.lane.b32.xlu1 %v4042_v17, %s2920_s22  ;;  %1703 = vrot.lane.b32.xlu0 %v4042_v17, %s2917_s12 }
 0x31a   :  { %1488 = vrot.lane.b32.xlu1 %v4044_v0, %s2910_s0  ;;  %2002 = vrot.lane.b32.xlu0 %v4040_v35, %s2921_s1 }
 0x31e   :  { %1705 = vrot.lane.b32.xlu1 %v4044_v0, %s2917_s12  ;;  %1566 = vrot.lane.b32.xlu0 %v4046_v60, %s2913_s23 }
 0x322   :  { %2004 = vrot.lane.b32.xlu1 %v4042_v17, %s2921_s1  ;;  %1785 = vrot.lane.b32.xlu0 %v4042_v17, %s2918_s2 }
 0x326   :  { %1644 = vrot.lane.b32.xlu1 %v1409_v49, %s2915_s25  ;;  %1564 = vrot.lane.b32.xlu0 %v4044_v0, %s2913_s23 }
 0x32a   :  { %1870 = vrot.lane.b32.xlu1 %v4044_v0, %s2919_s3  ;;  %1787 = vrot.lane.b32.xlu0 %v4044_v0, %s2918_s2 }
 0x32e   :  { %1709 = vrot.lane.b32.xlu1 %v1409_v49, %s2917_s12  ;;  %1642 = vrot.lane.b32.xlu0 %v4046_v60, %s2915_s25 }
 0x332   :  { %1930 = vrot.lane.b32.xlu1 %v4044_v0, %s2920_s22  ;;  %1872 = vrot.lane.b32.xlu0 %v4046_v60, %s2919_s3 }
 0x336   :  { %1791 = vrot.lane.b32.xlu1 %v1409_v49, %s2918_s2  ;;  %1707 = vrot.lane.b32.xlu0 %v4046_v60, %s2917_s12 }
 0x33a   :  { %2006 = vrot.lane.b32.xlu1 %v4044_v0, %s2921_s1  ;;  %1932 = vrot.lane.b32.xlu0 %v4046_v60, %s2920_s22 }
 0x33e   :  { %2008 = vrot.lane.b32.xlu1 %v4046_v60, %s2921_s1  ;;  %1789 = vrot.lane.b32.xlu0 %v4046_v60, %s2918_s2 }
 0x342   :  { %1874 = vrot.lane.b32.xlu1 %v1409_v49, %s2919_s3  ;;  %1492 = vrot.lane.b32.xlu0 %v4066_v2, %s2910_s0 }
 0x346   :  { %1646 = vrot.lane.b32.xlu1 %v4066_v2, %s2915_s25  ;;  %1568 = vrot.lane.b32.xlu0 %v4066_v2, %s2913_s23 }
 0x34a   :  { %1478 = vrot.lane.b32.xlu1 %v4068_v3, %s2910_s0  ;;  %1934 = vrot.lane.b32.xlu0 %v1409_v49, %s2920_s22 }
 0x34e   :  { %1711 = vrot.lane.b32.xlu1 %v4066_v2, %s2917_s12  ;;  %1648 = vrot.lane.b32.xlu0 %v4070_v4, %s2915_s25 }
 0x352   :  { %1494 = vrot.lane.b32.xlu1 %v4070_v4, %s2910_s0  ;;  %2010 = vrot.lane.b32.xlu0 %v1409_v49, %s2921_s1 }
 0x356   :  { %1630 = vrot.lane.b32.xlu1 %v4068_v3, %s2915_s25  ;;  %1554 = vrot.lane.b32.xlu0 %v4068_v3, %s2913_s23 }
 0x35a   :  { %1793 = vrot.lane.b32.xlu1 %v4066_v2, %s2918_s2  ;;  %1713 = vrot.lane.b32.xlu0 %v4070_v4, %s2917_s12 }
 0x35e   :  { %1570 = vrot.lane.b32.xlu1 %v4070_v4, %s2913_s23  ;;  %1496 = vrot.lane.b32.xlu0 %v4072_v5, %s2910_s0 }
 0x360   :  { %v1483_v37 = vpop.permute.xlu1 %1482  ;;  %v1481_v38 = vpop.permute.xlu0 %1480 }
 0x361   :  { %1522 = vst.msk [vmem:[#allocation2 + $0x18] sm:$0xff] %vm1461_vm14, %v1483_v37  ;;  %1521 = vst.msk [vmem:[#allocation2 + $0x10] sm:$0xff] %vm1461_vm14, %v1481_v38 }
 0x362   :  { %1695 = vrot.lane.b32.xlu1 %v4068_v3, %s2917_s12  ;;  %1632 = vrot.lane.b32.xlu0 %v4038_v20, %s2915_s25  ;;  %1541 = vst.msk [vmem:[#allocation2 + $0x1f] sm:$0x1] %vm1537_vm1, %v2909_v48  ;;  %1540 = vst.msk [vmem:[#allocation2 + $0x17] sm:$0x1] %vm1537_vm1, %v2909_v48 }
 0x364   :  { %v1559_v39 = vpop.permute.xlu1 %1558  ;;  %v1557_v52 = vpop.permute.xlu0 %1556 }
 0x365   :  { %1599 = vst.msk [vmem:[#allocation2 + $0x17] sm:$0xfe] %vm1596_vm7, %v1559_v39  ;;  %1598 = vst.msk [vmem:[#allocation2 + $0xf] sm:$0xfe] %vm1596_vm7, %v1557_v52 }
 0x366   :  { %1615 = vst.msk [vmem:[#allocation2 + $0x18] sm:$0x1] %vm1611_vm4, %v2909_v48  ;;  %1614 = vst.msk [vmem:[#allocation2 + $0x10] sm:$0x1] %vm1611_vm4, %v2909_v48  ;;  %1876 = vrot.lane.b32.xlu1 %v4070_v4, %s2919_s3  ;;  %1795 = vrot.lane.b32.xlu0 %v4070_v4, %s2918_s2 }
 0x368   :  { %v1637_v41 = vpop.permute.xlu1 %1636  ;;  %v1635_v42 = vpop.permute.xlu0 %1634 }
 0x369   :  { %1682 = vst.msk [vmem:[#allocation2 + $0x19] sm:$0x7f] %vm1678_vm6, %v1637_v41  ;;  %1681 = vst.msk [vmem:[#allocation2 + $0x11] sm:$0x7f] %vm1678_vm6, %v1635_v42 }
 0x36a   :  { %1650 = vrot.lane.b32.xlu1 %v4072_v5, %s2915_s25  ;;  %1572 = vrot.lane.b32.xlu0 %v4072_v5, %s2913_s23 }
 0x36c   :  { %v1485_v43 = vpop.permute.xlu1 %1484  ;;  %v1700_v44 = vpop.permute.xlu0 %1699 }
 0x36d   :  { %1523 = vst.msk [vmem:[#allocation2 + $0x20] sm:$0xff] %vm1461_vm14, %v1485_v43 }
 0x36e   :  { %1746 = vst.msk [vmem:[#allocation2 + $0x10] sm:$0xff] %vm1743_vm5, %v1700_v44  ;;  %1777 = vrot.lane.b32.xlu1 %v4068_v3, %s2918_s2  ;;  %1697 = vrot.lane.b32.xlu0 %v4038_v20, %s2917_s12 }
 0x36f   :  { %1763 = vst.msk [vmem:[#allocation2 + $0x17] sm:$0x1] %vm1760_vm2, %v2909_v48 }
 0x370   :  { %1542 = vst.msk [vmem:[#allocation2 + $0x27] sm:$0x1] %vm1537_vm1, %v2909_v48  ;;  %v1782_v45 = vpop.permute.xlu1 %1781  ;;  %v1702_v24 = vpop.permute.xlu0 %1701 }
 0x371   :  { %1828 = vst.msk [vmem:[#allocation2 + $0xf] sm:$0xfe] %vm1825_vm3, %v1782_v45 }
 0x372   :  { %1747 = vst.msk [vmem:[#allocation2 + $0x18] sm:$0xff] %vm1743_vm5, %v1702_v24  ;;  %1936 = vrot.lane.b32.xlu1 %v4070_v4, %s2920_s22  ;;  %1878 = vrot.lane.b32.xlu0 %v4072_v5, %s2919_s3 }
 0x373   :  { %1848 = vst.msk [vmem:[#allocation2 + $0x10] sm:$0x1] %vm1845_vm8, %v2909_v48 }
 0x374   :  { %1764 = vst.msk [vmem:[#allocation2 + $0x1f] sm:$0x1] %vm1760_vm2, %v2909_v48  ;;  %v1561_v14 = vpop.permute.xlu1 %1560  ;;  %v1487_v32 = vpop.permute.xlu0 %1486 }
 0x375   :  { %1600 = vst.msk [vmem:[#allocation2 + $0x1f] sm:$0xfe] %vm1596_vm7, %v1561_v14 }
 0x376   :  { %1524 = vst.msk [vmem:[#allocation2 + $0x28] sm:$0xff] %vm1461_vm14, %v1487_v32  ;;  %1715 = vrot.lane.b32.xlu1 %v4072_v5, %s2917_s12  ;;  %1652 = vrot.lane.b32.xlu0 %v4092_v22, %s2915_s25 }
 0x377   :  { %1616 = vst.msk [vmem:[#allocation2 + $0x20] sm:$0x1] %vm1611_vm4, %v2909_v48 }
 0x378   :  { %1543 = vst.msk [vmem:[#allocation2 + $0x2f] sm:$0x1] %vm1537_vm1, %v2909_v48  ;;  %v1867_v8 = vpop.permute.xlu1 %1866  ;;  %v1784_v46 = vpop.permute.xlu0 %1783 }
 0x379   :  { %1907 = vst.msk [vmem:[#allocation2 + $0x11] sm:$0x7f] %vm1904_vm9, %v1867_v8 }
 0x37a   :  { %1829 = vst.msk [vmem:[#allocation2 + $0x17] sm:$0xfe] %vm1825_vm3, %v1784_v46  ;;  %1862 = vrot.lane.b32.xlu1 %v4038_v20, %s2919_s3  ;;  %1779 = vrot.lane.b32.xlu0 %v4038_v20, %s2918_s2 }
 0x37b   :  { %1849 = vst.msk [vmem:[#allocation2 + $0x18] sm:$0x1] %vm1845_vm8, %v2909_v48 }
 0x37c   :  { %v1639_v54 = vpop.permute.xlu1 %1638  ;;  %v1563_v50 = vpop.permute.xlu0 %1562 }
 0x37d   :  { %1683 = vst.msk [vmem:[#allocation2 + $0x21] sm:$0x7f] %vm1678_vm6, %v1639_v54 }
 0x37e   :  { %1601 = vst.msk [vmem:[#allocation2 + $0x27] sm:$0xfe] %vm1596_vm7, %v1563_v50  ;;  %2012 = vrot.lane.b32.xlu1 %v4070_v4, %s2921_s1  ;;  %1938 = vrot.lane.b32.xlu0 %v4072_v5, %s2920_s22 }
 0x37f   :  { %1617 = vst.msk [vmem:[#allocation2 + $0x28] sm:$0x1] %vm1611_vm4, %v2909_v48 }
 0x380   :  { %v1927_v51 = vpop.permute.xlu1 %1926  ;;  %v1869_v55 = vpop.permute.xlu0 %1868 }
 0x381   :  { %1966 = vst.msk [vmem:[#allocation2 + $0x10] sm:$0xff] %vm1919_vm11, %v1927_v51 }
 0x382   :  { %1908 = vst.msk [vmem:[#allocation2 + $0x19] sm:$0x7f] %vm1904_vm9, %v1869_v55  ;;  %1717 = vrot.lane.b32.xlu1 %v4092_v22, %s2917_s12  ;;  %1498 = vrot.lane.b32.xlu0 %v4092_v22, %s2910_s0 }
 0x383   :  { %1984 = vst.msk [vmem:[#allocation2 + $0x17] sm:$0x1] %vm1981_vm12, %v2909_v48 }
 0x384   :  { %v1641_v56 = vpop.permute.xlu1 %1640  ;;  %v1491_v58 = vpop.permute.xlu0 %1490 }
 0x385   :  { %1684 = vst.msk [vmem:[#allocation2 + $0x29] sm:$0x7f] %vm1678_vm6, %v1641_v56 }
 0x386   :  { %1526 = vst.msk [vmem:[#allocation2 + $0x38] sm:$0xff] %vm1461_vm14, %v1491_v58  ;;  %1864 = vrot.lane.b32.xlu1 %v4036_v26, %s2919_s3  ;;  %1797 = vrot.lane.b32.xlu0 %v4072_v5, %s2918_s2 }
 0x387   :  { %1545 = vst.msk [vmem:[#allocation2 + $0x3f] sm:$0x1] %vm1537_vm1, %v2909_v48 }
 0x388   :  { %v1929_v59 = vpop.permute.xlu1 %1928  ;;  %v1704_v35 = vpop.permute.xlu0 %1703 }
 0x389   :  { %1967 = vst.msk [vmem:[#allocation2 + $0x18] sm:$0xff] %vm1919_vm11, %v1929_v59 }
 0x38a   :  { %1748 = vst.msk [vmem:[#allocation2 + $0x20] sm:$0xff] %vm1743_vm5, %v1704_v35  ;;  %2014 = vrot.lane.b32.xlu1 %v4072_v5, %s2921_s1  ;;  %1922 = vrot.lane.b32.xlu0 %v4038_v20, %s2920_s22 }
 0x38b   :  { %1985 = vst.msk [vmem:[#allocation2 + $0x1f] sm:$0x1] %vm1981_vm12, %v2909_v48 }
 0x38c   :  { %1765 = vst.msk [vmem:[#allocation2 + $0x27] sm:$0x1] %vm1760_vm2, %v2909_v48  ;;  %v1489_v17 = vpop.permute.xlu1 %1488  ;;  %v2003_v0 = vpop.permute.xlu0 %2002 }
 0x38d   :  { %1525 = vst.msk [vmem:[#allocation2 + $0x30] sm:$0xff] %vm1461_vm14, %v1489_v17 }
 0x38e   :  { %2043 = vst.msk [vmem:[#allocation2 + $0xf] sm:$0xfe] %vm2040_vm13, %v2003_v0  ;;  %1574 = vrot.lane.b32.xlu1 %v4092_v22, %s2913_s23  ;;  %1500 = vrot.lane.b32.xlu0 %v4094_v12, %s2910_s0 }
 0x38f   :  { %1544 = vst.msk [vmem:[#allocation2 + $0x37] sm:$0x1] %vm1537_vm1, %v2909_v48 }
 0x390   :  { %v1706_v60 = vpop.permute.xlu1 %1705  ;;  %v1567_v7 = vpop.permute.xlu0 %1566 }
 0x391   :  { %1749 = vst.msk [vmem:[#allocation2 + $0x28] sm:$0xff] %vm1743_vm5, %v1706_v60 }
 0x392   :  { %1603 = vst.msk [vmem:[#allocation2 + $0x37] sm:$0xfe] %vm1596_vm7, %v1567_v7  ;;  %1880 = vrot.lane.b32.xlu1 %v4092_v22, %s2919_s3  ;;  %1799 = vrot.lane.b32.xlu0 %v4092_v22, %s2918_s2 }
 0x393   :  { %1766 = vst.msk [vmem:[#allocation2 + $0x2f] sm:$0x1] %vm1760_vm2, %v2909_v48 }
 0x394   :  { %1619 = vst.msk [vmem:[#allocation2 + $0x38] sm:$0x1] %vm1611_vm4, %v2909_v48  ;;  %v2005_v62 = vpop.permute.xlu1 %2004  ;;  %v1786_v63 = vpop.permute.xlu0 %1785 }
 0x395   :  { %v2057_v1 = vld [vmem:[#allocation2 + $0x10] sm:$0xff]  ;;  %2044 = vst.msk [vmem:[#allocation2 + $0x17] sm:$0xfe] %vm2040_vm13, %v2005_v62 }
 0x396   :  { %1830 = vst.msk [vmem:[#allocation2 + $0x1f] sm:$0xfe] %vm1825_vm3, %v1786_v63  ;;  %2827 = vmatprep.mubr.msk.f32.mxu1 %vm2071_vm15, %v2057_v1  ;;  %1998 = vrot.lane.b32.xlu1 %v4038_v20, %s2921_s1 }
 0x397   :  { %1850 = vst.msk [vmem:[#allocation2 + $0x20] sm:$0x1] %vm1845_vm8, %v2909_v48  ;;  %1924 = vrot.lane.b32.xlu0 %v4036_v26, %s2920_s22 }
 0x398   :  { %v1645_v2 = vpop.permute.xlu1 %1644  ;;  %v1565_v3 = vpop.permute.xlu0 %1564 }
 0x399   :  { %1686 = vst.msk [vmem:[#allocation2 + $0x39] sm:$0x7f] %vm1678_vm6, %v1645_v2 }
 0x39a   :  { %1602 = vst.msk [vmem:[#allocation2 + $0x2f] sm:$0xfe] %vm1596_vm7, %v1565_v3  ;;  %1654 = vrot.lane.b32.xlu1 %v4094_v12, %s2915_s25 }
 0x39b   :  { %1618 = vst.msk [vmem:[#allocation2 + $0x30] sm:$0x1] %vm1611_vm4, %v2909_v48  ;;  %1576 = vrot.lane.b32.xlu0 %v4094_v12, %s2913_s23 }
 0x39c   :  { %v1871_v4 = vpop.permute.xlu1 %1870  ;;  %v1788_v20 = vpop.permute.xlu0 %1787  ;;  %v2058_v5 = vld [vmem:[#allocation2 + $0x18] sm:$0xff] }
 0x39d   :  { %1909 = vst.msk [vmem:[#allocation2 + $0x21] sm:$0x7f] %vm1904_vm9, %v1871_v4  ;;  %2828 = vmatmul.mubr.msk.f32.vlgmr.msra.gmra.mrb[0].mxu1 %vm2071_vm15, %v2058_v5 }
 0x39e   :  { %1831 = vst.msk [vmem:[#allocation2 + $0x27] sm:$0xfe] %vm1825_vm3, %v1788_v20  ;;  %1940 = vrot.lane.b32.xlu1 %v4092_v22, %s2920_s22 }
 0x39f   :  { %1851 = vst.msk [vmem:[#allocation2 + $0x28] sm:$0x1] %vm1845_vm8, %v2909_v48  ;;  %1882 = vrot.lane.b32.xlu0 %v4094_v12, %s2919_s3 }
 0x3a0   :  { %v1710_v6 = vpop.permute.xlu1 %1709  ;;  %v1643_v9 = vpop.permute.xlu0 %1642 }
 0x3a1   :  { %1751 = vst.msk [vmem:[#allocation2 + $0x38] sm:$0xff] %vm1743_vm5, %v1710_v6 }
 0x3a2   :  { %1685 = vst.msk [vmem:[#allocation2 + $0x31] sm:$0x7f] %vm1678_vm6, %v1643_v9  ;;  %1504 = vrot.lane.b32.xlu1 %v4034_v13, %s2910_s0 }
 0x3a3   :  { %1768 = vst.msk [vmem:[#allocation2 + $0x3f] sm:$0x1] %vm1760_vm2, %v2909_v48  ;;  %2000 = vrot.lane.b32.xlu0 %v4036_v26, %s2921_s1 }
 0x3a4   :  { %v1931_v19 = vpop.permute.xlu1 %1930  ;;  %v1873_v61 = vpop.permute.xlu0 %1872 }
 0x3a5   :  { %1968 = vst.msk [vmem:[#allocation2 + $0x20] sm:$0xff] %vm1919_vm11, %v1931_v19 }
 0x3a6   :  { %1910 = vst.msk [vmem:[#allocation2 + $0x29] sm:$0x7f] %vm1904_vm9, %v1873_v61  ;;  %1719 = vrot.lane.b32.xlu1 %v4094_v12, %s2917_s12 }
 0x3a7   :  { %1986 = vst.msk [vmem:[#allocation2 + $0x27] sm:$0x1] %vm1981_vm12, %v2909_v48  ;;  %1656 = vrot.lane.b32.xlu0 %v4096_v23, %s2915_s25 }
 0x3a8   :  { %v1792_v53 = vpop.permute.xlu1 %1791  ;;  %v1708_v57 = vpop.permute.xlu0 %1707 }
 0x3a9   :  { %1833 = vst.msk [vmem:[#allocation2 + $0x37] sm:$0xfe] %vm1825_vm3, %v1792_v53 }
 0x3aa   :  { %1750 = vst.msk [vmem:[#allocation2 + $0x30] sm:$0xff] %vm1743_vm5, %v1708_v57  ;;  %2016 = vrot.lane.b32.xlu1 %v4092_v22, %s2921_s1 }
 0x3ab   :  { %1843 = vst.msk [vmem:[#allocation2 + $0x38] sm:$0xff] %vm1842_vm0, %v2909_v48  ;;  %1942 = vrot.lane.b32.xlu0 %v4094_v12, %s2920_s22 }
 0x3ac   :  { %1767 = vst.msk [vmem:[#allocation2 + $0x37] sm:$0x1] %vm1760_vm2, %v2909_v48  ;;  %v2007_v26 = vpop.permute.xlu1 %2006  ;;  %v1933_v47 = vpop.permute.xlu0 %1932 }
 0x3ad   :  { %1853 = vst.msk [vmem:[#allocation2 + $0x38] sm:$0x1] %vm1845_vm8, %v2909_v48 }
 0x3ae   :  { %1920 = vst.msk [vmem:[#allocation2 + $0x38] sm:$0xff] %vm1919_vm11, %v2909_v48  ;;  %1969 = vst.msk [vmem:[#allocation2 + $0x28] sm:$0xff] %vm1919_vm11, %v1933_v47  ;;  %1580 = vrot.lane.b32.xlu1 %v4034_v13, %s2913_s23 }
 0x3af   :  { %1979 = vst.msk [vmem:[#allocation2 + $0x38] sm:$0xff] %vm1978_vm10, %v2909_v48  ;;  %1502 = vrot.lane.b32.xlu0 %v4096_v23, %s2910_s0 }
 0x3b0   :  { %2045 = vst.msk [vmem:[#allocation2 + $0x1f] sm:$0xfe] %vm2040_vm13, %v2007_v26  ;;  %v2009_v22 = vpop.permute.xlu1 %2008  ;;  %v1790_v18 = vpop.permute.xlu0 %1789 }
 0x3b1   :  { %1989 = vst.msk [vmem:[#allocation2 + $0x3f] sm:$0x1] %vm1981_vm12, %v2909_v48  ;;  %1987 = vst.msk [vmem:[#allocation2 + $0x2f] sm:$0x1] %vm1981_vm12, %v2909_v48 }
 0x3b2   :  { %2046 = vst.msk [vmem:[#allocation2 + $0x27] sm:$0xfe] %vm2040_vm13, %v2009_v22  ;;  %1801 = vrot.lane.b32.xlu1 %v4094_v12, %s2918_s2 }
 0x3b3   :  { %1832 = vst.msk [vmem:[#allocation2 + $0x2f] sm:$0xfe] %vm1825_vm3, %v1790_v18  ;;  %1721 = vrot.lane.b32.xlu0 %v4096_v23, %s2917_s12 }
 0x3b4   :  { %1852 = vst.msk [vmem:[#allocation2 + $0x30] sm:$0x1] %vm1845_vm8, %v2909_v48  ;;  %v1875_v25 = vpop.permute.xlu1 %1874  ;;  %v1493_v10 = vpop.permute.xlu0 %1492 }
 0x3b5   :  { %1911 = vst.msk [vmem:[#allocation2 + $0x31] sm:$0x7f] %vm1904_vm9, %v1875_v25 }
 0x3b6   :  { %1527 = vst.msk [vmem:[#allocation2 + $0x48] sm:$0xff] %vm1461_vm14, %v1493_v10  ;;  %1578 = vrot.lane.b32.xlu1 %v4096_v23, %s2913_s23 }
 0x3b7   :  { %v2059_v15 = vld [vmem:[#allocation2 + $0x20] sm:$0xff]  ;;  %1547 = vst.msk [vmem:[#allocation2 + $0x4f] sm:$0x1] %vm1537_vm1, %v2909_v48  ;;  %2018 = vrot.lane.b32.xlu0 %v4094_v12, %s2921_s1 }
 0x3b8   :  { %2830 = vmatprep.mubr.msk.f32.mxu1 %vm2071_vm15, %v2059_v15  ;;  %v1647_v16 = vpop.permute.xlu1 %1646  ;;  %v1569_v27 = vpop.permute.xlu0 %1568  ;;  %v2062_v52 = vld [vmem:[#allocation2 + $0x38] sm:$0xff] }
 0x3b9   :  { %v2060_v28 = vld [vmem:[#allocation2 + $0x28] sm:$0xff]  ;;  %1687 = vst.msk [vmem:[#allocation2 + $0x41] sm:$0x7f] %vm1678_vm6, %v1647_v16 }
 0x3ba   :  { %1604 = vst.msk [vmem:[#allocation2 + $0x47] sm:$0xfe] %vm1596_vm7, %v1569_v27  ;;  %2831 = vmatmul.mubr.msk.f32.gmra.mrb[2].mxu1 %vm2071_vm15, %v2060_v28  ;;  %1803 = vrot.lane.b32.xlu1 %v4096_v23, %s2918_s2 }
 0x3bb   :  { %1621 = vst.msk [vmem:[#allocation2 + $0x48] sm:$0x1] %vm1611_vm4, %v2909_v48  ;;  %1660 = vrot.lane.b32.xlu0 %v1417_v29, %s2915_s25 }
 0x3bc   :  { %v1479_v12 = vpop.permute.xlu1 %1478  ;;  %v1935_v30 = vpop.permute.xlu0 %1934 }
 0x3bd   :  { %1520 = vst.msk [vmem:[#allocation2 + $0x8] sm:$0xff] %vm1461_vm14, %v1479_v12 }
 0x3be   :  { %1970 = vst.msk [vmem:[#allocation2 + $0x30] sm:$0xff] %vm1919_vm11, %v1935_v30  ;;  %1658 = vrot.lane.b32.xlu1 %v4034_v13, %s2915_s25 }
 0x3bf   :  { %1988 = vst.msk [vmem:[#allocation2 + $0x37] sm:$0x1] %vm1981_vm12, %v2909_v48  ;;  %1884 = vrot.lane.b32.xlu0 %v4096_v23, %s2919_s3 }
 0x3c0   :  { %1539 = vst.msk [vmem:[#allocation2 + $0xf] sm:$0x1] %vm1537_vm1, %v2909_v48  ;;  %v1712_v21 = vpop.permute.xlu1 %1711  ;;  %v1649_v31 = vpop.permute.xlu0 %1648 }
 0x3c1   :  { %1752 = vst.msk [vmem:[#allocation2 + $0x40] sm:$0xff] %vm1743_vm5, %v1712_v21 }
 0x3c2   :  { %1688 = vst.msk [vmem:[#allocation2 + $0x49] sm:$0x7f] %vm1678_vm6, %v1649_v31  ;;  %1886 = vrot.lane.b32.xlu1 %v4034_v13, %s2919_s3 }
 0x3c3   :  { %1769 = vst.msk [vmem:[#allocation2 + $0x47] sm:$0x1] %vm1760_vm2, %v2909_v48  ;;  %1725 = vrot.lane.b32.xlu0 %v1417_v29, %s2917_s12 }
 0x3c4   :  { %v1495_v33 = vpop.permute.xlu1 %1494  ;;  %v2011_v34 = vpop.permute.xlu0 %2010 }
 0x3c5   :  { %1528 = vst.msk [vmem:[#allocation2 + $0x50] sm:$0xff] %vm1461_vm14, %v1495_v33 }
 0x3c6   :  { %2047 = vst.msk [vmem:[#allocation2 + $0x2f] sm:$0xfe] %vm2040_vm13, %v2011_v34  ;;  %1723 = vrot.lane.b32.xlu1 %v4034_v13, %s2917_s12 }
 0x3c7   :  { %1548 = vst.msk [vmem:[#allocation2 + $0x57] sm:$0x1] %vm1537_vm1, %v2909_v48  ;;  %1944 = vrot.lane.b32.xlu0 %v4096_v23, %s2920_s22 }
 0x3c8   :  { %v1631_v36 = vpop.permute.xlu1 %1630  ;;  %v1555_v49 = vpop.permute.xlu0 %1554 }
 0x3c9   :  { %1679 = vst.msk [vmem:[#allocation2 + $0x1] sm:$0x7f] %vm1678_vm6, %v1631_v36 }
 0x3ca   :  { %1597 = vst.msk [vmem:[#allocation2 + $0x7] sm:$0xfe] %vm1596_vm7, %v1555_v49  ;;  %1946 = vrot.lane.b32.xlu1 %v4034_v13, %s2920_s22 }
 0x3cb   :  { %1613 = vst.msk [vmem:[#allocation2 + $0x8] sm:$0x1] %vm1611_vm4, %v2909_v48  ;;  %1807 = vrot.lane.b32.xlu0 %v1417_v29, %s2918_s2 }
 0x3cc   :  { %v1794_v37 = vpop.permute.xlu1 %1793  ;;  %v1714_v38 = vpop.permute.xlu0 %1713 }
 0x3cd   :  { %v2061_v39 = vld [vmem:[#allocation2 + $0x30] sm:$0xff]  ;;  %1834 = vst.msk [vmem:[#allocation2 + $0x3f] sm:$0xfe] %vm1825_vm3, %v1794_v37 }
 0x3ce   :  { %1753 = vst.msk [vmem:[#allocation2 + $0x48] sm:$0xff] %vm1743_vm5, %v1714_v38  ;;  %2833 = vmatprep.mubr.msk.f32.mxu1 %vm2071_vm15, %v2061_v39  ;;  %1805 = vrot.lane.b32.xlu1 %v4034_v13, %s2918_s2 }
 0x3cf   :  { %1854 = vst.msk [vmem:[#allocation2 + $0x40] sm:$0x1] %vm1845_vm8, %v2909_v48  ;;  %2020 = vrot.lane.b32.xlu0 %v4096_v23, %s2921_s1  ;;  %2834 = vmatmul.mubr.msk.f32.gmra.mrb[4].mxu1 %vm2071_vm15, %v2062_v52 }
 0x3d0   :  { %1770 = vst.msk [vmem:[#allocation2 + $0x4f] sm:$0x1] %vm1760_vm2, %v2909_v48  ;;  %v1571_v41 = vpop.permute.xlu1 %1570  ;;  %v1497_v42 = vpop.permute.xlu0 %1496 }
 0x3d1   :  { %1605 = vst.msk [vmem:[#allocation2 + $0x4f] sm:$0xfe] %vm1596_vm7, %v1571_v41 }
 0x3d2   :  { %1529 = vst.msk [vmem:[#allocation2 + $0x58] sm:$0xff] %vm1461_vm14, %v1497_v42  ;;  %1888 = vrot.lane.b32.xlu1 %v1417_v29, %s2919_s3 }
 0x3d3   :  { %1622 = vst.msk [vmem:[#allocation2 + $0x50] sm:$0x1] %vm1611_vm4, %v2909_v48  ;;  %2022 = vrot.lane.b32.xlu0 %v4034_v13, %s2921_s1 }
 0x3d4   :  { %1549 = vst.msk [vmem:[#allocation2 + $0x5f] sm:$0x1] %vm1537_vm1, %v2909_v48  ;;  %v1696_v23 = vpop.permute.xlu1 %1695  ;;  %v1633_v43 = vpop.permute.xlu0 %1632 }
 0x3d5   :  { %1744 = vst.msk [vmem:[#allocation2] sm:$0xff] %vm1743_vm5, %v1696_v23 }
 0x3d6   :  { %1680 = vst.msk [vmem:[#allocation2 + $0x9] sm:$0x7f] %vm1678_vm6, %v1633_v43  ;;  %2024 = vrot.lane.b32.xlu1 %v1417_v29, %s2921_s1 }
 0x3d7   :  { %1761 = vst.msk [vmem:[#allocation2 + $0x7] sm:$0x1] %vm1760_vm2, %v2909_v48  ;;  %1948 = vrot.lane.b32.xlu0 %v1417_v29, %s2920_s22 }
 0x3d8   :  { %v1877_v44 = vpop.permute.xlu1 %1876  ;;  %v1796_v45 = vpop.permute.xlu0 %1795 }
 0x3d9   :  { %1912 = vst.msk [vmem:[#allocation2 + $0x41] sm:$0x7f] %vm1904_vm9, %v1877_v44 }
 0x3da   :  { %1835 = vst.msk [vmem:[#allocation2 + $0x47] sm:$0xfe] %vm1825_vm3, %v1796_v45 }
 0x3db   :  { %1855 = vst.msk [vmem:[#allocation2 + $0x48] sm:$0x1] %vm1845_vm8, %v2909_v48 }
 0x3dc   :  { %v1651_v13 = vpop.permute.xlu1 %1650  ;;  %v1573_v24 = vpop.permute.xlu0 %1572 }
 0x3dd   :  { %1689 = vst.msk [vmem:[#allocation2 + $0x51] sm:$0x7f] %vm1678_vm6, %v1651_v13 }
 0x3de   :  { %1606 = vst.msk [vmem:[#allocation2 + $0x57] sm:$0xfe] %vm1596_vm7, %v1573_v24 }
 0x3df   :  { %1623 = vst.msk [vmem:[#allocation2 + $0x58] sm:$0x1] %vm1611_vm4, %v2909_v48 }
 0x3e0   :  { %v1778_v14 = vpop.permute.xlu1 %1777  ;;  %v1698_v32 = vpop.permute.xlu0 %1697 }
 0x3e1   :  { %1826 = vst.msk [vmem:[#allocation2 - $0x1] sm:$0xfe] %vm1825_vm3, %v1778_v14 }
 0x3e2   :  { %1745 = vst.msk [vmem:[#allocation2 + $0x8] sm:$0xff] %vm1743_vm5, %v1698_v32 }
 0x3e3   :  { %1846 = vst.msk [vmem:[#allocation2] sm:$0x1] %vm1845_vm8, %v2909_v48 }
 0x3e4   :  { %1762 = vst.msk [vmem:[#allocation2 + $0xf] sm:$0x1] %vm1760_vm2, %v2909_v48  ;;  %v1937_v8 = vpop.permute.xlu1 %1936  ;;  %v1879_v46 = vpop.permute.xlu0 %1878 }
 0x3e5   :  { %1971 = vst.msk [vmem:[#allocation2 + $0x40] sm:$0xff] %vm1919_vm11, %v1937_v8 }
 0x3e6   :  { %1913 = vst.msk [vmem:[#allocation2 + $0x49] sm:$0x7f] %vm1904_vm9, %v1879_v46 }
 0x3e7   :  { %1990 = vst.msk [vmem:[#allocation2 + $0x47] sm:$0x1] %vm1981_vm12, %v2909_v48 }
 0x3e8   :  { %v1716_v54 = vpop.permute.xlu1 %1715  ;;  %v1653_v50 = vpop.permute.xlu0 %1652 }
 0x3e9   :  { %1754 = vst.msk [vmem:[#allocation2 + $0x50] sm:$0xff] %vm1743_vm5, %v1716_v54 }
 0x3ea   :  { %1690 = vst.msk [vmem:[#allocation2 + $0x59] sm:$0x7f] %vm1678_vm6, %v1653_v50 }
 0x3eb   :  { %1771 = vst.msk [vmem:[#allocation2 + $0x57] sm:$0x1] %vm1760_vm2, %v2909_v48 }
 0x3ec   :  { %v1863_v51 = vpop.permute.xlu1 %1862  ;;  %v1780_v55 = vpop.permute.xlu0 %1779 }
 0x3ed   :  { %1905 = vst.msk [vmem:[#allocation2 + $0x1] sm:$0x7f] %vm1904_vm9, %v1863_v51 }
 0x3ee   :  { %1827 = vst.msk [vmem:[#allocation2 + $0x7] sm:$0xfe] %vm1825_vm3, %v1780_v55 }
 0x3ef   :  { %1847 = vst.msk [vmem:[#allocation2 + $0x8] sm:$0x1] %vm1845_vm8, %v2909_v48 }
 0x3f0   :  { %v2013_v56 = vpop.permute.xlu1 %2012  ;;  %v1939_v58 = vpop.permute.xlu0 %1938 }
 0x3f1   :  { %2048 = vst.msk [vmem:[#allocation2 + $0x3f] sm:$0xfe] %vm2040_vm13, %v2013_v56 }
 0x3f2   :  { %1972 = vst.msk [vmem:[#allocation2 + $0x48] sm:$0xff] %vm1919_vm11, %v1939_v58 }
 0x3f3   :  { %1991 = vst.msk [vmem:[#allocation2 + $0x4f] sm:$0x1] %vm1981_vm12, %v2909_v48 }
 0x3f4   :  { %v1718_v59 = vpop.permute.xlu1 %1717  ;;  %v1499_v35 = vpop.permute.xlu0 %1498 }
 0x3f5   :  { %1755 = vst.msk [vmem:[#allocation2 + $0x58] sm:$0xff] %vm1743_vm5, %v1718_v59 }
 0x3f6   :  { %1530 = vst.msk [vmem:[#allocation2 + $0x60] sm:$0xff] %vm1461_vm14, %v1499_v35 }
 0x3f7   :  { %1772 = vst.msk [vmem:[#allocation2 + $0x5f] sm:$0x1] %vm1760_vm2, %v2909_v48 }
 0x3f8   :  { %1550 = vst.msk [vmem:[#allocation2 + $0x67] sm:$0x1] %vm1537_vm1, %v2909_v48  ;;  %v1865_v17 = vpop.permute.xlu1 %1864  ;;  %v1798_v0 = vpop.permute.xlu0 %1797  ;;  %v2063_v60 = vld [vmem:[#allocation2 + $0x40] sm:$0xff] }
 0x3f9   :  { %1906 = vst.msk [vmem:[#allocation2 + $0x9] sm:$0x7f] %vm1904_vm9, %v1865_v17  ;;  %2836 = vmatprep.mubr.msk.f32.mxu1 %vm2071_vm15, %v2063_v60 }
 0x3fa   :  { %1836 = vst.msk [vmem:[#allocation2 + $0x4f] sm:$0xfe] %vm1825_vm3, %v1798_v0 }
 0x3fb   :  { %1856 = vst.msk [vmem:[#allocation2 + $0x50] sm:$0x1] %vm1845_vm8, %v2909_v48 }
 0x3fc   :  { %v2015_v7 = vpop.permute.xlu1 %2014  ;;  %v1923_v62 = vpop.permute.xlu0 %1922 }
 0x3fd   :  { %2049 = vst.msk [vmem:[#allocation2 + $0x47] sm:$0xfe] %vm2040_vm13, %v2015_v7 }
 0x3fe   :  { %1964 = vst.msk [vmem:[#allocation2] sm:$0xff] %vm1919_vm11, %v1923_v62 }
 0x3ff   :  { %1982 = vst.msk [vmem:[#allocation2 + $0x7] sm:$0x1] %vm1981_vm12, %v2909_v48 }
 0x400   :  { %v1575_v63 = vpop.permute.xlu1 %1574  ;;  %v1501_v1 = vpop.permute.xlu0 %1500 }
 0x401   :  { %1607 = vst.msk [vmem:[#allocation2 + $0x5f] sm:$0xfe] %vm1596_vm7, %v1575_v63 }
 0x402   :  { %1531 = vst.msk [vmem:[#allocation2 + $0x68] sm:$0xff] %vm1461_vm14, %v1501_v1 }
 0x403   :  { %1624 = vst.msk [vmem:[#allocation2 + $0x60] sm:$0x1] %vm1611_vm4, %v2909_v48 }
 0x404   :  { %1551 = vst.msk [vmem:[#allocation2 + $0x6f] sm:$0x1] %vm1537_vm1, %v2909_v48  ;;  %v1881_v2 = vpop.permute.xlu1 %1880  ;;  %v1800_v3 = vpop.permute.xlu0 %1799  ;;  %v2064_v4 = vld [vmem:[#allocation2 + $0x48] sm:$0xff] }
 0x405   :  { %1914 = vst.msk [vmem:[#allocation2 + $0x51] sm:$0x7f] %vm1904_vm9, %v1881_v2  ;;  %2837 = vmatmul.mubr.msk.f32.gmra.mrb[6].mxu1 %vm2071_vm15, %v2064_v4 }
 0x406   :  { %1837 = vst.msk [vmem:[#allocation2 + $0x57] sm:$0xfe] %vm1825_vm3, %v1800_v3 }
 0x407   :  { %1857 = vst.msk [vmem:[#allocation2 + $0x58] sm:$0x1] %vm1845_vm8, %v2909_v48 }
 0x408   :  { %v1999_v20 = vpop.permute.xlu1 %1998 }
 0x409   :  { %v1925_v5 = vpop.permute.xlu0 %1924  ;;  %2041 = vst.msk [vmem:[#allocation2 - $0x1] sm:$0xfe] %vm2040_vm13, %v1999_v20 }
 0x40a   :  { %1965 = vst.msk [vmem:[#allocation2 + $0x8] sm:$0xff] %vm1919_vm11, %v1925_v5 }
 0x40b   :  { %1983 = vst.msk [vmem:[#allocation2 + $0xf] sm:$0x1] %vm1981_vm12, %v2909_v48 }
 0x40c   :  { %v1655_v6 = vpop.permute.xlu1 %1654 }
 0x40d   :  { %v1577_v9 = vpop.permute.xlu0 %1576  ;;  %1691 = vst.msk [vmem:[#allocation2 + $0x61] sm:$0x7f] %vm1678_vm6, %v1655_v6 }
 0x40e   :  { %1608 = vst.msk [vmem:[#allocation2 + $0x67] sm:$0xfe] %vm1596_vm7, %v1577_v9 }
 0x40f   :  { %1625 = vst.msk [vmem:[#allocation2 + $0x68] sm:$0x1] %vm1611_vm4, %v2909_v48 }
 0x410   :  { %v1941_v19 = vpop.permute.xlu1 %1940  ;;  %v2055_v53 = vld [vmem:[#allocation2] sm:$0xff] }
 0x411   :  { %v1883_v61 = vpop.permute.xlu0 %1882  ;;  %1973 = vst.msk [vmem:[#allocation2 + $0x50] sm:$0xff] %vm1919_vm11, %v1941_v19  ;;  %2824 = vmatprep.mubr.msk.f32.mxu0 %vm2071_vm15, %v2055_v53 }
 0x412   :  { %1915 = vst.msk [vmem:[#allocation2 + $0x59] sm:$0x7f] %vm1904_vm9, %v1883_v61 }
 0x413   :  { %1992 = vst.msk [vmem:[#allocation2 + $0x57] sm:$0x1] %vm1981_vm12, %v2909_v48 }
 0x414   :  { %v1505_v57 = vpop.permute.xlu1 %1504 }
 0x415   :  { %v2001_v26 = vpop.permute.xlu0 %2000  ;;  %1533 = vst.msk [vmem:[#allocation2 + $0x78] sm:$0xff] %vm1461_vm14, %v1505_v57 }
 0x416   :  { %2042 = vst.msk [vmem:[#allocation2 + $0x7] sm:$0xfe] %vm2040_vm13, %v2001_v26 }
 0x417   :  { %1553 = vst.msk [vmem:[#allocation2 + $0x7f] sm:$0x1] %vm1537_vm1, %v2909_v48 }
 0x418   :  { %v1720_v47 = vpop.permute.xlu1 %1719 }
 0x419   :  { %v1657_v22 = vpop.permute.xlu0 %1656  ;;  %1756 = vst.msk [vmem:[#allocation2 + $0x60] sm:$0xff] %vm1743_vm5, %v1720_v47 }
 0x41a   :  { %1692 = vst.msk [vmem:[#allocation2 + $0x69] sm:$0x7f] %vm1678_vm6, %v1657_v22 }
 0x41b   :  { %1773 = vst.msk [vmem:[#allocation2 + $0x67] sm:$0x1] %vm1760_vm2, %v2909_v48 }
 0x41c   :  { %v2017_v18 = vpop.permute.xlu1 %2016 }
 0x41d   :  { %v1943_v25 = vpop.permute.xlu0 %1942  ;;  %v2056_v10 = vld [vmem:[#allocation2 + $0x8] sm:$0xff]  ;;  %2050 = vst.msk [vmem:[#allocation2 + $0x4f] sm:$0xfe] %vm2040_vm13, %v2017_v18 }
 0x41e   :  { %1974 = vst.msk [vmem:[#allocation2 + $0x58] sm:$0xff] %vm1919_vm11, %v1943_v25  ;;  %2825 = vmatmul.mubr.msk.f32.vlgmr.msra.gmra.mrb[16].mxu0 %vm2071_vm15, %v2056_v10 }
 0x41f   :  { %1993 = vst.msk [vmem:[#allocation2 + $0x5f] sm:$0x1] %vm1981_vm12, %v2909_v48 }
 0x420   :  { %v1581_v15 = vpop.permute.xlu1 %1580 }
 0x421   :  { %v1503_v16 = vpop.permute.xlu0 %1502  ;;  %1610 = vst.msk [vmem:[#allocation2 + $0x77] sm:$0xfe] %vm1596_vm7, %v1581_v15 }
 0x422   :  { %1532 = vst.msk [vmem:[#allocation2 + $0x70] sm:$0xff] %vm1461_vm14, %v1503_v16 }
 0x423   :  { %1627 = vst.msk [vmem:[#allocation2 + $0x78] sm:$0x1] %vm1611_vm4, %v2909_v48 }
 0x424   :  { %1552 = vst.msk [vmem:[#allocation2 + $0x77] sm:$0x1] %vm1537_vm1, %v2909_v48  ;;  %v1802_v27 = vpop.permute.xlu1 %1801  ;;  %v2065_v29 = vld [vmem:[#allocation2 + $0x50] sm:$0xff] }
 0x425   :  { %v1722_v28 = vpop.permute.xlu0 %1721  ;;  %1838 = vst.msk [vmem:[#allocation2 + $0x5f] sm:$0xfe] %vm1825_vm3, %v1802_v27  ;;  %2839 = vmatprep.mubr.msk.f32.mxu1 %vm2071_vm15, %v2065_v29 }
 0x426   :  { %1757 = vst.msk [vmem:[#allocation2 + $0x68] sm:$0xff] %vm1743_vm5, %v1722_v28 }
 0x427   :  { %1858 = vst.msk [vmem:[#allocation2 + $0x60] sm:$0x1] %vm1845_vm8, %v2909_v48 }
 0x428   :  { %1774 = vst.msk [vmem:[#allocation2 + $0x6f] sm:$0x1] %vm1760_vm2, %v2909_v48  ;;  %v1579_v12 = vpop.permute.xlu1 %1578 }
 0x429   :  { %v2019_v30 = vpop.permute.xlu0 %2018  ;;  %1609 = vst.msk [vmem:[#allocation2 + $0x6f] sm:$0xfe] %vm1596_vm7, %v1579_v12 }
 0x42a   :  { %2051 = vst.msk [vmem:[#allocation2 + $0x57] sm:$0xfe] %vm2040_vm13, %v2019_v30 }
 0x42b   :  { %1626 = vst.msk [vmem:[#allocation2 + $0x70] sm:$0x1] %vm1611_vm4, %v2909_v48 }
 0x42c   :  { %v1804_v21 = vpop.permute.xlu1 %1803 }
 0x42d   :  { %v1661_v31 = vpop.permute.xlu0 %1660  ;;  %1839 = vst.msk [vmem:[#allocation2 + $0x67] sm:$0xfe] %vm1825_vm3, %v1804_v21 }
 0x42e   :  { %1694 = vst.msk [vmem:[#allocation2 + $0x79] sm:$0x7f] %vm1678_vm6, %v1661_v31 }
 0x42f   :  { %1859 = vst.msk [vmem:[#allocation2 + $0x68] sm:$0x1] %vm1845_vm8, %v2909_v48 }
 0x430   :  { %v1659_v33 = vpop.permute.xlu1 %1658 }
 0x431   :  { %v1885_v34 = vpop.permute.xlu0 %1884  ;;  %v2066_v36 = vld [vmem:[#allocation2 + $0x58] sm:$0xff]  ;;  %1693 = vst.msk [vmem:[#allocation2 + $0x71] sm:$0x7f] %vm1678_vm6, %v1659_v33 }
 0x432   :  { %1916 = vst.msk [vmem:[#allocation2 + $0x61] sm:$0x7f] %vm1904_vm9, %v1885_v34  ;;  %2840 = vmatmul.mubr.msk.f32.gmra.mrb[8].mxu1 %vm2071_vm15, %v2066_v36 }
 0x434   :  { %v1887_v49 = vpop.permute.xlu1 %1886 }
 0x435   :  { %v1726_v37 = vpop.permute.xlu0 %1725  ;;  %1917 = vst.msk [vmem:[#allocation2 + $0x69] sm:$0x7f] %vm1904_vm9, %v1887_v49 }
 0x436   :  { %1759 = vst.msk [vmem:[#allocation2 + $0x78] sm:$0xff] %vm1743_vm5, %v1726_v37 }
 0x437   :  { %1776 = vst.msk [vmem:[#allocation2 + $0x7f] sm:$0x1] %vm1760_vm2, %v2909_v48 }
 0x438   :  { %v1724_v38 = vpop.permute.xlu1 %1723 }
 0x439   :  { %v1945_v39 = vpop.permute.xlu0 %1944  ;;  %1758 = vst.msk [vmem:[#allocation2 + $0x70] sm:$0xff] %vm1743_vm5, %v1724_v38 }
 0x43a   :  { %1975 = vst.msk [vmem:[#allocation2 + $0x60] sm:$0xff] %vm1919_vm11, %v1945_v39 }
 0x43b   :  { %1775 = vst.msk [vmem:[#allocation2 + $0x77] sm:$0x1] %vm1760_vm2, %v2909_v48 }
 0x43c   :  { %1994 = vst.msk [vmem:[#allocation2 + $0x67] sm:$0x1] %vm1981_vm12, %v2909_v48  ;;  %v1947_v52 = vpop.permute.xlu1 %1946 }
 0x43d   :  { %v1808_v41 = vpop.permute.xlu0 %1807  ;;  %1976 = vst.msk [vmem:[#allocation2 + $0x68] sm:$0xff] %vm1919_vm11, %v1947_v52 }
 0x43e   :  { %1841 = vst.msk [vmem:[#allocation2 + $0x77] sm:$0xfe] %vm1825_vm3, %v1808_v41 }
 0x43f   :  { %1995 = vst.msk [vmem:[#allocation2 + $0x6f] sm:$0x1] %vm1981_vm12, %v2909_v48 }
 0x440   :  { %1844 = vst.msk [vmem:[#allocation2 + $0x78] sm:$0xff] %vm1842_vm0, %v2909_v48  ;;  %v1806_v42 = vpop.permute.xlu1 %1805 }
 0x441   :  { %1861 = vst.msk [vmem:[#allocation2 + $0x78] sm:$0x1] %vm1845_vm8, %v2909_v48  ;;  %v2021_v23 = vpop.permute.xlu0 %2020 }
 0x442   :  { %1921 = vst.msk [vmem:[#allocation2 + $0x78] sm:$0xff] %vm1919_vm11, %v2909_v48 }
 0x443   :  { %1980 = vst.msk [vmem:[#allocation2 + $0x78] sm:$0xff] %vm1978_vm10, %v2909_v48  ;;  %vm5028_vm10 = vcmask 64512  }
 0x444   :  { %1840 = vst.msk [vmem:[#allocation2 + $0x6f] sm:$0xfe] %vm1825_vm3, %v1806_v42  ;;  %v1889_v43 = vpop.permute.xlu1 %1888  ;;  %vm5029_vm14 = vmmov %vm5028_vm10 }
 0x445   :  { %2052 = vst.msk [vmem:[#allocation2 + $0x5f] sm:$0xfe] %vm2040_vm13, %v2021_v23  ;;  %v2023_v44 = vpop.permute.xlu0 %2022  ;;  %vm5030_vm1 = vmmov %vm5028_vm10 }
 0x446   :  { %1997 = vst.msk [vmem:[#allocation2 + $0x7f] sm:$0x1] %vm1981_vm12, %v2909_v48  ;;  %vm5031_vm4 = vmmov %vm5030_vm1 }
 0x447   :  { %1860 = vst.msk [vmem:[#allocation2 + $0x70] sm:$0x1] %vm1845_vm8, %v2909_v48  ;;  %vm5032_vm7 = vmmov %vm5030_vm1 }
 0x448   :  { %1918 = vst.msk [vmem:[#allocation2 + $0x71] sm:$0x7f] %vm1904_vm9, %v1889_v43  ;;  %v2025_v45 = vpop.permute.xlu1 %2024  ;;  %vm5033_vm6 = vmmov %vm5030_vm1 }
 0x449   :  { %2053 = vst.msk [vmem:[#allocation2 + $0x67] sm:$0xfe] %vm2040_vm13, %v2023_v44  ;;  %v1949_v13 = vpop.permute.xlu0 %1948  ;;  %vm5034_vm5 = vmmov %vm5030_vm1 }
 0x44a   :  { %1977 = vst.msk [vmem:[#allocation2 + $0x70] sm:$0xff] %vm1919_vm11, %v1949_v13  ;;  %vm5035_vm2 = vmmov %vm5030_vm1 }
 0x44b   :  { %1996 = vst.msk [vmem:[#allocation2 + $0x77] sm:$0x1] %vm1981_vm12, %v2909_v48  ;;  %vm5036_vm3 = vmmov %vm5030_vm1 }
 0x44c   :  { %v2067_v24 = vld [vmem:[#allocation2 + $0x60] sm:$0xff]  ;;  %2054 = vst.msk [vmem:[#allocation2 + $0x6f] sm:$0xfe] %vm2040_vm13, %v2025_v45  ;;  %vm5037_vm8 = vmmov %vm5030_vm1 }
 0x44d   :  { %2842 = vmatprep.mubr.msk.f32.mxu1 %vm2071_vm15, %v2067_v24  ;;  %v2070_v32 = vld [vmem:[#allocation2 + $0x78] sm:$0xff]  ;;  %vm5038_vm9 = vmmov %vm5030_vm1 }
 0x44e   :  { %vm5039_vm11 = vmmov %vm5030_vm1 }
 0x44f   :  { %vm5040_vm12 = vmmov %vm5030_vm1 }
 0x450   :  { %v2068_v14 = vld [vmem:[#allocation2 + $0x68] sm:$0xff]  ;;  %vm5041_vm13 = vmmov %vm5030_vm1 }
 0x451   :  { %2843 = vmatmul.mubr.msk.f32.gmra.mrb[10].mxu1 %vm2071_vm15, %v2068_v14  ;;  %vm5043_vm0 = vmmov %vm5030_vm1 }
 0x453   :  { %v2069_v8 = vld [vmem:[#allocation2 + $0x70] sm:$0xff] }
 0x454   :  { %2845 = vmatprep.mubr.msk.f32.mxu1 %vm2071_vm15, %v2069_v8 }
 0x455   :  { %2846 = vmatmul.mubr.msk.f32.gmra.mrb[12].mxu1 %vm2071_vm15, %v2070_v32  ;;  %vm5042_vm15 = vmmov %vm5030_vm1 }
 0x470   :  { %v4657_v46 = vpop.f32.mrb[0].mxu1 }
 0x471   :  { %v4659_v54 = vpop.f32.mrb[1].mxu1  ;;  %v2288_v56 = vsel %vm5028_vm10, %v4657_v46, 0.0  ;;  %v2412_v58 = vmul.f32 %v4657_v46, %v4657_v46  ;;  %vm5044_vm10 = vmmov %vm5043_vm0 }
 0x472   :  { %v2411_v59 = vmul.f32 %v4659_v54, %v4659_v54  ;;  %v2281_v35 = vsel %vm5029_vm14, %v4659_v54, 0.0  ;;  %v2289_v17 = vrot.slane %v2288_v56, 4  ;;  %vm5045_vm14 = vmmov %vm5043_vm0 }
 0x473   :  { %v2446_v0 = vsel %vm5030_vm1, %v2412_v58, 0.0  ;;  %v2282_v60 = vrot.slane %v2281_v35, 4  ;;  %vm5046_vm1 = vmmov %vm5043_vm0 }
 0x474   :  { %v2439_v7 = vsel %vm5031_vm4, %v2411_v59, 0.0  ;;  %v2290_v63 = vadd.f32 %v2289_v17, %v2288_v56  ;;  %v2447_v1 = vrot.slane %v2446_v0, 4  ;;  %vm5047_vm4 = vmmov %vm5043_vm0 }
 0x475   :  { %v2440_v20 = vrot.slane %v2439_v7, 4  ;;  %v2283_v19 = vadd.f32 %v2282_v60, %v2281_v35 }
 0x476   :  { %v2291_v22 = vrot.slane %v2290_v63, 2  ;;  %v2448_v10 = vadd.f32 %v2447_v1, %v2446_v0 }
 0x477   :  { %v2441_v15 = vadd.f32 %v2440_v20, %v2439_v7  ;;  %v2284_v28 = vrot.slane %v2283_v19, 2 }
 0x478   :  { %v2292_v31 = vadd.f32 %v2291_v22, %v2290_v63  ;;  %v2449_v36 = vrot.slane %v2448_v10, 2 }
 0x479   :  { %v2442_v49 = vrot.slane %v2441_v15, 2  ;;  %v2285_v39 = vadd.f32 %v2284_v28, %v2283_v19 }
 0x47a   :  { %v2293_v13 = vrot.slane %v2292_v31, 1  ;;  %v2450_v8 = vadd.f32 %v2449_v36, %v2448_v10 }
 0x47b   :  { %v2443_v56 = vadd.f32 %v2442_v49, %v2441_v15 }
 0x48d   :  { %v4661_v50 = vpop.f32.mrb[2].mxu1 }
 0x48e   :  { %v4663_v51 = vpop.f32.mrb[3].mxu1  ;;  %v2414_v52 = vmul.f32 %v4661_v50, %v4661_v50  ;;  %v2302_v23 = vsel %vm5036_vm3, %v4661_v50, 0.0  ;;  %vm5052_vm3 = vmmov %vm5043_vm0 }
 0x48f   :  { %v2413_v43 = vmul.f32 %v4663_v51, %v4663_v51  ;;  %v2295_v24 = vsel %vm5037_vm8, %v4663_v51, 0.0  ;;  %v2303_v35 = vrot.slane %v2302_v23, 4  ;;  %vm5053_vm8 = vmmov %vm5043_vm0 }
 0x490   :  { %v2460_v17 = vsel %vm5039_vm11, %v2414_v52, 0.0  ;;  %v2296_v7 = vrot.slane %v2295_v24, 4  ;;  %vm5055_vm11 = vmmov %vm5043_vm0 }
 0x491   :  { %v2453_v63 = vsel %vm5041_vm13, %v2413_v43, 0.0  ;;  %vm5057_vm13 = vmmov %vm5043_vm0 }
 0x492   :  { %v2297_v22 = vadd.f32 %v2296_v7, %v2295_v24 }
 0x4a2   :  { %v4665_v48 = vpop.f32.mrb[4].mxu1 }
 0x4a3   :  { %v4667_v55 = vpop.f32.mrb[5].mxu1 }
 0x4d8   :  { %v4679_v62 = vpop.f32.mrb[6].mxu1 }
 0x4d9   :  { %v2330_v2 = vsel %vm5032_vm7, %v4679_v62, 0.0  ;;  %v2418_v3 = vmul.f32 %v4679_v62, %v4679_v62  ;;  %v4685_v4 = vpop.f32.mrb[7].mxu1  ;;  %vm5048_vm7 = vmmov %vm5043_vm0 }
 0x4da   :  { %v2331_v5 = vrot.slane %v2330_v2, 4  ;;  %v2323_v6 = vsel %vm5033_vm6, %v4685_v4, 0.0  ;;  %v2417_v9 = vmul.f32 %v4685_v4, %v4685_v4  ;;  %vm5049_vm6 = vmmov %vm5043_vm0 }
 0x4db   :  { %v2488_v61 = vsel %vm5034_vm5, %v2418_v3, 0.0  ;;  %v2324_v53 = vrot.slane %v2323_v6, 4  ;;  %v2286_v3 = vrot.slane %v2285_v39, 1  ;;  %vm5050_vm5 = vmmov %vm5043_vm0 }
 0x4dc   :  { %v2332_v57 = vadd.f32 %v2331_v5, %v2330_v2  ;;  %v2489_v26 = vrot.slane %v2488_v61, 4  ;;  %v2481_v47 = vsel %vm5035_vm2, %v2417_v9, 0.0  ;;  %v2461_v5 = vrot.slane %v2460_v17, 4  ;;  %vm5051_vm2 = vmmov %vm5043_vm0 }
 0x4dd   :  { %v2325_v18 = vadd.f32 %v2324_v53, %v2323_v6  ;;  %v2482_v25 = vrot.slane %v2481_v47, 4  ;;  %v2416_v6 = vmul.f32 %v4665_v48, %v4665_v48  ;;  %v2415_v9 = vmul.f32 %v4667_v55, %v4667_v55 }
 0x4de   :  { %v2333_v16 = vrot.slane %v2332_v57, 2  ;;  %v2490_v27 = vadd.f32 %v2489_v26, %v2488_v61  ;;  %v2294_v61 = vadd.f32 %v2293_v13, %v2292_v31  ;;  %v2451_v53 = vrot.slane %v2450_v8, 1 }
 0x4df   :  { %v2326_v29 = vrot.slane %v2325_v18, 2  ;;  %v2483_v12 = vadd.f32 %v2482_v25, %v2481_v47  ;;  %v2444_v26 = vrot.slane %v2443_v56, 1  ;;  %v2304_v47 = vadd.f32 %v2303_v35, %v2302_v23 }
 0x4e0   :  { %v2334_v30 = vadd.f32 %v2333_v16, %v2332_v57  ;;  %v2491_v21 = vrot.slane %v2490_v27, 2  ;;  %v2454_v57 = vrot.slane %v2453_v63, 4  ;;  %v2316_v25 = vsel %vm5045_vm14, %v4665_v48, 0.0  ;;  %vm5060_vm14 = vmmov %vm5043_vm0 }
 0x4e1   :  { %v2327_v33 = vadd.f32 %v2326_v29, %v2325_v18  ;;  %v2484_v34 = vrot.slane %v2483_v12, 2  ;;  %v2309_v18 = vsel %vm5044_vm10, %v4667_v55, 0.0  ;;  %v4719_v10 = vadd.f32 %v2286_v3, %v2285_v39  ;;  %vm5059_vm10 = vmmov %vm5043_vm0 }
 0x4e2   :  { %v2335_v37 = vrot.slane %v2334_v30, 1  ;;  %v2492_v38 = vadd.f32 %v2491_v21, %v2490_v27  ;;  %v2462_v15 = vadd.f32 %v2461_v5, %v2460_v17  ;;  %v2474_v16 = vsel %vm5046_vm1, %v2416_v6, 0.0  ;;  %vm5061_vm1 = vmmov %vm5043_vm0 }
 0x4e3   :  { %v2328_v41 = vrot.slane %v2327_v33, 1  ;;  %v2485_v42 = vadd.f32 %v2484_v34, %v2483_v12  ;;  %v2467_v27 = vsel %vm5047_vm4, %v2415_v9, 0.0  ;;  %v4724_v28 = vsel %vm5048_vm7, %v2294_v61, 0.0  ;;  %vm5062_vm4 = vmmov %vm5043_vm0 }
 0x4e4   :  { %v2336_v44 = vadd.f32 %v2335_v37, %v2334_v30  ;;  %v2493_v45 = vrot.slane %v2492_v38, 1  ;;  %v4726_v29 = vadd.f32 %v2451_v53, %v2450_v8  ;;  %v2455_v12 = vadd.f32 %v2454_v57, %v2453_v63  ;;  %vm5063_vm7 = vmmov %vm5043_vm0 }
 0x4e5   :  { %v2329_v14 = vadd.f32 %v2328_v41, %v2327_v33  ;;  %v2486_v32 = vrot.slane %v2485_v42, 1  ;;  %v2310_v30 = vrot.slane %v2309_v18, 4  ;;  %v4728_v21 = vadd.f32 %v2444_v26, %v2443_v56 }
 0x4e6   :  { %v2395_v58 = vsel %vm5038_vm9, %v2336_v44, 0.0  ;;  %v2494_v59 = vadd.f32 %v2493_v45, %v2492_v38  ;;  %v2305_v31 = vrot.slane %v2304_v47, 2  ;;  %v2298_v33 = vrot.slane %v2297_v22, 2  ;;  %vm5054_vm9 = vmmov %vm5043_vm0 }
 0x4e7   :  { %v2394_v0 = vsel %vm5040_vm12, %v2329_v14, 0.0  ;;  %v2487_v60 = vadd.f32 %v2486_v32, %v2485_v42  ;;  %v2317_v34 = vrot.slane %v2316_v25, 4  ;;  %v2475_v49 = vrot.slane %v2474_v16, 4  ;;  %vm5056_vm12 = vmmov %vm5043_vm0 }
 0x4e8   :  { %v2553_v1 = vsel %vm5042_vm15, %v2494_v59, 0.0  ;;  %v4706_v2 = vadd.f32 %v2395_v58, %v2394_v0  ;;  %v2468_v37 = vrot.slane %v2467_v27, 4  ;;  %v2463_v41 = vrot.slane %v2462_v15, 2  ;;  %vm5058_vm15 = vmmov %vm5043_vm0 }
 0x4e9   :  { %v2552_v20 = vsel %vm5043_vm0, %v2487_v60, 0.0  ;;  %v2456_v44 = vrot.slane %v2455_v12, 2  ;;  %v2311_v45 = vadd.f32 %v2310_v30, %v2309_v18  ;;  %v2318_v14 = vadd.f32 %v2317_v34, %v2316_v25 }
 0x4ea   :  { %v4713_v19 = vadd.f32 %v2553_v1, %v2552_v20  ;;  %v2476_v58 = vadd.f32 %v2475_v49, %v2474_v16  ;;  %v2469_v59 = vadd.f32 %v2468_v37, %v2467_v27  ;;  %v2306_v0 = vadd.f32 %v2305_v31, %v2304_v47 }
 0x4eb   :  { %v2299_v60 = vadd.f32 %v2298_v33, %v2297_v22  ;;  %v2464_v1 = vadd.f32 %v2463_v41, %v2462_v15  ;;  %v2312_v3 = vrot.slane %v2311_v45, 2  ;;  %v2457_v6 = vadd.f32 %v2456_v44, %v2455_v12 }
 0x4ec   :  { %v2319_v9 = vrot.slane %v2318_v14, 2  ;;  %v2477_v57 = vrot.slane %v2476_v58, 2  ;;  %v2470_v26 = vrot.slane %v2469_v59, 2  ;;  %v2307_v16 = vrot.slane %v2306_v0, 1 }
 0x4ed   :  { %v2300_v27 = vrot.slane %v2299_v60, 1  ;;  %v2465_v47 = vrot.slane %v2464_v1, 1  ;;  %v2313_v22 = vadd.f32 %v2312_v3, %v2311_v45  ;;  %v2458_v15 = vrot.slane %v2457_v6, 1 }
 0x4ee   :  { %v2320_v49 = vadd.f32 %v2319_v9, %v2318_v14  ;;  %v2478_v12 = vadd.f32 %v2477_v57, %v2476_v58  ;;  %v2382_v58 = vsel %vm5056_vm12, %v4719_v10, 0.0  ;;  %vm5071_vm12 = vmmov %vm5043_vm0 }
 0x4f1   :  { %v4730_v36 = vpop.f32.mrb[16].mxu0 }
 0x4f2   :  { %v2274_v38 = vsel %vm5049_vm6, %v4730_v36, 0.0  ;;  %v2410_v39 = vmul.f32 %v4730_v36, %v4730_v36  ;;  %v4736_v52 = vpop.f32.mrb[17].mxu0  ;;  %vm5064_vm6 = vmmov %vm5043_vm0 }
 0x4f3   :  { %v2275_v42 = vrot.slane %v2274_v38, 4  ;;  %v2267_v23 = vsel %vm5050_vm5, %v4736_v52, 0.0  ;;  %v2409_v43 = vmul.f32 %v4736_v52, %v4736_v52  ;;  %vm5065_vm5 = vmmov %vm5043_vm0 }
 0x4f4   :  { %v2432_v13 = vsel %vm5051_vm2, %v2410_v39, 0.0  ;;  %v2268_v24 = vrot.slane %v2267_v23, 4  ;;  %v2471_v39 = vadd.f32 %v2470_v26, %v2469_v59  ;;  %v2479_v59 = vrot.slane %v2478_v12, 1  ;;  %vm5066_vm2 = vmmov %vm5043_vm0 }
 0x4f5   :  { %v2276_v32 = vadd.f32 %v2275_v42, %v2274_v38  ;;  %v2433_v8 = vrot.slane %v2432_v13, 4  ;;  %v2425_v56 = vsel %vm5052_vm3, %v2409_v43, 0.0  ;;  %v2301_v43 = vadd.f32 %v2300_v27, %v2299_v60  ;;  %vm5067_vm3 = vmmov %vm5043_vm0 }
 0x4f6   :  { %v2269_v35 = vadd.f32 %v2268_v24, %v2267_v23  ;;  %v2426_v17 = vrot.slane %v2425_v56, 4  ;;  %v2308_v23 = vadd.f32 %v2307_v16, %v2306_v0  ;;  %v2466_v24 = vadd.f32 %v2465_v47, %v2464_v1 }
 0x4f7   :  { %v2277_v7 = vrot.slane %v2276_v32, 2  ;;  %v2434_v63 = vadd.f32 %v2433_v8, %v2432_v13  ;;  %v2542_v60 = vsel %vm5058_vm15, %v4726_v29, 0.0  ;;  %v2480_v29 = vadd.f32 %v2479_v59, %v2478_v12  ;;  %vm5073_vm15 = vmmov %vm5043_vm0 }
 0x4f8   :  { %v2270_v20 = vrot.slane %v2269_v35, 2  ;;  %v2427_v5 = vadd.f32 %v2426_v17, %v2425_v56  ;;  %v2459_v56 = vadd.f32 %v2458_v15, %v2457_v6  ;;  %v2386_v6 = vsel %vm5061_vm1, %v2301_v43, 0.0  ;;  %vm5076_vm1 = vmmov %vm5043_vm0 }
 0x4f9   :  { %v2278_v61 = vadd.f32 %v2277_v7, %v2276_v32  ;;  %v2435_v53 = vrot.slane %v2434_v63, 2  ;;  %v2314_v32 = vrot.slane %v2313_v22, 1  ;;  %v2472_v7 = vrot.slane %v2471_v39, 1 }
 0x4fa   :  { %v2271_v18 = vadd.f32 %v2270_v20, %v2269_v35  ;;  %v2428_v25 = vrot.slane %v2427_v5, 2  ;;  %v2321_v35 = vrot.slane %v2320_v49, 1  ;;  %v2388_v20 = vsel %vm5059_vm10, %v2308_v23, 0.0  ;;  %vm5074_vm10 = vmmov %vm5043_vm0 }
 0x4fb   :  { %v2279_v30 = vrot.slane %v2278_v61, 1  ;;  %v2436_v34 = vadd.f32 %v2435_v53, %v2434_v63  ;;  %v2540_v63 = vsel %vm5043_vm0, %v4728_v21, 0.0  ;;  %v2315_v9 = vadd.f32 %v2314_v32, %v2313_v22 }
 0x4fc   :  { %v2272_v31 = vrot.slane %v2271_v18, 1  ;;  %v2429_v33 = vadd.f32 %v2428_v25, %v2427_v5  ;;  %v2546_v5 = vsel %vm5060_vm14, %v2466_v24, 0.0  ;;  %v2544_v10 = vsel %vm5062_vm4, %v2459_v56, 0.0  ;;  %vm5075_vm14 = vmmov %vm5043_vm0 }
 0x4fd   :  { %v2280_v37 = vadd.f32 %v2279_v30, %v2278_v61  ;;  %v2437_v38 = vrot.slane %v2436_v34, 1  ;;  %v2322_v61 = vadd.f32 %v2321_v35, %v2320_v49  ;;  %vm5077_vm4 = vmmov %vm5043_vm0 }
 0x4fe   :  { %v2273_v41 = vadd.f32 %v2272_v31, %v2271_v18  ;;  %v2430_v42 = vrot.slane %v2429_v33, 1  ;;  %v2473_v18 = vadd.f32 %v2472_v7, %v2471_v39 }
 0x4ff   :  { %v2380_v44 = vsel %vm5053_vm8, %v2280_v37, 0.0  ;;  %v2438_v13 = vadd.f32 %v2437_v38, %v2436_v34  ;;  %v2392_v12 = vsel %vm5067_vm3, %v2322_v61, 0.0  ;;  %vm5068_vm8 = vmmov %vm5043_vm0 }
 0x500   :  { %v2379_v8 = vsel %vm5054_vm9, %v2273_v41, 0.0  ;;  %v2431_v45 = vadd.f32 %v2430_v42, %v2429_v33  ;;  %v2548_v39 = vsel %vm5068_vm8, %v2473_v18, 0.0  ;;  %vm5069_vm9 = vmmov %vm5043_vm0 }
 0x501   :  { %v2538_v14 = vsel %vm5055_vm11, %v2438_v13, 0.0  ;;  %v2381_v17 = vadd.f32 %v2380_v44, %v2379_v8  ;;  %vm5070_vm11 = vmmov %vm5043_vm0 }
 0x502   :  { %v2537_v0 = vsel %vm5057_vm13, %v2431_v45, 0.0  ;;  %v2550_v24 = vsel %vm5070_vm11, %v2480_v29, 0.0  ;;  %vm5072_vm13 = vmmov %vm5043_vm0 }
 0x503   :  { %v2383_v1 = vadd.f32 %v2382_v58, %v2381_v17  ;;  %v2539_v3 = vadd.f32 %v2538_v14, %v2537_v0  ;;  %vm5082_vm3 = vmmov %vm5043_vm0 }
 0x504   :  { %vm5083_vm8 = vmmov %vm5043_vm0 }
 0x505   :  { %v2385_v53 = vadd.f32 %v4724_v28, %v2383_v1  ;;  %v2541_v57 = vadd.f32 %v2540_v63, %v2539_v3  ;;  %v4759_v26 = vpop.f32.mrb[8].mxu1  ;;  %v2390_v28 = vsel %vm5065_vm5, %v2315_v9, 0.0  ;;  %vm5080_vm5 = vmmov %vm5043_vm0 }
 0x506   :  { %v2344_v21 = vsel %vm5063_vm7, %v4759_v26, 0.0  ;;  %v2420_v25 = vmul.f32 %v4759_v26, %v4759_v26  ;;  %v4765_v16 = vpop.f32.mrb[9].mxu1  ;;  %vm5078_vm7 = vmmov %vm5043_vm0 }
 0x507   :  { %v2387_v27 = vadd.f32 %v2386_v6, %v2385_v53  ;;  %v2543_v30 = vadd.f32 %v2542_v60, %v2541_v57  ;;  %v2345_v34 = vrot.slane %v2344_v21, 4  ;;  %v2337_v47 = vsel %vm5064_vm6, %v4765_v16, 0.0  ;;  %vm5079_vm6 = vmmov %vm5043_vm0 }
 0x508   :  { %v2502_v22 = vsel %vm5066_vm2, %v2420_v25, 0.0  ;;  %v2338_v31 = vrot.slane %v2337_v47, 4  ;;  %v2419_v33 = vmul.f32 %v4765_v16, %v4765_v16  ;;  %vm5081_vm2 = vmmov %vm5043_vm0 }
 0x509   :  { %v2389_v15 = vadd.f32 %v2388_v20, %v2387_v27  ;;  %v2545_v49 = vadd.f32 %v2544_v10, %v2543_v30  ;;  %v2346_v37 = vadd.f32 %v2345_v34, %v2344_v21  ;;  %v2503_v38 = vrot.slane %v2502_v22, 4  ;;  %vm5085_vm11 = vmmov %vm5043_vm0 }
 0x50a   :  { %v2339_v41 = vadd.f32 %v2338_v31, %v2337_v47  ;;  %v2495_v42 = vsel %vm5069_vm9, %v2419_v33, 0.0  ;;  %vm5084_vm9 = vmmov %vm5043_vm0 }
 0x50b   :  { %v2547_v23 = vadd.f32 %v2546_v5, %v2545_v49  ;;  %v2347_v43 = vrot.slane %v2346_v37, 2  ;;  %v2504_v44 = vadd.f32 %v2503_v38, %v2502_v22  ;;  %v2496_v13 = vrot.slane %v2495_v42, 4 }
 0x50c   :  { %v2340_v32 = vrot.slane %v2339_v41, 2  ;;  %v2391_v8 = vadd.f32 %v2390_v28, %v2389_v15 }
 0x50d   :  { %v2348_v45 = vadd.f32 %v2347_v43, %v2346_v37  ;;  %v2505_v56 = vrot.slane %v2504_v44, 2  ;;  %v2497_v35 = vadd.f32 %v2496_v13, %v2495_v42  ;;  %v2549_v14 = vadd.f32 %v2548_v39, %v2547_v23 }
 0x50e   :  { %v2341_v17 = vadd.f32 %v2340_v32, %v2339_v41  ;;  %v4777_v58 = vadd.f32 %v2392_v12, %v2391_v8 }
 0x50f   :  { %v2349_v59 = vrot.slane %v2348_v45, 1  ;;  %v2506_v7 = vadd.f32 %v2505_v56, %v2504_v44  ;;  %v2498_v0 = vrot.slane %v2497_v35, 2  ;;  %v4779_v60 = vadd.f32 %v2550_v24, %v2549_v14 }
 0x510   :  { %v2342_v63 = vrot.slane %v2341_v17, 1  ;;  %v4782_v1 = vmul.f32 0.015625, %v4777_v58 }
 0x511   :  { %v2507_v3 = vrot.slane %v2506_v7, 1  ;;  %v2499_v20 = vadd.f32 %v2498_v0, %v2497_v35  ;;  %v4785_v5 = vmul.f32 0.015625, %v4779_v60  ;;  %v2350_v6 = vadd.f32 %v2349_v59, %v2348_v45 }
 0x512   :  { %v2343_v9 = vadd.f32 %v2342_v63, %v2341_v17  ;;  %v4789_v10 = vmul.f32 %v4782_v1, %v4782_v1 }
 0x513   :  { %v2500_v61 = vrot.slane %v2499_v20, 1  ;;  %v2508_v29 = vadd.f32 %v2507_v3, %v2506_v7  ;;  %v2399_v25 = vsel %vm5072_vm13, %v2350_v6, 0.0  ;;  %vm5087_vm13 = vmmov %vm5043_vm0 }
 0x514   :  { %v2397_v53 = vsel %vm5071_vm12, %v2343_v9, 0.0  ;;  %v2573_v57 = vsub.f32 %v4785_v5, %v4789_v10  ;;  %vm5086_vm12 = vmmov %vm5043_vm0 }
 0x515   :  { %v2398_v18 = vadd.f32 %v2397_v53, %v4706_v2  ;;  %v2501_v21 = vadd.f32 %v2500_v61, %v2499_v20  ;;  %v2557_v47 = vsel %vm5043_vm0, %v2508_v29, 0.0 }
 0x517   :  { %v2555_v27 = vsel %vm5073_vm15, %v2501_v21, 0.0  ;;  %v2400_v30 = vadd.f32 %v2399_v25, %v2398_v18  ;;  %vm5088_vm15 = vmmov %vm5043_vm0 }
 0x518   :  { %v2556_v34 = vadd.f32 %v2555_v27, %v4713_v19 }
 0x51a   :  { %v2558_v28 = vadd.f32 %v2557_v47, %v2556_v34 }
 0x524   :  { %v4799_v22 = vpop.f32.mrb[10].mxu1 }
 0x525   :  { %v2358_v31 = vsel %vm5074_vm10, %v4799_v22, 0.0  ;;  %v2422_v33 = vmul.f32 %v4799_v22, %v4799_v22  ;;  %v4805_v2 = vpop.f32.mrb[11].mxu1  ;;  %vm5089_vm10 = vmmov %vm5043_vm0 }
 0x526   :  { %v2359_v15 = vrot.slane %v2358_v31, 4  ;;  %v2351_v49 = vsel %vm5075_vm14, %v4805_v2, 0.0  ;;  %v2421_v19 = vmul.f32 %v4805_v2, %v4805_v2  ;;  %vm5090_vm14 = vmmov %vm5043_vm0 }
 0x527   :  { %v2516_v37 = vsel %vm5076_vm1, %v2422_v33, 0.0  ;;  %v2352_v38 = vrot.slane %v2351_v49, 4  ;;  %vm5091_vm1 = vcmp.lt.s32.totalorder %v3981_v40, 4 }
 0x528   :  { %v2360_v12 = vadd.f32 %v2359_v15, %v2358_v31  ;;  %v2517_v39 = vrot.slane %v2516_v37, 4  ;;  %v2509_v41 = vsel %vm5077_vm4, %v2421_v19, 0.0  ;;  %v4813_v13 = vpop.f32.mrb[12].mxu1  ;;  %vm5092_vm4 = vmmov %vm5091_vm1 }
 0x529   :  { %v2353_v42 = vadd.f32 %v2352_v38, %v2351_v49  ;;  %v2510_v23 = vrot.slane %v2509_v41, 4  ;;  %v2372_v8 = vsel %vm5078_vm7, %v4813_v13, 0.0  ;;  %v2424_v45 = vmul.f32 %v4813_v13, %v4813_v13  ;;  %v4819_v56 = vpop.f32.mrb[13].mxu1  ;;  %vm5093_vm7 = vmmov %vm5043_vm0 }
 0x52a   :  { %v2361_v43 = vrot.slane %v2360_v12, 2  ;;  %v2518_v44 = vadd.f32 %v2517_v39, %v2516_v37  ;;  %v2373_v17 = vrot.slane %v2372_v8, 4  ;;  %v2365_v59 = vsel %vm5079_vm6, %v4819_v56, 0.0  ;;  %vm5094_vm6 = vmmov %vm5043_vm0 }
 0x52b   :  { %v2354_v24 = vrot.slane %v2353_v42, 2  ;;  %v2511_v32 = vadd.f32 %v2510_v23, %v2509_v41  ;;  %v2530_v63 = vsel %vm5080_vm5, %v2424_v45, 0.0  ;;  %v2366_v3 = vrot.slane %v2365_v59, 4  ;;  %vm5095_vm5 = vmmov %vm5091_vm1 }
 0x52c   :  { %v2362_v35 = vadd.f32 %v2361_v43, %v2360_v12  ;;  %v2519_v14 = vrot.slane %v2518_v44, 2  ;;  %v2374_v9 = vadd.f32 %v2373_v17, %v2372_v8  ;;  %v2531_v61 = vrot.slane %v2530_v63, 4 }
 0x52d   :  { %v2355_v7 = vadd.f32 %v2354_v24, %v2353_v42  ;;  %v2512_v0 = vrot.slane %v2511_v32, 2  ;;  %v2367_v18 = vadd.f32 %v2366_v3, %v2365_v59  ;;  %v2423_v21 = vmul.f32 %v4819_v56, %v4819_v56 }
 0x52e   :  { %v2363_v20 = vrot.slane %v2362_v35, 1  ;;  %v2520_v6 = vadd.f32 %v2519_v14, %v2518_v44  ;;  %v2375_v34 = vrot.slane %v2374_v9, 2  ;;  %v2532_v47 = vadd.f32 %v2531_v61, %v2530_v63 }
 0x52f   :  { %v2356_v53 = vrot.slane %v2355_v7, 1  ;;  %v2513_v29 = vadd.f32 %v2512_v0, %v2511_v32  ;;  %v2368_v15 = vrot.slane %v2367_v18, 2  ;;  %v2523_v49 = vsel %vm5081_vm2, %v2423_v21, 0.0  ;;  %vm5096_vm2 = vmmov %vm5091_vm1 }
 0x530   :  { %v2364_v25 = vadd.f32 %v2363_v20, %v2362_v35  ;;  %v2521_v27 = vrot.slane %v2520_v6, 1  ;;  %v2376_v37 = vadd.f32 %v2375_v34, %v2374_v9  ;;  %v2533_v38 = vrot.slane %v2532_v47, 2 }
 0x531   :  { %v2357_v31 = vadd.f32 %v2356_v53, %v2355_v7  ;;  %v2514_v33 = vrot.slane %v2513_v29, 1  ;;  %v2369_v41 = vadd.f32 %v2368_v15, %v2367_v18  ;;  %v2524_v42 = vrot.slane %v2523_v49, 4 }
 0x532   :  { %v2522_v19 = vadd.f32 %v2521_v27, %v2520_v6  ;;  %v2403_v23 = vsel %vm5083_vm8, %v2364_v25, 0.0  ;;  %v2377_v44 = vrot.slane %v2376_v37, 1  ;;  %v2534_v32 = vadd.f32 %v2533_v38, %v2532_v47  ;;  %vm5098_vm8 = vmmov %vm5043_vm0 }
 0x533   :  { %v2401_v12 = vsel %vm5082_vm3, %v2357_v31, 0.0  ;;  %v2515_v39 = vadd.f32 %v2514_v33, %v2513_v29  ;;  %v2370_v8 = vrot.slane %v2369_v41, 1  ;;  %v2525_v45 = vadd.f32 %v2524_v42, %v2523_v49  ;;  %vm5097_vm3 = vmmov %vm5043_vm0 }
 0x534   :  { %v2402_v43 = vadd.f32 %v2401_v12, %v2400_v30  ;;  %v2561_v17 = vsel %vm5085_vm11, %v2522_v19, 0.0  ;;  %v2378_v59 = vadd.f32 %v2377_v44, %v2376_v37  ;;  %v2535_v3 = vrot.slane %v2534_v32, 1  ;;  %vm5100_vm11 = vmmov %vm5043_vm0 }
 0x535   :  { %v2559_v24 = vsel %vm5084_vm9, %v2515_v39, 0.0  ;;  %v2371_v7 = vadd.f32 %v2370_v8, %v2369_v41  ;;  %v2526_v0 = vrot.slane %v2525_v45, 2  ;;  %vm5099_vm9 = vmmov %vm5043_vm0 }
 0x536   :  { %v2560_v35 = vadd.f32 %v2559_v24, %v2558_v28  ;;  %v2404_v14 = vadd.f32 %v2403_v23, %v2402_v43  ;;  %v2407_v30 = vsel %vm5087_vm13, %v2378_v59, 0.0  ;;  %v2536_v29 = vadd.f32 %v2535_v3, %v2534_v32  ;;  %vm5102_vm13 = vmmov %vm5043_vm0 }
 0x537   :  { %v2405_v20 = vsel %vm5086_vm12, %v2371_v7, 0.0  ;;  %v2527_v6 = vadd.f32 %v2526_v0, %v2525_v45  ;;  %v2575_v28 = vsel %vm5088_vm15, %v4777_v58, 0.0  ;;  %v2579_v58 = vsel %vm5093_vm7, %v4779_v60, 0.0  ;;  %v2265_v60 = vld [vmem:[%s4948_s5] sm:$0x1]  ;;  %vm5101_vm12 = vmmov %vm5043_vm0 }
 0x538   :  { %v2562_v63 = vadd.f32 %v2561_v17, %v2560_v35  ;;  %v2406_v9 = vadd.f32 %v2405_v20, %v2404_v14  ;;  %v2565_v31 = vsel %vm5090_vm14, %v2536_v29, 0.0  ;;  %v2587_v43 = vadd.f32 1e-05, %v2573_v57  ;;  %v2266_v14 = vld [vmem:[%s4949_s6] sm:$0x1]  ;;  %vm5103_vm15 = vmmov %vm5043_vm0 }
 0x539   :  { %v2528_v61 = vrot.slane %v2527_v6, 1  ;;  %vm5105_vm14 = vmmov %vm5043_vm0 }
 0x53a   :  { %v2408_v53 = vadd.f32 %v2407_v30, %v2406_v9  ;;  %2902 = vrsqrt.f32 %v2587_v43  ;;  %vm5108_vm7 = vmmov %vm5043_vm0 }
 0x53b   :  { %v2529_v18 = vadd.f32 %v2528_v61, %v2527_v6 }
 0x53c   :  { %v2568_v21 = vmul.f32 0.015625, %v2408_v53  ;;  %v2576_v25 = vsel %vm5043_vm0, %v2408_v53, 0.0 }
 0x53d   :  { %v2563_v27 = vsel %vm5089_vm10, %v2529_v18, 0.0  ;;  %v2577_v34 = vadd.f32 %v2576_v25, %v2575_v28  ;;  %vm5104_vm10 = vmmov %vm5043_vm0 }
 0x53e   :  { %v2564_v47 = vadd.f32 %v2563_v27, %v2562_v63  ;;  %v2572_v49 = vmul.f32 %v2568_v21, %v2568_v21 }
 0x53f   :  { %v2578_v33 = vmul.f32 0.0078125, %v2577_v34 }
 0x540   :  { %v2566_v15 = vadd.f32 %v2565_v31, %v2564_v47 }
 0x541   :  { %v2585_v19 = vsel %vm5091_vm1, %v4782_v1, %v2578_v33  ;;  %v2586_v37 = vsel %vm5092_vm4, %v2568_v21, %v2578_v33  ;;  %v2583_v41 = vmul.f32 %v2578_v33, %v2578_v33  ;;  %vm5106_vm1 = vmmov %vm5043_vm0 }
 0x542   :  { %v2570_v38 = vmul.f32 0.015625, %v2566_v15  ;;  %v2580_v12 = vsel %vm5094_vm6, %v2566_v15, 0.0  ;;  %vm5107_vm4 = vmmov %vm5043_vm0 }
 0x543   :  { %v2581_v39 = vadd.f32 %v2580_v12, %v2579_v58  ;;  %vm5109_vm6 = vmmov %vm5043_vm0 }
 0x544   :  { %v2574_v42 = vsub.f32 %v2570_v38, %v2572_v49  ;;  %v2903_v32 = vpop.eup %2902 }
 0x545   :  { %v2582_v23 = vmul.f32 0.0078125, %v2581_v39 }
 0x546   :  { %v2588_v44 = vadd.f32 1e-05, %v2574_v42 }
 0x547   :  { %v2584_v24 = vsub.f32 %v2582_v23, %v2583_v41 }
 0x548   :  { %2904 = vrsqrt.f32 %v2588_v44 }
 0x549   :  { %v2591_v1 = vadd.f32 1e-05, %v2584_v24 }
 0x54b   :  { %2906 = vrsqrt.f32 %v2591_v1 }
 0x552   :  { %v2905_v8 = vpop.eup %2904 }
 0x555   :  { %v2907_v45 = vpop.eup %2906 }
 0x556   :  { %v2593_v35 = vsel %vm5095_vm5, %v2903_v32, %v2907_v45  ;;  %v2594_v5 = vsel %vm5096_vm2, %v2905_v8, %v2907_v45  ;;  %vm5110_vm5 = vmmov %vm5043_vm0 }
 0x557   :  { %v2595_v10 = vmul.f32 %v2593_v35, %v2265_v60  ;;  %v2596_v57 = vmul.f32 %v2594_v5, %v2265_v60  ;;  %vm5111_vm2 = vmmov %vm5043_vm0 }
 0x559   :  { %v2597_v17 = vmul.f32 %v2595_v10, %v2585_v19  ;;  %v2598_v59 = vmul.f32 %v2596_v57, %v2586_v37  ;;  %v2606_v7 = vrot.slane %v2595_v10, %v4003_v11  ;;  %v2610_v0 = vrot.slane %v2596_v57, %v4003_v11 }
 0x55b   :  { %v2599_v63 = vsub.f32 %v2266_v14, %v2597_v17  ;;  %v2600_v3 = vsub.f32 %v2266_v14, %v2598_v59  ;;  %v2613_v20 = vmul.f32 %v2606_v7, %v4736_v52  ;;  %v2614_v6 = vmul.f32 %v4730_v36, %v2606_v7 }
 0x55c   :  { %v2615_v40 = vmul.f32 %v2606_v7, %v4659_v54  ;;  %v2616_v9 = vmul.f32 %v4657_v46, %v2606_v7  ;;  %v2617_v30 = vmul.f32 %v2606_v7, %v4663_v51  ;;  %v2618_v61 = vmul.f32 %v4661_v50, %v2606_v7 }
 0x55d   :  { %v2619_v53 = vmul.f32 %v2606_v7, %v4667_v55  ;;  %v2620_v29 = vmul.f32 %v4665_v48, %v2606_v7  ;;  %v2621_v18 = vmul.f32 %v2610_v0, %v4685_v4  ;;  %v2622_v21 = vmul.f32 %v4679_v62, %v2610_v0 }
 0x55e   :  { %v2623_v52 = vmul.f32 %v2610_v0, %v4765_v16  ;;  %v2624_v36 = vmul.f32 %v4759_v26, %v2610_v0  ;;  %v2625_v54 = vmul.f32 %v2610_v0, %v4805_v2  ;;  %v2626_v46 = vmul.f32 %v4799_v22, %v2610_v0 }
 0x55f   :  { %v2627_v51 = vmul.f32 %v2610_v0, %v4819_v56  ;;  %v2628_v50 = vmul.f32 %v4813_v13, %v2610_v0  ;;  %v2634_v55 = vrot.slane %v2599_v63, %v4003_v11  ;;  %v2638_v48 = vrot.slane %v2600_v3, %v4003_v11 }
 0x561   :  { %v2641_v28 = vadd.f32 %v2634_v55, %v2613_v20  ;;  %v2642_v4 = vadd.f32 %v2634_v55, %v2614_v6  ;;  %v2643_v25 = vadd.f32 %v2634_v55, %v2615_v40  ;;  %v2644_v62 = vadd.f32 %v2634_v55, %v2616_v9 }
 0x562   :  { %v2645_v27 = vadd.f32 %v2634_v55, %v2617_v30  ;;  %v2646_v16 = vadd.f32 %v2634_v55, %v2618_v61  ;;  %v2647_v34 = vadd.f32 %v2634_v55, %v2619_v53  ;;  %v2648_v26 = vadd.f32 %v2634_v55, %v2620_v29 }
 0x563   :  { %v2649_v47 = vadd.f32 %v2638_v48, %v2621_v18  ;;  %v2650_v2 = vadd.f32 %v2638_v48, %v2622_v21  ;;  %v2651_v31 = vadd.f32 %v2638_v48, %v2623_v52  ;;  %v2652_v22 = vadd.f32 %v2638_v48, %v2624_v36 }
 0x564   :  { %v2653_v33 = vadd.f32 %v2638_v48, %v2625_v54  ;;  %v2654_v56 = vadd.f32 %v2638_v48, %v2626_v46  ;;  %v2655_v15 = vadd.f32 %v2638_v48, %v2627_v51  ;;  %v2656_v13 = vadd.f32 %v2638_v48, %v2628_v50 }
 0x565   :  { %v2657_v49 = vmax.f32 %v2641_v28, 0.0  ;;  %v2658_v19 = vmax.f32 %v2642_v4, 0.0  ;;  %v2659_v37 = vmax.f32 %v2643_v25, 0.0  ;;  %v2660_v11 = vmax.f32 %v2644_v62, 0.0 }
 0x566   :  { %v2661_v38 = vmax.f32 %v2645_v27, 0.0  ;;  %v2662_v58 = vmax.f32 %v2646_v16, 0.0  ;;  %v2663_v12 = vmax.f32 %v2647_v34, 0.0  ;;  %v2664_v39 = vmax.f32 %v2648_v26, 0.0 }
 0x567   :  { %v2665_v41 = vmax.f32 %v2649_v47, 0.0  ;;  %v2666_v42 = vmax.f32 %v2650_v2, 0.0  ;;  %v2667_v23 = vmax.f32 %v2651_v31, 0.0  ;;  %v2668_v43 = vmax.f32 %v2652_v22, 0.0  ;;  %2673 = vst.msk [vmem:[%s4950_s7] sm:$0xff] %vm5097_vm3, %v2657_v49 }
 0x568   :  { %2674 = vst.msk [vmem:[%s4950_s7 + $0x8] sm:$0xff] %vm5098_vm8, %v2658_v19  ;;  %v2669_v44 = vmax.f32 %v2653_v33, 0.0  ;;  %v2670_v24 = vmax.f32 %v2654_v56, 0.0  ;;  %v2671_v1 = vmax.f32 %v2655_v15, 0.0  ;;  %v2672_v32 = vmax.f32 %v2656_v13, 0.0 }
 0x569   :  { %2675 = vst.msk [vmem:[%s4950_s7 + $0x10] sm:$0xff] %vm5099_vm9, %v2659_v37 }
 0x56a   :  { %2676 = vst.msk [vmem:[%s4950_s7 + $0x18] sm:$0xff] %vm5100_vm11, %v2660_v11 }
 0x56b   :  { %2677 = vst.msk [vmem:[%s4950_s7 + $0x20] sm:$0xff] %vm5101_vm12, %v2661_v38 }
 0x56c   :  { %2678 = vst.msk [vmem:[%s4950_s7 + $0x28] sm:$0xff] %vm5102_vm13, %v2662_v58 }
 0x56d   :  { %2679 = vst.msk [vmem:[%s4950_s7 + $0x30] sm:$0xff] %vm5103_vm15, %v2663_v12 }
 0x56e   :  { %2680 = vst.msk [vmem:[%s4950_s7 + $0x38] sm:$0xff] %vm5043_vm0, %v2664_v39 }
 0x56f   :  { %2681 = vst.msk [vmem:[%s4950_s7 + $0x40] sm:$0xff] %vm5104_vm10, %v2665_v41 }
 0x570   :  { %2682 = vst.msk [vmem:[%s4950_s7 + $0x48] sm:$0xff] %vm5105_vm14, %v2666_v42 }
 0x571   :  { %2683 = vst.msk [vmem:[%s4950_s7 + $0x50] sm:$0xff] %vm5106_vm1, %v2667_v23 }
 0x572   :  { %2684 = vst.msk [vmem:[%s4950_s7 + $0x58] sm:$0xff] %vm5107_vm4, %v2668_v43 }
 0x573   :  { %2685 = vst.msk [vmem:[%s4950_s7 + $0x60] sm:$0xff] %vm5108_vm7, %v2669_v44 }
 0x574   :  { %2686 = vst.msk [vmem:[%s4950_s7 + $0x68] sm:$0xff] %vm5109_vm6, %v2670_v24 }
 0x575   :  { %2687 = vst.msk [vmem:[%s4950_s7 + $0x70] sm:$0xff] %vm5110_vm5, %v2671_v1 }
 0x576   :  { %2688 = vst.msk [vmem:[%s4950_s7 + $0x78] sm:$0xff] %vm5111_vm2, %v2672_v32 }

</bundles_post_ra>
